<compile_context>
chip_gen: v7x
topology: tpu7x:2x2x1
jax: 0.10.0
libtpu: 0.0.40
codegen_flags: <defaults>
</compile_context>

<pallas_src>
import functools

import numpy as np
import jax
import jax.numpy as jnp
from jax import lax
from jax.experimental import pallas as pl
from jax.experimental.pallas import tpu as pltpu


# ---------------------------------------------------------------------------
# Label preparation (plain JAX -- tiny compared to the per-pixel reductions).
# ---------------------------------------------------------------------------
def to_one_hot_encoding(yb, n_ch, dtype=jnp.bfloat16):
    # yb: (B, 1, H, W) integer-valued labels -> (B, n_ch, H, W) one-hot.
    # 0/1 are exact in bf16, so build the one-hot directly in the kernel's
    # label dtype to halve label HBM traffic.
    lab = yb[:, 0].astype(jnp.int32)
    oh = lab[:, None, :, :] == jnp.arange(n_ch, dtype=jnp.int32)[None, :, None, None]
    return oh.astype(dtype)


def adaptive_max_pool2d(x, out_hw):
    # torch.F.adaptive_max_pool2d for evenly dividing output sizes.
    # TODO(synk): general adaptive pooling with non-divisible sizes not implemented.
    B, C, H, W = x.shape
    oh, ow = out_hw
    assert H % oh == 0 and W % ow == 0, "only evenly dividing pool sizes supported"
    kh, kw = H // oh, W // ow
    if kh == 1 and kw == 1:
        return x
    return lax.reduce_window(x, jnp.array(-jnp.inf, x.dtype), lax.max,
                             (1, 1, kh, kw), (1, 1, kh, kw), "VALID")


# ---------------------------------------------------------------------------
# Fused per-level reduction kernel: CE partials + per-class dice statistics.
# ---------------------------------------------------------------------------
def _lane_partial_sum(a):
    """Reduce (R, T) -> (R, 128) lane-partial sums with aligned 128-lane chunks.

    Pure VPU adds (no cross-lane XLU reduce, no relayout); the final 128-lane
    reduction happens once per level in plain JAX on the returned partials.
    """
    T = a.shape[-1]
    n = T // 128
    # log-depth halving while the chunk count is even (few large VPU adds)
    while n > 1 and n % 2 == 0:
        half = (n // 2) * 128
        a = a[:, :half] + a[:, half:2 * half]
        n //= 2
    if n == 1:
        return a
    chunks = [a[:, j * 128:(j + 1) * 128] for j in range(n)]
    while len(chunks) > 1:
        nxt = [chunks[i] + chunks[i + 1] for i in range(0, len(chunks) - 1, 2)]
        if len(chunks) % 2:
            nxt.append(chunks[-1])
        chunks = nxt
    return chunks[0]


def _ce_dice_stats_kernel(logs_ref, yb_ref, tp_ref, yv_ref, pv_ref, ce_ref, *,
                          n_classes, strict_onehot, mask_tail, hw,
                          tiles_per_split, tile):
    # logs_ref / yb_ref : (1, C, T)
    # tp/yv/pv refs     : (1, 1, C, 128)  lane-partial accumulators
    # ce_ref            : (1, 1, 1, 128)  lane-partial accumulator
    @pl.when(pl.program_id(2) == 0)
    def _init():
        tp_ref[...] = jnp.zeros_like(tp_ref)
        yv_ref[...] = jnp.zeros_like(yv_ref)
        pv_ref[...] = jnp.zeros_like(pv_ref)
        ce_ref[...] = jnp.zeros_like(ce_ref)

    x = logs_ref[0]                                # (C, T) f32 logits
    y = yb_ref[0].astype(jnp.float32)              # (C, T) exact 0/1

    # softmax over the class (sublane) axis
    m = jnp.max(x, axis=0, keepdims=True)          # (1, T)
    e = jnp.exp(x - m)                             # EUP
    s = jnp.sum(e, axis=0, keepdims=True)          # (1, T)
    p = e * pl.reciprocal(s, approx=True)          # EUP vrcp, essentially free

    # cross entropy: -log_softmax at torch.argmax(yb_oh) == first class with a 1
    if strict_onehot:
        # exactly one class set per pixel (finest level, integer labels)
        x_tgt = jnp.sum(y * x, axis=0, keepdims=True)
    else:
        # cheapened first-hit chain for (possibly multi-hot) pooled targets
        not_seen = jnp.ones_like(m)
        x_tgt = jnp.zeros_like(m)
        for c in range(n_classes):
            w = y[c:c + 1, :] * not_seen
            x_tgt = x_tgt + w * x[c:c + 1, :]
            not_seen = not_seen - w
    ce_lane = jnp.log(s) + m - x_tgt               # (1, T) = -log_softmax[target]

    p_pv = p
    if mask_tail:
        # zero out contributions of the zero-padded tail pixels of this level
        base = (pl.program_id(1) * tiles_per_split + pl.program_id(2)) * tile
        pos = base + lax.broadcasted_iota(jnp.int32, (1, tile), 1)
        valid = (pos < hw).astype(jnp.float32)
        ce_lane = ce_lane * valid
        p_pv = p * valid                           # labels are already zero in the pad

    tp_ref[0, 0] = tp_ref[0, 0] + _lane_partial_sum(y * p)    # (C, 128)
    yv_ref[0, 0] = yv_ref[0, 0] + _lane_partial_sum(y)
    pv_ref[0, 0] = pv_ref[0, 0] + _lane_partial_sum(p_pv)
    ce_ref[0, 0] = ce_ref[0, 0] + _lane_partial_sum(ce_lane)   # (1, 128)


def _choose_tiling(hw, n_ch, nsplit=2, max_tile=32768, vmem_budget=16 * 1024 * 1024):
    """Pick (tile, padded_hw, nsplit).

    tile is a multiple of 128, sized so the double-buffered input blocks stay
    well inside VMEM on every generation (v7x has only 64 MiB). Prefer a tile
    that exactly divides hw (no tail mask); otherwise pad + mask."""
    f32_rows = ((n_ch + 7) // 8) * 8            # f32 sublane padding
    bf16_rows = ((n_ch + 15) // 16) * 16        # bf16 sublane padding
    bytes_per_lane = 2 * (f32_rows * 4 + bf16_rows * 2)   # double-buffered inputs
    cap = max(128, min(max_tile, (vmem_budget // bytes_per_lane) // 128 * 128))

    hw128 = ((hw + 127) // 128) * 128
    if hw128 // 128 < nsplit:                   # not enough 128-lane chunks to split
        nsplit = 1

    if hw % (128 * nsplit) == 0:
        per = hw // nsplit
        top = min(cap, per)
        floor = max(128, top // 2)
        for cand in range(top, floor - 1, -128):
            if per % cand == 0:
                return cand, hw, nsplit
    # pad to a multiple of tile*nsplit and mask the tail inside the kernel
    tile = max(128, min(cap, hw128 // nsplit) // 128 * 128)
    step = tile * nsplit
    hw_pad = ((hw + step - 1) // step) * step
    return tile, hw_pad, nsplit


def _level_stats(logs, yb_oh, strict_onehot, nsplit=2):
    """One fused Pallas pass: per-class tp / yb_vol / pred_vol and CE sums."""
    B, C, H, W = logs.shape
    HW = H * W
    logs3 = logs.reshape(B, C, HW).astype(jnp.float32)
    yb3 = yb_oh.reshape(B, C, HW)
    if yb3.dtype != jnp.bfloat16:
        yb3 = yb3.astype(jnp.bfloat16)          # 0/1 exact; halves label HBM traffic

    tile, hw_pad, nsplit = _choose_tiling(HW, C, nsplit)
    if hw_pad != HW:
        pad = hw_pad - HW
        logs3 = jnp.pad(logs3, ((0, 0), (0, 0), (0, pad)))
        yb3 = jnp.pad(yb3, ((0, 0), (0, 0), (0, pad)))
    n_tiles = hw_pad // tile
    tiles_per_split = n_tiles // nsplit

    kernel = functools.partial(
        _ce_dice_stats_kernel, n_classes=C, strict_onehot=strict_onehot,
        mask_tail=(hw_pad != HW), hw=HW, tiles_per_split=tiles_per_split,
        tile=tile)

    stat_spec = pl.BlockSpec((1, 1, C, 128), lambda b, s, t: (b, s, 0, 0))
    ce_spec = pl.BlockSpec((1, 1, 1, 128), lambda b, s, t: (b, s, 0, 0))
    in_spec = pl.BlockSpec((1, C, tile),
                           lambda b, s, t: (b, 0, s * tiles_per_split + t))

    tp, yv, pv, ce = pl.pallas_call(
        kernel,
        out_shape=(
            jax.ShapeDtypeStruct((B, nsplit, C, 128), jnp.float32),   # tp partials
            jax.ShapeDtypeStruct((B, nsplit, C, 128), jnp.float32),   # yb_vol partials
            jax.ShapeDtypeStruct((B, nsplit, C, 128), jnp.float32),   # pred_vol partials
            jax.ShapeDtypeStruct((B, nsplit, 1, 128), jnp.float32),   # ce partials
        ),
        grid=(B, nsplit, tiles_per_split),
        in_specs=[in_spec, in_spec],
        out_specs=(stat_spec, stat_spec, stat_spec, ce_spec),
        compiler_params=pltpu.CompilerParams(
            dimension_semantics=("parallel", "parallel", "arbitrary"),
            vmem_limit_bytes=32 * 1024 * 1024,
        ),
    )(logs3, yb3)

    tp = jnp.sum(tp, axis=(1, 3))    # (B, C)
    yv = jnp.sum(yv, axis=(1, 3))
    pv = jnp.sum(pv, axis=(1, 3))
    ce_sum = jnp.sum(ce)
    return tp, yv, pv, ce_sum, HW


def _ce_dice_loss_pallas(logs, yb_oh, eps, ce_weight, dice_weight, strict_onehot):
    assert logs.shape == yb_oh.shape
    B = logs.shape[0]
    tp, yv, pv, ce_sum, HW = _level_stats(logs, yb_oh, strict_onehot)
    ce = ce_sum / (B * HW)
    dice = (tp[:, 1:] + eps) / (0.5 * yv[:, 1:] + 0.5 * pv[:, 1:] + eps)
    return ce_weight * ce + dice_weight * (1.0 - jnp.mean(dice))


def _ce_dice_loss_jax(logs, yb_oh, eps, ce_weight, dice_weight):
    # Tiny pyramid levels: a pallas_call's fixed launch/pipeline cost would
    # exceed the compute, so do the stats in plain JAX.
    y = yb_oh.astype(jnp.float32)
    logp = jax.nn.log_softmax(logs.astype(jnp.float32), axis=1)
    tgt = jnp.argmax(y, axis=1)
    ce = -jnp.take_along_axis(logp, tgt[:, None], axis=1)[:, 0]
    ce = jnp.mean(ce)
    pred = jnp.exp(logp)
    tp = jnp.sum(y[:, 1:] * pred[:, 1:], axis=(2, 3))
    yv = jnp.sum(y[:, 1:], axis=(2, 3))
    pv = jnp.sum(pred[:, 1:], axis=(2, 3))
    dice = (tp + eps) / (0.5 * yv + 0.5 * pv + eps)
    return ce_weight * ce + dice_weight * (1.0 - jnp.mean(dice))


# ---------------------------------------------------------------------------
# Module forward.
# ---------------------------------------------------------------------------
def ce_dice_pyramid_loss(logs_list, yb, mask=None, *, eps=1e-5, ce_weight=1.0,
                         dice_weight=1.0, pyramid_weight=0.5,
                         min_pallas_pixels=1024):
    # TODO(synk): optional per-pixel mask path not implemented (reference default mask=None).
    assert mask is None
    n_ch = logs_list[0].shape[1]
    from_int_labels = yb.shape[1] == 1
    if from_int_labels:
        yb = to_one_hot_encoding(yb, n_ch)      # bf16 one-hot (exact 0/1)
    else:
        yb = yb.astype(jnp.bfloat16)
    full_hw = tuple(yb.shape[2:])

    w = pyramid_weight ** np.arange(len(logs_list))
    w = w / np.sum(w)

    loss = jnp.float32(0.0)
    prev, prev_hw = yb, full_hw
    for logs, wk in zip(logs_list, w):
        out_hw = tuple(logs.shape[2:])
        # Pool level k from level k-1 when it nests evenly (identical result to
        # pooling from full resolution, but far less HBM traffic).
        if prev_hw[0] % out_hw[0] == 0 and prev_hw[1] % out_hw[1] == 0:
            yb_ds = adaptive_max_pool2d(prev, out_hw)
        else:
            yb_ds = adaptive_max_pool2d(yb, out_hw)
        prev, prev_hw = yb_ds, out_hw

        strict = from_int_labels and out_hw == full_hw   # finest level: strictly one-hot
        if out_hw[0] * out_hw[1] >= min_pallas_pixels:
            lvl = _ce_dice_loss_pallas(logs, yb_ds, eps, ce_weight, dice_weight, strict)
        else:
            lvl = _ce_dice_loss_jax(logs, yb_ds, eps, ce_weight, dice_weight)
        loss = loss + jnp.float32(wk) * lvl
    return loss


# ---------------------------------------------------------------------------
# Pure-JAX reference (mirrors the torch math) for the sanity check.
# ---------------------------------------------------------------------------
def _reference_loss(logs_list, yb, eps=1e-5, ce_weight=1.0, dice_weight=1.0,
                    pyramid_weight=0.5):
    n_ch = logs_list[0].shape[1]
    yb_oh = to_one_hot_encoding(yb, n_ch, dtype=jnp.float32)
    w = pyramid_weight ** np.arange(len(logs_list))
    w = w / np.sum(w)
    total = jnp.float32(0.0)
    for logs, wk in zip(logs_list, w):
        yds = adaptive_max_pool2d(yb_oh, tuple(logs.shape[2:]))
        tgt = jnp.argmax(yds, axis=1)
        logp = jax.nn.log_softmax(logs, axis=1)
        ce = -jnp.take_along_axis(logp, tgt[:, None], axis=1)[:, 0]
        ce = jnp.mean(ce)
        pred = jax.nn.softmax(logs, axis=1)[:, 1:]
        y1 = yds[:, 1:]
        tp = jnp.sum(y1 * pred, axis=(2, 3))
        yv = jnp.sum(y1, axis=(2, 3))
        pv = jnp.sum(pred, axis=(2, 3))
        dice = (tp + eps) / (0.5 * yv + 0.5 * pv + eps)
        total = total + jnp.float32(wk) * (ce_weight * ce
                                           + dice_weight * (1.0 - jnp.mean(dice)))
    return total


# ---------------------------------------------------------------------------
if __name__ == "__main__":
    key = jax.random.PRNGKey(0)
    k1, k2, k3, k4 = jax.random.split(key, 4)

    B, C, H, W = 2, 4, 80, 80
    logs_list = [
        # 6400 px -> Pallas, strict-one-hot fast path, evenly dividing tiles
        jax.random.normal(k1, (B, C, H, W), dtype=jnp.float32),
        # 1600 px -> Pallas, first-hit CE path, tail-masked (padded) tiles
        jax.random.normal(k2, (B, C, H // 2, W // 2), dtype=jnp.float32),
        # 400 px  -> tiny level, plain-JAX fallback
        jax.random.normal(k3, (B, C, H // 4, W // 4), dtype=jnp.float32),
    ]
    yb = jax.random.randint(k4, (B, 1, H, W), 0, C).astype(jnp.float32)

    loss_fn = jax.jit(lambda ls, y: ce_dice_pyramid_loss(ls, y))
    loss = jax.block_until_ready(loss_fn(logs_list, yb))

    ref = _reference_loss(logs_list, yb)
    # approx=True reciprocal in the softmax gives ~1e-4 relative error -> loose rtol.
    assert jnp.allclose(loss, ref, rtol=5e-3, atol=1e-4), (loss, ref)

    print("KERNEL_OK")
</pallas_src>

<mosaic_0001>
module attributes {stable_mosaic.version = 11 : i64} {
  func.func @_ce_dice_stats_kernel(%arg0: i32, %arg1: i32, %arg2: i32, %arg3: memref<1x4x768xf32, #tpu.memory_space<vmem>>, %arg4: memref<1x4x768xbf16, #tpu.memory_space<vmem>>, %arg5: memref<1x1x4x128xf32, #tpu.memory_space<vmem>>, %arg6: memref<1x1x4x128xf32, #tpu.memory_space<vmem>>, %arg7: memref<1x1x4x128xf32, #tpu.memory_space<vmem>>, %arg8: memref<1x1x1x128xf32, #tpu.memory_space<vmem>>) attributes {dimension_semantics = [#tpu.dimension_semantics<parallel>, #tpu.dimension_semantics<parallel>, #tpu.dimension_semantics<arbitrary>], iteration_bounds = array<i64: 2, 2, 2>, scalar_prefetch = 0 : i64, scratch_operands = 0 : i64, tpu.core_type = #tpu.core_type<tc>, window_params = [{transform_indices = @transform_0, window_bounds = array<i64: 1, 4, 768>}, {transform_indices = @transform_1, window_bounds = array<i64: 1, 4, 768>}, {transform_indices = @transform_2, window_bounds = array<i64: 1, 1, 4, 128>}, {transform_indices = @transform_3, window_bounds = array<i64: 1, 1, 4, 128>}, {transform_indices = @transform_4, window_bounds = array<i64: 1, 1, 4, 128>}, {transform_indices = @transform_5, window_bounds = array<i64: 1, 1, 1, 128>}]} {
    %c0_i32 = arith.constant 0 : i32
    %0 = arith.cmpi eq, %arg2, %c0_i32 : i32
    %1 = arith.extui %0 : i1 to i32
    %c0_i32_0 = arith.constant 0 : i32
    %2 = arith.cmpi ne, %1, %c0_i32_0 : i32
    scf.if %2 {
      %cst_41 = arith.constant 0.000000e+00 : f32
      %116 = vector.broadcast %cst_41 : f32 to vector<1x1x4x128xf32>
      %c0_42 = arith.constant 0 : index
      %c0_43 = arith.constant 0 : index
      %c0_44 = arith.constant 0 : index
      %c0_45 = arith.constant 0 : index
      %117 = vector.load %arg5[%c0_42, %c0_43, %c0_44, %c0_45] : memref<1x1x4x128xf32, #tpu.memory_space<vmem>>, vector<1x1x4x128xf32>
      tpu.vector_store %arg5[%c0_42, %c0_43, %c0_44, %c0_45], %116 {strides = array<i32>} : memref<1x1x4x128xf32, #tpu.memory_space<vmem>>, vector<1x1x4x128xf32>,
      %cst_46 = arith.constant 0.000000e+00 : f32
      %118 = vector.broadcast %cst_46 : f32 to vector<1x1x4x128xf32>
      %c0_47 = arith.constant 0 : index
      %c0_48 = arith.constant 0 : index
      %c0_49 = arith.constant 0 : index
      %c0_50 = arith.constant 0 : index
      %119 = vector.load %arg6[%c0_47, %c0_48, %c0_49, %c0_50] : memref<1x1x4x128xf32, #tpu.memory_space<vmem>>, vector<1x1x4x128xf32>
      tpu.vector_store %arg6[%c0_47, %c0_48, %c0_49, %c0_50], %118 {strides = array<i32>} : memref<1x1x4x128xf32, #tpu.memory_space<vmem>>, vector<1x1x4x128xf32>,
      %cst_51 = arith.constant 0.000000e+00 : f32
      %120 = vector.broadcast %cst_51 : f32 to vector<1x1x4x128xf32>
      %c0_52 = arith.constant 0 : index
      %c0_53 = arith.constant 0 : index
      %c0_54 = arith.constant 0 : index
      %c0_55 = arith.constant 0 : index
      %121 = vector.load %arg7[%c0_52, %c0_53, %c0_54, %c0_55] : memref<1x1x4x128xf32, #tpu.memory_space<vmem>>, vector<1x1x4x128xf32>
      tpu.vector_store %arg7[%c0_52, %c0_53, %c0_54, %c0_55], %120 {strides = array<i32>} : memref<1x1x4x128xf32, #tpu.memory_space<vmem>>, vector<1x1x4x128xf32>,
      %cst_56 = arith.constant 0.000000e+00 : f32
      %122 = vector.broadcast %cst_56 : f32 to vector<1x1x1x128xf32>
      %c0_57 = arith.constant 0 : index
      %c0_58 = arith.constant 0 : index
      %c0_59 = arith.constant 0 : index
      %c0_60 = arith.constant 0 : index
      %123 = vector.load %arg8[%c0_57, %c0_58, %c0_59, %c0_60] : memref<1x1x1x128xf32, #tpu.memory_space<vmem>>, vector<1x1x1x128xf32>
      tpu.vector_store %arg8[%c0_57, %c0_58, %c0_59, %c0_60], %122 {strides = array<i32>} : memref<1x1x1x128xf32, #tpu.memory_space<vmem>>, vector<1x1x1x128xf32>,
    } else {
    }
    %c0 = arith.constant 0 : index
    %c0_1 = arith.constant 0 : index
    %c0_2 = arith.constant 0 : index
    %3 = vector.load %arg3[%c0, %c0_1, %c0_2] : memref<1x4x768xf32, #tpu.memory_space<vmem>>, vector<1x4x768xf32>
    %4 = vector.shape_cast %3 : vector<1x4x768xf32> to vector<4x768xf32>
    %c0_3 = arith.constant 0 : index
    %c0_4 = arith.constant 0 : index
    %c0_5 = arith.constant 0 : index
    %5 = vector.load %arg4[%c0_3, %c0_4, %c0_5] : memref<1x4x768xbf16, #tpu.memory_space<vmem>>, vector<1x4x768xbf16>
    %6 = vector.shape_cast %5 : vector<1x4x768xbf16> to vector<4x768xbf16>
    %7 = arith.extf %6 : vector<4x768xbf16> to vector<4x768xf32>
    %cst = arith.constant dense<0xFF800000> : vector<768xf32>
    %8 = vector.multi_reduction <maximumf>, %4, %cst [0] : vector<4x768xf32> to vector<768xf32>
    %9 = vector.shape_cast %8 : vector<768xf32> to vector<1x768xf32>
    %10 = vector.broadcast %9 : vector<1x768xf32> to vector<4x768xf32>
    %11 = arith.subf %4, %10 : vector<4x768xf32>
    %12 = math.exp %11 : vector<4x768xf32>
    %cst_6 = arith.constant dense<0.000000e+00> : vector<768xf32>
    %13 = vector.multi_reduction <add>, %12, %cst_6 [0] : vector<4x768xf32> to vector<768xf32>
    %14 = vector.shape_cast %13 : vector<768xf32> to vector<1x768xf32>
    %15 = tpu.reciprocal %14 {approx = true} : vector<1x768xf32> -> vector<1x768xf32>
    %16 = vector.broadcast %15 : vector<1x768xf32> to vector<4x768xf32>
    %17 = arith.mulf %12, %16 : vector<4x768xf32>
    %cst_7 = arith.constant 1.000000e+00 : f32
    %18 = vector.broadcast %cst_7 : f32 to vector<1x768xf32>
    %cst_8 = arith.constant 0.000000e+00 : f32
    %19 = vector.broadcast %cst_8 : f32 to vector<1x768xf32>
    %20 = vector.extract_strided_slice %7 {offsets = [0, 0], sizes = [1, 768], strides = [1, 1]} : vector<4x768xf32> to vector<1x768xf32>
    %21 = arith.mulf %20, %18 : vector<1x768xf32>
    %22 = vector.extract_strided_slice %4 {offsets = [0, 0], sizes = [1, 768], strides = [1, 1]} : vector<4x768xf32> to vector<1x768xf32>
    %23 = arith.mulf %21, %22 : vector<1x768xf32>
    %24 = arith.addf %19, %23 : vector<1x768xf32>
    %25 = arith.subf %18, %21 : vector<1x768xf32>
    %26 = vector.extract_strided_slice %7 {offsets = [1, 0], sizes = [1, 768], strides = [1, 1]} : vector<4x768xf32> to vector<1x768xf32>
    %27 = arith.mulf %26, %25 : vector<1x768xf32>
    %28 = vector.extract_strided_slice %4 {offsets = [1, 0], sizes = [1, 768], strides = [1, 1]} : vector<4x768xf32> to vector<1x768xf32>
    %29 = arith.mulf %27, %28 : vector<1x768xf32>
    %30 = arith.addf %24, %29 : vector<1x768xf32>
    %31 = arith.subf %25, %27 : vector<1x768xf32>
    %32 = vector.extract_strided_slice %7 {offsets = [2, 0], sizes = [1, 768], strides = [1, 1]} : vector<4x768xf32> to vector<1x768xf32>
    %33 = arith.mulf %32, %31 : vector<1x768xf32>
    %34 = vector.extract_strided_slice %4 {offsets = [2, 0], sizes = [1, 768], strides = [1, 1]} : vector<4x768xf32> to vector<1x768xf32>
    %35 = arith.mulf %33, %34 : vector<1x768xf32>
    %36 = arith.addf %30, %35 : vector<1x768xf32>
    %37 = arith.subf %31, %33 : vector<1x768xf32>
    %38 = vector.extract_strided_slice %7 {offsets = [3, 0], sizes = [1, 768], strides = [1, 1]} : vector<4x768xf32> to vector<1x768xf32>
    %39 = arith.mulf %38, %37 : vector<1x768xf32>
    %40 = vector.extract_strided_slice %4 {offsets = [3, 0], sizes = [1, 768], strides = [1, 1]} : vector<4x768xf32> to vector<1x768xf32>
    %41 = arith.mulf %39, %40 : vector<1x768xf32>
    %42 = arith.addf %36, %41 : vector<1x768xf32>
    %43 = math.log %14 : vector<1x768xf32>
    %44 = arith.addf %43, %9 : vector<1x768xf32>
    %45 = arith.subf %44, %42 : vector<1x768xf32>
    %c2_i32 = arith.constant 2 : i32
    %46 = arith.muli %arg1, %c2_i32 : i32
    %47 = arith.addi %46, %arg2 : i32
    %c768_i32 = arith.constant 768 : i32
    %48 = arith.muli %47, %c768_i32 : i32
    %49 = tpu.iota {dimensions = array<i32: 1>} : vector<1x768xi32>
    %50 = vector.broadcast %48 : i32 to vector<1x768xi32>
    %51 = arith.addi %50, %49 : vector<1x768xi32>
    %c1600_i32 = arith.constant 1600 : i32
    %52 = vector.broadcast %c1600_i32 : i32 to vector<1x768xi32>
    %53 = arith.cmpi slt, %51, %52 : vector<1x768xi32>
    %54 = arith.extui %53 : vector<1x768xi1> to vector<1x768xi32>
    %55 = arith.sitofp %54 : vector<1x768xi32> to vector<1x768xf32>
    %56 = arith.mulf %45, %55 : vector<1x768xf32>
    %57 = vector.broadcast %55 : vector<1x768xf32> to vector<4x768xf32>
    %58 = arith.mulf %17, %57 : vector<4x768xf32>
    %c0_9 = arith.constant 0 : index
    %c0_10 = arith.constant 0 : index
    %c0_11 = arith.constant 0 : index
    %c0_12 = arith.constant 0 : index
    %59 = vector.load %arg5[%c0_9, %c0_10, %c0_11, %c0_12] : memref<1x1x4x128xf32, #tpu.memory_space<vmem>>, vector<1x1x4x128xf32>
    %60 = vector.shape_cast %59 : vector<1x1x4x128xf32> to vector<4x128xf32>
    %61 = arith.mulf %7, %17 : vector<4x768xf32>
    %62 = vector.extract_strided_slice %61 {offsets = [0, 0], sizes = [4, 384], strides = [1, 1]} : vector<4x768xf32> to vector<4x384xf32>
    %63 = vector.extract_strided_slice %61 {offsets = [0, 384], sizes = [4, 384], strides = [1, 1]} : vector<4x768xf32> to vector<4x384xf32>
    %64 = arith.addf %62, %63 : vector<4x384xf32>
    %65 = vector.extract_strided_slice %64 {offsets = [0, 0], sizes = [4, 128], strides = [1, 1]} : vector<4x384xf32> to vector<4x128xf32>
    %66 = vector.extract_strided_slice %64 {offsets = [0, 128], sizes = [4, 128], strides = [1, 1]} : vector<4x384xf32> to vector<4x128xf32>
    %67 = vector.extract_strided_slice %64 {offsets = [0, 256], sizes = [4, 128], strides = [1, 1]} : vector<4x384xf32> to vector<4x128xf32>
    %68 = arith.addf %65, %66 : vector<4x128xf32>
    %69 = arith.addf %68, %67 : vector<4x128xf32>
    %70 = arith.addf %60, %69 : vector<4x128xf32>
    %c0_13 = arith.constant 0 : index
    %c0_14 = arith.constant 0 : index
    %c0_15 = arith.constant 0 : index
    %c0_16 = arith.constant 0 : index
    %71 = vector.load %arg5[%c0_13, %c0_14, %c0_15, %c0_16] : memref<1x1x4x128xf32, #tpu.memory_space<vmem>>, vector<1x1x4x128xf32>
    %72 = vector.shape_cast %71 : vector<1x1x4x128xf32> to vector<4x128xf32>
    %73 = vector.shape_cast %70 : vector<4x128xf32> to vector<1x1x4x128xf32>
    tpu.vector_store %arg5[%c0_13, %c0_14, %c0_15, %c0_16], %73 {strides = array<i32>} : memref<1x1x4x128xf32, #tpu.memory_space<vmem>>, vector<1x1x4x128xf32>,
    %c0_17 = arith.constant 0 : index
    %c0_18 = arith.constant 0 : index
    %c0_19 = arith.constant 0 : index
    %c0_20 = arith.constant 0 : index
    %74 = vector.load %arg6[%c0_17, %c0_18, %c0_19, %c0_20] : memref<1x1x4x128xf32, #tpu.memory_space<vmem>>, vector<1x1x4x128xf32>
    %75 = vector.shape_cast %74 : vector<1x1x4x128xf32> to vector<4x128xf32>
    %76 = vector.extract_strided_slice %7 {offsets = [0, 0], sizes = [4, 384], strides = [1, 1]} : vector<4x768xf32> to vector<4x384xf32>
    %77 = vector.extract_strided_slice %7 {offsets = [0, 384], sizes = [4, 384], strides = [1, 1]} : vector<4x768xf32> to vector<4x384xf32>
    %78 = arith.addf %76, %77 : vector<4x384xf32>
    %79 = vector.extract_strided_slice %78 {offsets = [0, 0], sizes = [4, 128], strides = [1, 1]} : vector<4x384xf32> to vector<4x128xf32>
    %80 = vector.extract_strided_slice %78 {offsets = [0, 128], sizes = [4, 128], strides = [1, 1]} : vector<4x384xf32> to vector<4x128xf32>
    %81 = vector.extract_strided_slice %78 {offsets = [0, 256], sizes = [4, 128], strides = [1, 1]} : vector<4x384xf32> to vector<4x128xf32>
    %82 = arith.addf %79, %80 : vector<4x128xf32>
    %83 = arith.addf %82, %81 : vector<4x128xf32>
    %84 = arith.addf %75, %83 : vector<4x128xf32>
    %c0_21 = arith.constant 0 : index
    %c0_22 = arith.constant 0 : index
    %c0_23 = arith.constant 0 : index
    %c0_24 = arith.constant 0 : index
    %85 = vector.load %arg6[%c0_21, %c0_22, %c0_23, %c0_24] : memref<1x1x4x128xf32, #tpu.memory_space<vmem>>, vector<1x1x4x128xf32>
    %86 = vector.shape_cast %85 : vector<1x1x4x128xf32> to vector<4x128xf32>
    %87 = vector.shape_cast %84 : vector<4x128xf32> to vector<1x1x4x128xf32>
    tpu.vector_store %arg6[%c0_21, %c0_22, %c0_23, %c0_24], %87 {strides = array<i32>} : memref<1x1x4x128xf32, #tpu.memory_space<vmem>>, vector<1x1x4x128xf32>,
    %c0_25 = arith.constant 0 : index
    %c0_26 = arith.constant 0 : index
    %c0_27 = arith.constant 0 : index
    %c0_28 = arith.constant 0 : index
    %88 = vector.load %arg7[%c0_25, %c0_26, %c0_27, %c0_28] : memref<1x1x4x128xf32, #tpu.memory_space<vmem>>, vector<1x1x4x128xf32>
    %89 = vector.shape_cast %88 : vector<1x1x4x128xf32> to vector<4x128xf32>
    %90 = vector.extract_strided_slice %58 {offsets = [0, 0], sizes = [4, 384], strides = [1, 1]} : vector<4x768xf32> to vector<4x384xf32>
    %91 = vector.extract_strided_slice %58 {offsets = [0, 384], sizes = [4, 384], strides = [1, 1]} : vector<4x768xf32> to vector<4x384xf32>
    %92 = arith.addf %90, %91 : vector<4x384xf32>
    %93 = vector.extract_strided_slice %92 {offsets = [0, 0], sizes = [4, 128], strides = [1, 1]} : vector<4x384xf32> to vector<4x128xf32>
    %94 = vector.extract_strided_slice %92 {offsets = [0, 128], sizes = [4, 128], strides = [1, 1]} : vector<4x384xf32> to vector<4x128xf32>
    %95 = vector.extract_strided_slice %92 {offsets = [0, 256], sizes = [4, 128], strides = [1, 1]} : vector<4x384xf32> to vector<4x128xf32>
    %96 = arith.addf %93, %94 : vector<4x128xf32>
    %97 = arith.addf %96, %95 : vector<4x128xf32>
    %98 = arith.addf %89, %97 : vector<4x128xf32>
    %c0_29 = arith.constant 0 : index
    %c0_30 = arith.constant 0 : index
    %c0_31 = arith.constant 0 : index
    %c0_32 = arith.constant 0 : index
    %99 = vector.load %arg7[%c0_29, %c0_30, %c0_31, %c0_32] : memref<1x1x4x128xf32, #tpu.memory_space<vmem>>, vector<1x1x4x128xf32>
    %100 = vector.shape_cast %99 : vector<1x1x4x128xf32> to vector<4x128xf32>
    %101 = vector.shape_cast %98 : vector<4x128xf32> to vector<1x1x4x128xf32>
    tpu.vector_store %arg7[%c0_29, %c0_30, %c0_31, %c0_32], %101 {strides = array<i32>} : memref<1x1x4x128xf32, #tpu.memory_space<vmem>>, vector<1x1x4x128xf32>,
    %c0_33 = arith.constant 0 : index
    %c0_34 = arith.constant 0 : index
    %c0_35 = arith.constant 0 : index
    %c0_36 = arith.constant 0 : index
    %102 = vector.load %arg8[%c0_33, %c0_34, %c0_35, %c0_36] : memref<1x1x1x128xf32, #tpu.memory_space<vmem>>, vector<1x1x1x128xf32>
    %103 = vector.shape_cast %102 : vector<1x1x1x128xf32> to vector<1x128xf32>
    %104 = vector.extract_strided_slice %56 {offsets = [0, 0], sizes = [1, 384], strides = [1, 1]} : vector<1x768xf32> to vector<1x384xf32>
    %105 = vector.extract_strided_slice %56 {offsets = [0, 384], sizes = [1, 384], strides = [1, 1]} : vector<1x768xf32> to vector<1x384xf32>
    %106 = arith.addf %104, %105 : vector<1x384xf32>
    %107 = vector.extract_strided_slice %106 {offsets = [0, 0], sizes = [1, 128], strides = [1, 1]} : vector<1x384xf32> to vector<1x128xf32>
    %108 = vector.extract_strided_slice %106 {offsets = [0, 128], sizes = [1, 128], strides = [1, 1]} : vector<1x384xf32> to vector<1x128xf32>
    %109 = vector.extract_strided_slice %106 {offsets = [0, 256], sizes = [1, 128], strides = [1, 1]} : vector<1x384xf32> to vector<1x128xf32>
    %110 = arith.addf %107, %108 : vector<1x128xf32>
    %111 = arith.addf %110, %109 : vector<1x128xf32>
    %112 = arith.addf %103, %111 : vector<1x128xf32>
    %c0_37 = arith.constant 0 : index
    %c0_38 = arith.constant 0 : index
    %c0_39 = arith.constant 0 : index
    %c0_40 = arith.constant 0 : index
    %113 = vector.load %arg8[%c0_37, %c0_38, %c0_39, %c0_40] : memref<1x1x1x128xf32, #tpu.memory_space<vmem>>, vector<1x1x1x128xf32>
    %114 = vector.shape_cast %113 : vector<1x1x1x128xf32> to vector<1x128xf32>
    %115 = vector.shape_cast %112 : vector<1x128xf32> to vector<1x1x1x128xf32>
    tpu.vector_store %arg8[%c0_37, %c0_38, %c0_39, %c0_40], %115 {strides = array<i32>} : memref<1x1x1x128xf32, #tpu.memory_space<vmem>>, vector<1x1x1x128xf32>,
    return
  }
  func.func @transform_0(%arg0: i32, %arg1: i32, %arg2: i32) -> (i32, i32, i32) {
    %c2_i32 = arith.constant 2 : i32
    %0 = arith.muli %arg1, %c2_i32 : i32
    %1 = arith.addi %0, %arg2 : i32
    %c0_i32 = arith.constant 0 : i32
    %c0_i32_0 = arith.constant 0 : i32
    return %arg0, %c0_i32, %1 : i32, i32, i32
  }
  func.func @transform_1(%arg0: i32, %arg1: i32, %arg2: i32) -> (i32, i32, i32) {
    %c2_i32 = arith.constant 2 : i32
    %0 = arith.muli %arg1, %c2_i32 : i32
    %1 = arith.addi %0, %arg2 : i32
    %c0_i32 = arith.constant 0 : i32
    %c0_i32_0 = arith.constant 0 : i32
    return %arg0, %c0_i32, %1 : i32, i32, i32
  }
  func.func @transform_2(%arg0: i32, %arg1: i32, %arg2: i32) -> (i32, i32, i32, i32) {
    %c0_i32 = arith.constant 0 : i32
    %c0_i32_0 = arith.constant 0 : i32
    %c0_i32_1 = arith.constant 0 : i32
    return %arg0, %arg1, %c0_i32, %c0_i32_0 : i32, i32, i32, i32
  }
  func.func @transform_3(%arg0: i32, %arg1: i32, %arg2: i32) -> (i32, i32, i32, i32) {
    %c0_i32 = arith.constant 0 : i32
    %c0_i32_0 = arith.constant 0 : i32
    %c0_i32_1 = arith.constant 0 : i32
    return %arg0, %arg1, %c0_i32, %c0_i32_0 : i32, i32, i32, i32
  }
  func.func @transform_4(%arg0: i32, %arg1: i32, %arg2: i32) -> (i32, i32, i32, i32) {
    %c0_i32 = arith.constant 0 : i32
    %c0_i32_0 = arith.constant 0 : i32
    %c0_i32_1 = arith.constant 0 : i32
    return %arg0, %arg1, %c0_i32, %c0_i32_0 : i32, i32, i32, i32
  }
  func.func @transform_5(%arg0: i32, %arg1: i32, %arg2: i32) -> (i32, i32, i32, i32) {
    %c0_i32 = arith.constant 0 : i32
    %c0_i32_0 = arith.constant 0 : i32
    %c0_i32_1 = arith.constant 0 : i32
    return %arg0, %arg1, %c0_i32, %c0_i32_0 : i32, i32, i32, i32
  }
}

module attributes {stable_mosaic.version = 11 : i64} {
  func.func @_ce_dice_stats_kernel(%arg0: i32, %arg1: i32, %arg2: i32, %arg3: memref<1x4x3200xf32, #tpu.memory_space<vmem>>, %arg4: memref<1x4x3200xbf16, #tpu.memory_space<vmem>>, %arg5: memref<1x1x4x128xf32, #tpu.memory_space<vmem>>, %arg6: memref<1x1x4x128xf32, #tpu.memory_space<vmem>>, %arg7: memref<1x1x4x128xf32, #tpu.memory_space<vmem>>, %arg8: memref<1x1x1x128xf32, #tpu.memory_space<vmem>>) attributes {dimension_semantics = [#tpu.dimension_semantics<parallel>, #tpu.dimension_semantics<parallel>, #tpu.dimension_semantics<arbitrary>], iteration_bounds = array<i64: 2, 2, 1>, scalar_prefetch = 0 : i64, scratch_operands = 0 : i64, tpu.core_type = #tpu.core_type<tc>, window_params = [{transform_indices = @transform_0, window_bounds = array<i64: 1, 4, 3200>}, {transform_indices = @transform_1, window_bounds = array<i64: 1, 4, 3200>}, {transform_indices = @transform_2, window_bounds = array<i64: 1, 1, 4, 128>}, {transform_indices = @transform_3, window_bounds = array<i64: 1, 1, 4, 128>}, {transform_indices = @transform_4, window_bounds = array<i64: 1, 1, 4, 128>}, {transform_indices = @transform_5, window_bounds = array<i64: 1, 1, 1, 128>}]} {
    %c0_i32 = arith.constant 0 : i32
    %0 = arith.cmpi eq, %arg2, %c0_i32 : i32
    %1 = arith.extui %0 : i1 to i32
    %c0_i32_0 = arith.constant 0 : i32
    %2 = arith.cmpi ne, %1, %c0_i32_0 : i32
    scf.if %2 {
      %cst_40 = arith.constant 0.000000e+00 : f32
      %245 = vector.broadcast %cst_40 : f32 to vector<1x1x4x128xf32>
      %c0_41 = arith.constant 0 : index
      %c0_42 = arith.constant 0 : index
      %c0_43 = arith.constant 0 : index
      %c0_44 = arith.constant 0 : index
      %246 = vector.load %arg5[%c0_41, %c0_42, %c0_43, %c0_44] : memref<1x1x4x128xf32, #tpu.memory_space<vmem>>, vector<1x1x4x128xf32>
      tpu.vector_store %arg5[%c0_41, %c0_42, %c0_43, %c0_44], %245 {strides = array<i32>} : memref<1x1x4x128xf32, #tpu.memory_space<vmem>>, vector<1x1x4x128xf32>,
      %cst_45 = arith.constant 0.000000e+00 : f32
      %247 = vector.broadcast %cst_45 : f32 to vector<1x1x4x128xf32>
      %c0_46 = arith.constant 0 : index
      %c0_47 = arith.constant 0 : index
      %c0_48 = arith.constant 0 : index
      %c0_49 = arith.constant 0 : index
      %248 = vector.load %arg6[%c0_46, %c0_47, %c0_48, %c0_49] : memref<1x1x4x128xf32, #tpu.memory_space<vmem>>, vector<1x1x4x128xf32>
      tpu.vector_store %arg6[%c0_46, %c0_47, %c0_48, %c0_49], %247 {strides = array<i32>} : memref<1x1x4x128xf32, #tpu.memory_space<vmem>>, vector<1x1x4x128xf32>,
      %cst_50 = arith.constant 0.000000e+00 : f32
      %249 = vector.broadcast %cst_50 : f32 to vector<1x1x4x128xf32>
      %c0_51 = arith.constant 0 : index
      %c0_52 = arith.constant 0 : index
      %c0_53 = arith.constant 0 : index
      %c0_54 = arith.constant 0 : index
      %250 = vector.load %arg7[%c0_51, %c0_52, %c0_53, %c0_54] : memref<1x1x4x128xf32, #tpu.memory_space<vmem>>, vector<1x1x4x128xf32>
      tpu.vector_store %arg7[%c0_51, %c0_52, %c0_53, %c0_54], %249 {strides = array<i32>} : memref<1x1x4x128xf32, #tpu.memory_space<vmem>>, vector<1x1x4x128xf32>,
      %cst_55 = arith.constant 0.000000e+00 : f32
      %251 = vector.broadcast %cst_55 : f32 to vector<1x1x1x128xf32>
      %c0_56 = arith.constant 0 : index
      %c0_57 = arith.constant 0 : index
      %c0_58 = arith.constant 0 : index
      %c0_59 = arith.constant 0 : index
      %252 = vector.load %arg8[%c0_56, %c0_57, %c0_58, %c0_59] : memref<1x1x1x128xf32, #tpu.memory_space<vmem>>, vector<1x1x1x128xf32>
      tpu.vector_store %arg8[%c0_56, %c0_57, %c0_58, %c0_59], %251 {strides = array<i32>} : memref<1x1x1x128xf32, #tpu.memory_space<vmem>>, vector<1x1x1x128xf32>,
    } else {
    }
    %c0 = arith.constant 0 : index
    %c0_1 = arith.constant 0 : index
    %c0_2 = arith.constant 0 : index
    %3 = vector.load %arg3[%c0, %c0_1, %c0_2] : memref<1x4x3200xf32, #tpu.memory_space<vmem>>, vector<1x4x3200xf32>
    %4 = vector.shape_cast %3 : vector<1x4x3200xf32> to vector<4x3200xf32>
    %c0_3 = arith.constant 0 : index
    %c0_4 = arith.constant 0 : index
    %c0_5 = arith.constant 0 : index
    %5 = vector.load %arg4[%c0_3, %c0_4, %c0_5] : memref<1x4x3200xbf16, #tpu.memory_space<vmem>>, vector<1x4x3200xbf16>
    %6 = vector.shape_cast %5 : vector<1x4x3200xbf16> to vector<4x3200xbf16>
    %7 = arith.extf %6 : vector<4x3200xbf16> to vector<4x3200xf32>
    %cst = arith.constant dense<0xFF800000> : vector<3200xf32>
    %8 = vector.multi_reduction <maximumf>, %4, %cst [0] : vector<4x3200xf32> to vector<3200xf32>
    %9 = vector.shape_cast %8 : vector<3200xf32> to vector<1x3200xf32>
    %10 = vector.broadcast %9 : vector<1x3200xf32> to vector<4x3200xf32>
    %11 = arith.subf %4, %10 : vector<4x3200xf32>
    %12 = math.exp %11 : vector<4x3200xf32>
    %cst_6 = arith.constant dense<0.000000e+00> : vector<3200xf32>
    %13 = vector.multi_reduction <add>, %12, %cst_6 [0] : vector<4x3200xf32> to vector<3200xf32>
    %14 = vector.shape_cast %13 : vector<3200xf32> to vector<1x3200xf32>
    %15 = tpu.reciprocal %14 {approx = true} : vector<1x3200xf32> -> vector<1x3200xf32>
    %16 = vector.broadcast %15 : vector<1x3200xf32> to vector<4x3200xf32>
    %17 = arith.mulf %12, %16 : vector<4x3200xf32>
    %18 = arith.mulf %7, %4 : vector<4x3200xf32>
    %cst_7 = arith.constant dense<0.000000e+00> : vector<3200xf32>
    %19 = vector.multi_reduction <add>, %18, %cst_7 [0] : vector<4x3200xf32> to vector<3200xf32>
    %20 = vector.shape_cast %19 : vector<3200xf32> to vector<1x3200xf32>
    %21 = math.log %14 : vector<1x3200xf32>
    %22 = arith.addf %21, %9 : vector<1x3200xf32>
    %23 = arith.subf %22, %20 : vector<1x3200xf32>
    %c0_8 = arith.constant 0 : index
    %c0_9 = arith.constant 0 : index
    %c0_10 = arith.constant 0 : index
    %c0_11 = arith.constant 0 : index
    %24 = vector.load %arg5[%c0_8, %c0_9, %c0_10, %c0_11] : memref<1x1x4x128xf32, #tpu.memory_space<vmem>>, vector<1x1x4x128xf32>
    %25 = vector.shape_cast %24 : vector<1x1x4x128xf32> to vector<4x128xf32>
    %26 = arith.mulf %7, %17 : vector<4x3200xf32>
    %27 = vector.extract_strided_slice %26 {offsets = [0, 0], sizes = [4, 128], strides = [1, 1]} : vector<4x3200xf32> to vector<4x128xf32>
    %28 = vector.extract_strided_slice %26 {offsets = [0, 128], sizes = [4, 128], strides = [1, 1]} : vector<4x3200xf32> to vector<4x128xf32>
    %29 = vector.extract_strided_slice %26 {offsets = [0, 256], sizes = [4, 128], strides = [1, 1]} : vector<4x3200xf32> to vector<4x128xf32>
    %30 = vector.extract_strided_slice %26 {offsets = [0, 384], sizes = [4, 128], strides = [1, 1]} : vector<4x3200xf32> to vector<4x128xf32>
    %31 = vector.extract_strided_slice %26 {offsets = [0, 512], sizes = [4, 128], strides = [1, 1]} : vector<4x3200xf32> to vector<4x128xf32>
    %32 = vector.extract_strided_slice %26 {offsets = [0, 640], sizes = [4, 128], strides = [1, 1]} : vector<4x3200xf32> to vector<4x128xf32>
    %33 = vector.extract_strided_slice %26 {offsets = [0, 768], sizes = [4, 128], strides = [1, 1]} : vector<4x3200xf32> to vector<4x128xf32>
    %34 = vector.extract_strided_slice %26 {offsets = [0, 896], sizes = [4, 128], strides = [1, 1]} : vector<4x3200xf32> to vector<4x128xf32>
    %35 = vector.extract_strided_slice %26 {offsets = [0, 1024], sizes = [4, 128], strides = [1, 1]} : vector<4x3200xf32> to vector<4x128xf32>
    %36 = vector.extract_strided_slice %26 {offsets = [0, 1152], sizes = [4, 128], strides = [1, 1]} : vector<4x3200xf32> to vector<4x128xf32>
    %37 = vector.extract_strided_slice %26 {offsets = [0, 1280], sizes = [4, 128], strides = [1, 1]} : vector<4x3200xf32> to vector<4x128xf32>
    %38 = vector.extract_strided_slice %26 {offsets = [0, 1408], sizes = [4, 128], strides = [1, 1]} : vector<4x3200xf32> to vector<4x128xf32>
    %39 = vector.extract_strided_slice %26 {offsets = [0, 1536], sizes = [4, 128], strides = [1, 1]} : vector<4x3200xf32> to vector<4x128xf32>
    %40 = vector.extract_strided_slice %26 {offsets = [0, 1664], sizes = [4, 128], strides = [1, 1]} : vector<4x3200xf32> to vector<4x128xf32>
    %41 = vector.extract_strided_slice %26 {offsets = [0, 1792], sizes = [4, 128], strides = [1, 1]} : vector<4x3200xf32> to vector<4x128xf32>
    %42 = vector.extract_strided_slice %26 {offsets = [0, 1920], sizes = [4, 128], strides = [1, 1]} : vector<4x3200xf32> to vector<4x128xf32>
    %43 = vector.extract_strided_slice %26 {offsets = [0, 2048], sizes = [4, 128], strides = [1, 1]} : vector<4x3200xf32> to vector<4x128xf32>
    %44 = vector.extract_strided_slice %26 {offsets = [0, 2176], sizes = [4, 128], strides = [1, 1]} : vector<4x3200xf32> to vector<4x128xf32>
    %45 = vector.extract_strided_slice %26 {offsets = [0, 2304], sizes = [4, 128], strides = [1, 1]} : vector<4x3200xf32> to vector<4x128xf32>
    %46 = vector.extract_strided_slice %26 {offsets = [0, 2432], sizes = [4, 128], strides = [1, 1]} : vector<4x3200xf32> to vector<4x128xf32>
    %47 = vector.extract_strided_slice %26 {offsets = [0, 2560], sizes = [4, 128], strides = [1, 1]} : vector<4x3200xf32> to vector<4x128xf32>
    %48 = vector.extract_strided_slice %26 {offsets = [0, 2688], sizes = [4, 128], strides = [1, 1]} : vector<4x3200xf32> to vector<4x128xf32>
    %49 = vector.extract_strided_slice %26 {offsets = [0, 2816], sizes = [4, 128], strides = [1, 1]} : vector<4x3200xf32> to vector<4x128xf32>
    %50 = vector.extract_strided_slice %26 {offsets = [0, 2944], sizes = [4, 128], strides = [1, 1]} : vector<4x3200xf32> to vector<4x128xf32>
    %51 = vector.extract_strided_slice %26 {offsets = [0, 3072], sizes = [4, 128], strides = [1, 1]} : vector<4x3200xf32> to vector<4x128xf32>
    %52 = arith.addf %27, %28 : vector<4x128xf32>
    %53 = arith.addf %29, %30 : vector<4x128xf32>
    %54 = arith.addf %31, %32 : vector<4x128xf32>
    %55 = arith.addf %33, %34 : vector<4x128xf32>
    %56 = arith.addf %35, %36 : vector<4x128xf32>
    %57 = arith.addf %37, %38 : vector<4x128xf32>
    %58 = arith.addf %39, %40 : vector<4x128xf32>
    %59 = arith.addf %41, %42 : vector<4x128xf32>
    %60 = arith.addf %43, %44 : vector<4x128xf32>
    %61 = arith.addf %45, %46 : vector<4x128xf32>
    %62 = arith.addf %47, %48 : vector<4x128xf32>
    %63 = arith.addf %49, %50 : vector<4x128xf32>
    %64 = arith.addf %52, %53 : vector<4x128xf32>
    %65 = arith.addf %54, %55 : vector<4x128xf32>
    %66 = arith.addf %56, %57 : vector<4x128xf32>
    %67 = arith.addf %58, %59 : vector<4x128xf32>
    %68 = arith.addf %60, %61 : vector<4x128xf32>
    %69 = arith.addf %62, %63 : vector<4x128xf32>
    %70 = arith.addf %64, %65 : vector<4x128xf32>
    %71 = arith.addf %66, %67 : vector<4x128xf32>
    %72 = arith.addf %68, %69 : vector<4x128xf32>
    %73 = arith.addf %70, %71 : vector<4x128xf32>
    %74 = arith.addf %72, %51 : vector<4x128xf32>
    %75 = arith.addf %73, %74 : vector<4x128xf32>
    %76 = arith.addf %25, %75 : vector<4x128xf32>
    %c0_12 = arith.constant 0 : index
    %c0_13 = arith.constant 0 : index
    %c0_14 = arith.constant 0 : index
    %c0_15 = arith.constant 0 : index
    %77 = vector.load %arg5[%c0_12, %c0_13, %c0_14, %c0_15] : memref<1x1x4x128xf32, #tpu.memory_space<vmem>>, vector<1x1x4x128xf32>
    %78 = vector.shape_cast %77 : vector<1x1x4x128xf32> to vector<4x128xf32>
    %79 = vector.shape_cast %76 : vector<4x128xf32> to vector<1x1x4x128xf32>
    tpu.vector_store %arg5[%c0_12, %c0_13, %c0_14, %c0_15], %79 {strides = array<i32>} : memref<1x1x4x128xf32, #tpu.memory_space<vmem>>, vector<1x1x4x128xf32>,
    %c0_16 = arith.constant 0 : index
    %c0_17 = arith.constant 0 : index
    %c0_18 = arith.constant 0 : index
    %c0_19 = arith.constant 0 : index
    %80 = vector.load %arg6[%c0_16, %c0_17, %c0_18, %c0_19] : memref<1x1x4x128xf32, #tpu.memory_space<vmem>>, vector<1x1x4x128xf32>
    %81 = vector.shape_cast %80 : vector<1x1x4x128xf32> to vector<4x128xf32>
    %82 = vector.extract_strided_slice %7 {offsets = [0, 0], sizes = [4, 128], strides = [1, 1]} : vector<4x3200xf32> to vector<4x128xf32>
    %83 = vector.extract_strided_slice %7 {offsets = [0, 128], sizes = [4, 128], strides = [1, 1]} : vector<4x3200xf32> to vector<4x128xf32>
    %84 = vector.extract_strided_slice %7 {offsets = [0, 256], sizes = [4, 128], strides = [1, 1]} : vector<4x3200xf32> to vector<4x128xf32>
    %85 = vector.extract_strided_slice %7 {offsets = [0, 384], sizes = [4, 128], strides = [1, 1]} : vector<4x3200xf32> to vector<4x128xf32>
    %86 = vector.extract_strided_slice %7 {offsets = [0, 512], sizes = [4, 128], strides = [1, 1]} : vector<4x3200xf32> to vector<4x128xf32>
    %87 = vector.extract_strided_slice %7 {offsets = [0, 640], sizes = [4, 128], strides = [1, 1]} : vector<4x3200xf32> to vector<4x128xf32>
    %88 = vector.extract_strided_slice %7 {offsets = [0, 768], sizes = [4, 128], strides = [1, 1]} : vector<4x3200xf32> to vector<4x128xf32>
    %89 = vector.extract_strided_slice %7 {offsets = [0, 896], sizes = [4, 128], strides = [1, 1]} : vector<4x3200xf32> to vector<4x128xf32>
    %90 = vector.extract_strided_slice %7 {offsets = [0, 1024], sizes = [4, 128], strides = [1, 1]} : vector<4x3200xf32> to vector<4x128xf32>
    %91 = vector.extract_strided_slice %7 {offsets = [0, 1152], sizes = [4, 128], strides = [1, 1]} : vector<4x3200xf32> to vector<4x128xf32>
    %92 = vector.extract_strided_slice %7 {offsets = [0, 1280], sizes = [4, 128], strides = [1, 1]} : vector<4x3200xf32> to vector<4x128xf32>
    %93 = vector.extract_strided_slice %7 {offsets = [0, 1408], sizes = [4, 128], strides = [1, 1]} : vector<4x3200xf32> to vector<4x128xf32>
    %94 = vector.extract_strided_slice %7 {offsets = [0, 1536], sizes = [4, 128], strides = [1, 1]} : vector<4x3200xf32> to vector<4x128xf32>
    %95 = vector.extract_strided_slice %7 {offsets = [0, 1664], sizes = [4, 128], strides = [1, 1]} : vector<4x3200xf32> to vector<4x128xf32>
    %96 = vector.extract_strided_slice %7 {offsets = [0, 1792], sizes = [4, 128], strides = [1, 1]} : vector<4x3200xf32> to vector<4x128xf32>
    %97 = vector.extract_strided_slice %7 {offsets = [0, 1920], sizes = [4, 128], strides = [1, 1]} : vector<4x3200xf32> to vector<4x128xf32>
    %98 = vector.extract_strided_slice %7 {offsets = [0, 2048], sizes = [4, 128], strides = [1, 1]} : vector<4x3200xf32> to vector<4x128xf32>
    %99 = vector.extract_strided_slice %7 {offsets = [0, 2176], sizes = [4, 128], strides = [1, 1]} : vector<4x3200xf32> to vector<4x128xf32>
    %100 = vector.extract_strided_slice %7 {offsets = [0, 2304], sizes = [4, 128], strides = [1, 1]} : vector<4x3200xf32> to vector<4x128xf32>
    %101 = vector.extract_strided_slice %7 {offsets = [0, 2432], sizes = [4, 128], strides = [1, 1]} : vector<4x3200xf32> to vector<4x128xf32>
    %102 = vector.extract_strided_slice %7 {offsets = [0, 2560], sizes = [4, 128], strides = [1, 1]} : vector<4x3200xf32> to vector<4x128xf32>
    %103 = vector.extract_strided_slice %7 {offsets = [0, 2688], sizes = [4, 128], strides = [1, 1]} : vector<4x3200xf32> to vector<4x128xf32>
    %104 = vector.extract_strided_slice %7 {offsets = [0, 2816], sizes = [4, 128], strides = [1, 1]} : vector<4x3200xf32> to vector<4x128xf32>
    %105 = vector.extract_strided_slice %7 {offsets = [0, 2944], sizes = [4, 128], strides = [1, 1]} : vector<4x3200xf32> to vector<4x128xf32>
    %106 = vector.extract_strided_slice %7 {offsets = [0, 3072], sizes = [4, 128], strides = [1, 1]} : vector<4x3200xf32> to vector<4x128xf32>
    %107 = arith.addf %82, %83 : vector<4x128xf32>
    %108 = arith.addf %84, %85 : vector<4x128xf32>
    %109 = arith.addf %86, %87 : vector<4x128xf32>
    %110 = arith.addf %88, %89 : vector<4x128xf32>
    %111 = arith.addf %90, %91 : vector<4x128xf32>
    %112 = arith.addf %92, %93 : vector<4x128xf32>
    %113 = arith.addf %94, %95 : vector<4x128xf32>
    %114 = arith.addf %96, %97 : vector<4x128xf32>
    %115 = arith.addf %98, %99 : vector<4x128xf32>
    %116 = arith.addf %100, %101 : vector<4x128xf32>
    %117 = arith.addf %102, %103 : vector<4x128xf32>
    %118 = arith.addf %104, %105 : vector<4x128xf32>
    %119 = arith.addf %107, %108 : vector<4x128xf32>
    %120 = arith.addf %109, %110 : vector<4x128xf32>
    %121 = arith.addf %111, %112 : vector<4x128xf32>
    %122 = arith.addf %113, %114 : vector<4x128xf32>
    %123 = arith.addf %115, %116 : vector<4x128xf32>
    %124 = arith.addf %117, %118 : vector<4x128xf32>
    %125 = arith.addf %119, %120 : vector<4x128xf32>
    %126 = arith.addf %121, %122 : vector<4x128xf32>
    %127 = arith.addf %123, %124 : vector<4x128xf32>
    %128 = arith.addf %125, %126 : vector<4x128xf32>
    %129 = arith.addf %127, %106 : vector<4x128xf32>
    %130 = arith.addf %128, %129 : vector<4x128xf32>
    %131 = arith.addf %81, %130 : vector<4x128xf32>
    %c0_20 = arith.constant 0 : index
    %c0_21 = arith.constant 0 : index
    %c0_22 = arith.constant 0 : index
    %c0_23 = arith.constant 0 : index
    %132 = vector.load %arg6[%c0_20, %c0_21, %c0_22, %c0_23] : memref<1x1x4x128xf32, #tpu.memory_space<vmem>>, vector<1x1x4x128xf32>
    %133 = vector.shape_cast %132 : vector<1x1x4x128xf32> to vector<4x128xf32>
    %134 = vector.shape_cast %131 : vector<4x128xf32> to vector<1x1x4x128xf32>
    tpu.vector_store %arg6[%c0_20, %c0_21, %c0_22, %c0_23], %134 {strides = array<i32>} : memref<1x1x4x128xf32, #tpu.memory_space<vmem>>, vector<1x1x4x128xf32>,
    %c0_24 = arith.constant 0 : index
    %c0_25 = arith.constant 0 : index
    %c0_26 = arith.constant 0 : index
    %c0_27 = arith.constant 0 : index
    %135 = vector.load %arg7[%c0_24, %c0_25, %c0_26, %c0_27] : memref<1x1x4x128xf32, #tpu.memory_space<vmem>>, vector<1x1x4x128xf32>
    %136 = vector.shape_cast %135 : vector<1x1x4x128xf32> to vector<4x128xf32>
    %137 = vector.extract_strided_slice %17 {offsets = [0, 0], sizes = [4, 128], strides = [1, 1]} : vector<4x3200xf32> to vector<4x128xf32>
    %138 = vector.extract_strided_slice %17 {offsets = [0, 128], sizes = [4, 128], strides = [1, 1]} : vector<4x3200xf32> to vector<4x128xf32>
    %139 = vector.extract_strided_slice %17 {offsets = [0, 256], sizes = [4, 128], strides = [1, 1]} : vector<4x3200xf32> to vector<4x128xf32>
    %140 = vector.extract_strided_slice %17 {offsets = [0, 384], sizes = [4, 128], strides = [1, 1]} : vector<4x3200xf32> to vector<4x128xf32>
    %141 = vector.extract_strided_slice %17 {offsets = [0, 512], sizes = [4, 128], strides = [1, 1]} : vector<4x3200xf32> to vector<4x128xf32>
    %142 = vector.extract_strided_slice %17 {offsets = [0, 640], sizes = [4, 128], strides = [1, 1]} : vector<4x3200xf32> to vector<4x128xf32>
    %143 = vector.extract_strided_slice %17 {offsets = [0, 768], sizes = [4, 128], strides = [1, 1]} : vector<4x3200xf32> to vector<4x128xf32>
    %144 = vector.extract_strided_slice %17 {offsets = [0, 896], sizes = [4, 128], strides = [1, 1]} : vector<4x3200xf32> to vector<4x128xf32>
    %145 = vector.extract_strided_slice %17 {offsets = [0, 1024], sizes = [4, 128], strides = [1, 1]} : vector<4x3200xf32> to vector<4x128xf32>
    %146 = vector.extract_strided_slice %17 {offsets = [0, 1152], sizes = [4, 128], strides = [1, 1]} : vector<4x3200xf32> to vector<4x128xf32>
    %147 = vector.extract_strided_slice %17 {offsets = [0, 1280], sizes = [4, 128], strides = [1, 1]} : vector<4x3200xf32> to vector<4x128xf32>
    %148 = vector.extract_strided_slice %17 {offsets = [0, 1408], sizes = [4, 128], strides = [1, 1]} : vector<4x3200xf32> to vector<4x128xf32>
    %149 = vector.extract_strided_slice %17 {offsets = [0, 1536], sizes = [4, 128], strides = [1, 1]} : vector<4x3200xf32> to vector<4x128xf32>
    %150 = vector.extract_strided_slice %17 {offsets = [0, 1664], sizes = [4, 128], strides = [1, 1]} : vector<4x3200xf32> to vector<4x128xf32>
    %151 = vector.extract_strided_slice %17 {offsets = [0, 1792], sizes = [4, 128], strides = [1, 1]} : vector<4x3200xf32> to vector<4x128xf32>
    %152 = vector.extract_strided_slice %17 {offsets = [0, 1920], sizes = [4, 128], strides = [1, 1]} : vector<4x3200xf32> to vector<4x128xf32>
    %153 = vector.extract_strided_slice %17 {offsets = [0, 2048], sizes = [4, 128], strides = [1, 1]} : vector<4x3200xf32> to vector<4x128xf32>
    %154 = vector.extract_strided_slice %17 {offsets = [0, 2176], sizes = [4, 128], strides = [1, 1]} : vector<4x3200xf32> to vector<4x128xf32>
    %155 = vector.extract_strided_slice %17 {offsets = [0, 2304], sizes = [4, 128], strides = [1, 1]} : vector<4x3200xf32> to vector<4x128xf32>
    %156 = vector.extract_strided_slice %17 {offsets = [0, 2432], sizes = [4, 128], strides = [1, 1]} : vector<4x3200xf32> to vector<4x128xf32>
    %157 = vector.extract_strided_slice %17 {offsets = [0, 2560], sizes = [4, 128], strides = [1, 1]} : vector<4x3200xf32> to vector<4x128xf32>
    %158 = vector.extract_strided_slice %17 {offsets = [0, 2688], sizes = [4, 128], strides = [1, 1]} : vector<4x3200xf32> to vector<4x128xf32>
    %159 = vector.extract_strided_slice %17 {offsets = [0, 2816], sizes = [4, 128], strides = [1, 1]} : vector<4x3200xf32> to vector<4x128xf32>
    %160 = vector.extract_strided_slice %17 {offsets = [0, 2944], sizes = [4, 128], strides = [1, 1]} : vector<4x3200xf32> to vector<4x128xf32>
    %161 = vector.extract_strided_slice %17 {offsets = [0, 3072], sizes = [4, 128], strides = [1, 1]} : vector<4x3200xf32> to vector<4x128xf32>
    %162 = arith.addf %137, %138 : vector<4x128xf32>
    %163 = arith.addf %139, %140 : vector<4x128xf32>
    %164 = arith.addf %141, %142 : vector<4x128xf32>
    %165 = arith.addf %143, %144 : vector<4x128xf32>
    %166 = arith.addf %145, %146 : vector<4x128xf32>
    %167 = arith.addf %147, %148 : vector<4x128xf32>
    %168 = arith.addf %149, %150 : vector<4x128xf32>
    %169 = arith.addf %151, %152 : vector<4x128xf32>
    %170 = arith.addf %153, %154 : vector<4x128xf32>
    %171 = arith.addf %155, %156 : vector<4x128xf32>
    %172 = arith.addf %157, %158 : vector<4x128xf32>
    %173 = arith.addf %159, %160 : vector<4x128xf32>
    %174 = arith.addf %162, %163 : vector<4x128xf32>
    %175 = arith.addf %164, %165 : vector<4x128xf32>
    %176 = arith.addf %166, %167 : vector<4x128xf32>
    %177 = arith.addf %168, %169 : vector<4x128xf32>
    %178 = arith.addf %170, %171 : vector<4x128xf32>
    %179 = arith.addf %172, %173 : vector<4x128xf32>
    %180 = arith.addf %174, %175 : vector<4x128xf32>
    %181 = arith.addf %176, %177 : vector<4x128xf32>
    %182 = arith.addf %178, %179 : vector<4x128xf32>
    %183 = arith.addf %180, %181 : vector<4x128xf32>
    %184 = arith.addf %182, %161 : vector<4x128xf32>
    %185 = arith.addf %183, %184 : vector<4x128xf32>
    %186 = arith.addf %136, %185 : vector<4x128xf32>
    %c0_28 = arith.constant 0 : index
    %c0_29 = arith.constant 0 : index
    %c0_30 = arith.constant 0 : index
    %c0_31 = arith.constant 0 : index
    %187 = vector.load %arg7[%c0_28, %c0_29, %c0_30, %c0_31] : memref<1x1x4x128xf32, #tpu.memory_space<vmem>>, vector<1x1x4x128xf32>
    %188 = vector.shape_cast %187 : vector<1x1x4x128xf32> to vector<4x128xf32>
    %189 = vector.shape_cast %186 : vector<4x128xf32> to vector<1x1x4x128xf32>
    tpu.vector_store %arg7[%c0_28, %c0_29, %c0_30, %c0_31], %189 {strides = array<i32>} : memref<1x1x4x128xf32, #tpu.memory_space<vmem>>, vector<1x1x4x128xf32>,
    %c0_32 = arith.constant 0 : index
    %c0_33 = arith.constant 0 : index
    %c0_34 = arith.constant 0 : index
    %c0_35 = arith.constant 0 : index
    %190 = vector.load %arg8[%c0_32, %c0_33, %c0_34, %c0_35] : memref<1x1x1x128xf32, #tpu.memory_space<vmem>>, vector<1x1x1x128xf32>
    %191 = vector.shape_cast %190 : vector<1x1x1x128xf32> to vector<1x128xf32>
    %192 = vector.extract_strided_slice %23 {offsets = [0, 0], sizes = [1, 128], strides = [1, 1]} : vector<1x3200xf32> to vector<1x128xf32>
    %193 = vector.extract_strided_slice %23 {offsets = [0, 128], sizes = [1, 128], strides = [1, 1]} : vector<1x3200xf32> to vector<1x128xf32>
    %194 = vector.extract_strided_slice %23 {offsets = [0, 256], sizes = [1, 128], strides = [1, 1]} : vector<1x3200xf32> to vector<1x128xf32>
    %195 = vector.extract_strided_slice %23 {offsets = [0, 384], sizes = [1, 128], strides = [1, 1]} : vector<1x3200xf32> to vector<1x128xf32>
    %196 = vector.extract_strided_slice %23 {offsets = [0, 512], sizes = [1, 128], strides = [1, 1]} : vector<1x3200xf32> to vector<1x128xf32>
    %197 = vector.extract_strided_slice %23 {offsets = [0, 640], sizes = [1, 128], strides = [1, 1]} : vector<1x3200xf32> to vector<1x128xf32>
    %198 = vector.extract_strided_slice %23 {offsets = [0, 768], sizes = [1, 128], strides = [1, 1]} : vector<1x3200xf32> to vector<1x128xf32>
    %199 = vector.extract_strided_slice %23 {offsets = [0, 896], sizes = [1, 128], strides = [1, 1]} : vector<1x3200xf32> to vector<1x128xf32>
    %200 = vector.extract_strided_slice %23 {offsets = [0, 1024], sizes = [1, 128], strides = [1, 1]} : vector<1x3200xf32> to vector<1x128xf32>
    %201 = vector.extract_strided_slice %23 {offsets = [0, 1152], sizes = [1, 128], strides = [1, 1]} : vector<1x3200xf32> to vector<1x128xf32>
    %202 = vector.extract_strided_slice %23 {offsets = [0, 1280], sizes = [1, 128], strides = [1, 1]} : vector<1x3200xf32> to vector<1x128xf32>
    %203 = vector.extract_strided_slice %23 {offsets = [0, 1408], sizes = [1, 128], strides = [1, 1]} : vector<1x3200xf32> to vector<1x128xf32>
    %204 = vector.extract_strided_slice %23 {offsets = [0, 1536], sizes = [1, 128], strides = [1, 1]} : vector<1x3200xf32> to vector<1x128xf32>
    %205 = vector.extract_strided_slice %23 {offsets = [0, 1664], sizes = [1, 128], strides = [1, 1]} : vector<1x3200xf32> to vector<1x128xf32>
    %206 = vector.extract_strided_slice %23 {offsets = [0, 1792], sizes = [1, 128], strides = [1, 1]} : vector<1x3200xf32> to vector<1x128xf32>
    %207 = vector.extract_strided_slice %23 {offsets = [0, 1920], sizes = [1, 128], strides = [1, 1]} : vector<1x3200xf32> to vector<1x128xf32>
    %208 = vector.extract_strided_slice %23 {offsets = [0, 2048], sizes = [1, 128], strides = [1, 1]} : vector<1x3200xf32> to vector<1x128xf32>
    %209 = vector.extract_strided_slice %23 {offsets = [0, 2176], sizes = [1, 128], strides = [1, 1]} : vector<1x3200xf32> to vector<1x128xf32>
    %210 = vector.extract_strided_slice %23 {offsets = [0, 2304], sizes = [1, 128], strides = [1, 1]} : vector<1x3200xf32> to vector<1x128xf32>
    %211 = vector.extract_strided_slice %23 {offsets = [0, 2432], sizes = [1, 128], strides = [1, 1]} : vector<1x3200xf32> to vector<1x128xf32>
    %212 = vector.extract_strided_slice %23 {offsets = [0, 2560], sizes = [1, 128], strides = [1, 1]} : vector<1x3200xf32> to vector<1x128xf32>
    %213 = vector.extract_strided_slice %23 {offsets = [0, 2688], sizes = [1, 128], strides = [1, 1]} : vector<1x3200xf32> to vector<1x128xf32>
    %214 = vector.extract_strided_slice %23 {offsets = [0, 2816], sizes = [1, 128], strides = [1, 1]} : vector<1x3200xf32> to vector<1x128xf32>
    %215 = vector.extract_strided_slice %23 {offsets = [0, 2944], sizes = [1, 128], strides = [1, 1]} : vector<1x3200xf32> to vector<1x128xf32>
    %216 = vector.extract_strided_slice %23 {offsets = [0, 3072], sizes = [1, 128], strides = [1, 1]} : vector<1x3200xf32> to vector<1x128xf32>
    %217 = arith.addf %192, %193 : vector<1x128xf32>
    %218 = arith.addf %194, %195 : vector<1x128xf32>
    %219 = arith.addf %196, %197 : vector<1x128xf32>
    %220 = arith.addf %198, %199 : vector<1x128xf32>
    %221 = arith.addf %200, %201 : vector<1x128xf32>
    %222 = arith.addf %202, %203 : vector<1x128xf32>
    %223 = arith.addf %204, %205 : vector<1x128xf32>
    %224 = arith.addf %206, %207 : vector<1x128xf32>
    %225 = arith.addf %208, %209 : vector<1x128xf32>
    %226 = arith.addf %210, %211 : vector<1x128xf32>
    %227 = arith.addf %212, %213 : vector<1x128xf32>
    %228 = arith.addf %214, %215 : vector<1x128xf32>
    %229 = arith.addf %217, %218 : vector<1x128xf32>
    %230 = arith.addf %219, %220 : vector<1x128xf32>
    %231 = arith.addf %221, %222 : vector<1x128xf32>
    %232 = arith.addf %223, %224 : vector<1x128xf32>
    %233 = arith.addf %225, %226 : vector<1x128xf32>
    %234 = arith.addf %227, %228 : vector<1x128xf32>
    %235 = arith.addf %229, %230 : vector<1x128xf32>
    %236 = arith.addf %231, %232 : vector<1x128xf32>
    %237 = arith.addf %233, %234 : vector<1x128xf32>
    %238 = arith.addf %235, %236 : vector<1x128xf32>
    %239 = arith.addf %237, %216 : vector<1x128xf32>
    %240 = arith.addf %238, %239 : vector<1x128xf32>
    %241 = arith.addf %191, %240 : vector<1x128xf32>
    %c0_36 = arith.constant 0 : index
    %c0_37 = arith.constant 0 : index
    %c0_38 = arith.constant 0 : index
    %c0_39 = arith.constant 0 : index
    %242 = vector.load %arg8[%c0_36, %c0_37, %c0_38, %c0_39] : memref<1x1x1x128xf32, #tpu.memory_space<vmem>>, vector<1x1x1x128xf32>
    %243 = vector.shape_cast %242 : vector<1x1x1x128xf32> to vector<1x128xf32>
    %244 = vector.shape_cast %241 : vector<1x128xf32> to vector<1x1x1x128xf32>
    tpu.vector_store %arg8[%c0_36, %c0_37, %c0_38, %c0_39], %244 {strides = array<i32>} : memref<1x1x1x128xf32, #tpu.memory_space<vmem>>, vector<1x1x1x128xf32>,
    return
  }
  func.func @transform_0(%arg0: i32, %arg1: i32, %arg2: i32) -> (i32, i32, i32) {
    %c1_i32 = arith.constant 1 : i32
    %0 = arith.muli %arg1, %c1_i32 : i32
    %1 = arith.addi %0, %arg2 : i32
    %c0_i32 = arith.constant 0 : i32
    %c0_i32_0 = arith.constant 0 : i32
    return %arg0, %c0_i32, %1 : i32, i32, i32
  }
  func.func @transform_1(%arg0: i32, %arg1: i32, %arg2: i32) -> (i32, i32, i32) {
    %c1_i32 = arith.constant 1 : i32
    %0 = arith.muli %arg1, %c1_i32 : i32
    %1 = arith.addi %0, %arg2 : i32
    %c0_i32 = arith.constant 0 : i32
    %c0_i32_0 = arith.constant 0 : i32
    return %arg0, %c0_i32, %1 : i32, i32, i32
  }
  func.func @transform_2(%arg0: i32, %arg1: i32, %arg2: i32) -> (i32, i32, i32, i32) {
    %c0_i32 = arith.constant 0 : i32
    %c0_i32_0 = arith.constant 0 : i32
    %c0_i32_1 = arith.constant 0 : i32
    return %arg0, %arg1, %c0_i32, %c0_i32_0 : i32, i32, i32, i32
  }
  func.func @transform_3(%arg0: i32, %arg1: i32, %arg2: i32) -> (i32, i32, i32, i32) {
    %c0_i32 = arith.constant 0 : i32
    %c0_i32_0 = arith.constant 0 : i32
    %c0_i32_1 = arith.constant 0 : i32
    return %arg0, %arg1, %c0_i32, %c0_i32_0 : i32, i32, i32, i32
  }
  func.func @transform_4(%arg0: i32, %arg1: i32, %arg2: i32) -> (i32, i32, i32, i32) {
    %c0_i32 = arith.constant 0 : i32
    %c0_i32_0 = arith.constant 0 : i32
    %c0_i32_1 = arith.constant 0 : i32
    return %arg0, %arg1, %c0_i32, %c0_i32_0 : i32, i32, i32, i32
  }
  func.func @transform_5(%arg0: i32, %arg1: i32, %arg2: i32) -> (i32, i32, i32, i32) {
    %c0_i32 = arith.constant 0 : i32
    %c0_i32_0 = arith.constant 0 : i32
    %c0_i32_1 = arith.constant 0 : i32
    return %arg0, %arg1, %c0_i32, %c0_i32_0 : i32, i32, i32, i32
  }
}

</mosaic_0001>

<bundles_post_ra>
// kernel: _lambda_.3
= control target key start
LH: loop header
LB: loop body
LE: loop exit
PB: predicated region body
PF: predicated region fallthrough
CT: control target
= control target key end

     0   :  { %s1326_s18 = smov 0   ;;  %s1328_s19 = smov 0   ;;  %s1641_s0 = inlined_call_operand.vmem [shape: f32[2,4,3072], index: 0, kind: input, shape index: {}]   ;;  %s1642_s1 = inlined_call_operand.vmem [shape: bf16[2,4,3072], index: 1, kind: input, shape index: {}]   ;;  %s1643_s2 = inlined_call_operand.vmem [shape: f32[2,2,4,128], index: 2, kind: output, shape index: {0}]   ;;  %s1644_s3 = inlined_call_operand.vmem [shape: f32[2,2,4,128], index: 3, kind: output, shape index: {1}]   ;;  %s1645_s4 = inlined_call_operand.vmem [shape: f32[2,2,4,128], index: 4, kind: output, shape index: {2}]   ;;  %s1646_s5 = inlined_call_operand.vmem [shape: f32[2,2,1,128], index: 5, kind: output, shape index: {3}]  }
   0x1   :  { %s1330_s20 = smov 0   ;;  %s1332_s21 = smov 0  }
   0x2   :  { %s1334_s22 = smov 0   ;;  %s1336_s23 = smov 0  }
   0x3   :  { %s1338_s24 = smov 0  }
   0x4 LB: > { %1648 = sst [smem:[#allocation2_spill]] %s1288_s23  ;;  %s28_s25 = sadd.s32 1, %s1280_s21  ;;  %s1292_s24 = sphi %s1338_s24, %s16_s24   ;;  %s1288_s23 = sphi %s1336_s23, %s1660_s23   ;;  %s1284_s22 = sphi %s1334_s22, %s1659_s22   ;;  %s1280_s21 = sphi %s1332_s21, %s1658_s21   ;;  %s1276_s20 = sphi %s1330_s20, %s1652_s20   ;;  %s1272_s19 = sphi %s1328_s19, %s1657_s19   ;;  %s1268_s18 = sphi %s1326_s18, %s1656_s18  }
   0x5   : > { %p29_p0 = scmp.ge.s32.totalorder %s28_s25, 2  ;;  %s31_s26 = sadd.s32 1, %s1284_s22 }
   0x6   : > { %p1109_p1 = scmp.ge.s32.totalorder %s1292_s24, 1  ;;  %p261_p2 = scmp.lt.s32.totalorder %s1292_s24, 9 }
   0x7   : > { %s1662_s25 = smov (%p29_p0, %s28_s25), 0  ;;  %s1664_s26 = smov (!%p29_p0, %s31_s26), %s1284_s22 }
   0x8   : > { %1649 = sst [smem:[#allocation3_spill]] %s1662_s25  ;;  %p262_p3 = pnand %p1109_p1, %p261_p2 }
   0x9   : > { %p33_p4 = scmp.ge.s32.totalorder %s1664_s26, 2  ;;  %s35_s27 = sadd.s32 1, %s1288_s23 }
   0xa   : > { %265 = sbr.rel (%p262_p3) target bundleno = 113 (0x71), region = 28  ;;  %s1110_s28 = sshll.u32 (!%p262_p3), %s1272_s19, 1 }
   0xb   : > { %s1666_s26 = smov (%p33_p4, %s1664_s26), 0  ;;  %s1668_s27 = smov (!%p33_p4, %s35_s27), %s1288_s23 }
   0xc   : > { %1650 = sst [smem:[#allocation4_spill]] %s1666_s26  ;;  %p37_p5 = scmp.ge.s32.totalorder %s1668_s27, 2 }
   0xd   : > { %p335_p6 = scmp.lt.s32.totalorder (!%p262_p3), %s1276_s20, 1  ;;  %s1374_s29 = sadd.s32 (!%p262_p3), %s1268_s18, %s1110_s28 }
   0xe   : > { %s1670_s27 = smov (%p37_p5, %s1668_s27), 0  ;;  %s334_s30 = smul.u32 (!%p262_p3), 6, %s1374_s29 }
   0xf   : > { %1651 = sst [smem:[#allocation5_spill]] %s1670_s27  ;;  %p362_p7 = scmp.lt.s32.totalorder (!%p262_p3), %s1272_s19, 1 }
  0x10   : > { %p337_p8 = scmp.lt.s32.totalorder (!%p262_p3), %s334_s30, 23  ;;  %p1121_p9 = scmp.ne.s32.totalorder (!%p262_p3), %s1268_s18, 0 }
  0x11   : > { %s1672_s20 = smov (!%p335_p6, %s1276_s20), 1  ;;  %s1676_s19 = smov (!%p362_p7, %s1272_s19), 1 }
  0x12   : > { %s1146_s6 = smul.u32 24, %s1672_s20  ;;  %s1674_s30 = smov (!%p337_p8, %s334_s30), 23  ;;  %v1294_v0 = vmov (!%p1121_p9), 0.0  }
  0x13   : > { %s1114_s8 = sshll.u32 %s1672_s20, 1  ;;  %394 = sbr.rel (%p1121_p9) target bundleno = 27 (0x1b), region = 32 }
  0x14   : > { %s340_s7 = sadd.s32 %s1146_s6, %s1674_s30  ;;  %s365_s17 = sadd.s32 %s1114_s8, %s1676_s19 }
  0x15   : > { %s1111_s9 = sshll.u32 %s340_s7, 2  ;;  %s1113_s10 = sshll.u32 %s340_s7, 1 }
  0x16   : > { %s342_s13 = scalar_lea.vmem %s1641_s0, %s1111_s9  ;;  %s356_s16 = scalar_lea.vmem %s1642_s1, %s1113_s10 }
  0x17   : > { %s1115_s28 = sshll.u32 %s365_s17, 2  ;;  %s1388_s25 = scalar_lea.vmem %s1646_s5, %s365_s17 }
  0x18   : > { %s1393_s20 = scalar_lea.vmem %s1643_s2, %s1115_s28  ;;  %s1398_s9 = scalar_lea.vmem %s1644_s3, %s1115_s28  ;;  %398 = vst [vmem:[%s1388_s25] sm:$0x1] (!%p1121_p9), %v1294_v0 }
  0x19   : > { %s1403_s19 = scalar_lea.vmem %s1645_s4, %s1115_s28  ;;  %395 = vst [vmem:[%s1393_s20] sm:$0xf] (!%p1121_p9), %v1294_v0  ;;  %396 = vst [vmem:[%s1398_s9] sm:$0xf] (!%p1121_p9), %v1294_v0 }
  0x1a   : > { %397 = vst [vmem:[%s1403_s19] sm:$0xf] %v1294_v0 }
  0x1b PF: > { %v1410_v1 = vld [vmem:[%s342_s13] sm:$0xff]  ;;  %v1412_v2 = vld [vmem:[%s342_s13 + $0x8] sm:$0xff]  ;;  %v1414_v3 = vld [vmem:[%s342_s13 + $0x10] sm:$0xff]  ;;  %vm416_vm0 = vcmask 1043456   ;;  %s740_s18 = smul.u32 768, %s1374_s29 }
  0x1c   : > { %v402_v4 = vld [vmem:[%s356_s16] sm:$0xff]  ;;  %v410_v5 = vcombine.high %v1410_v1, %v1410_v1  ;;  %v411_v6 = vcombine.high %v1412_v2, %v1412_v2  ;;  %v412_v7 = vcombine.high %v1414_v3, %v1414_v3  ;;  %v417_v8 = vsel %vm416_vm0, %v1410_v1, -inf  ;;  %v403_v9 = vld [vmem:[%s356_s16 + $0x8] sm:$0xf] }
  0x1d   : > { %v1424_v10 = vunpack.c.l.bf16 %v402_v4  ;;  %v418_v11 = vrot.slane %v417_v8, 4  ;;  %v431_v13 = vsel %vm416_vm0, %v1412_v2, -inf  ;;  %v445_v15 = vsel %vm416_vm0, %v1414_v3, -inf }
  0x1e   : > { %v424_v12 = vsel %vm416_vm0, %v410_v5, -inf  ;;  %v438_v14 = vsel %vm416_vm0, %v411_v6, -inf  ;;  %v432_v18 = vrot.slane %v431_v13, 4  ;;  %v1432_v20 = vunpack.c.h.bf16 %v402_v4 }
  0x1f   : > { %v419_v16 = vmax.f32 %v417_v8, %v418_v11  ;;  %v425_v17 = vrot.slane %v424_v12, 4  ;;  %v439_v19 = vrot.slane %v438_v14, 4  ;;  %v1434_v21 = vunpack.c.l.bf16 %v403_v9 }
  0x20   : > { %v446_v22 = vrot.slane %v445_v15, 4  ;;  %v452_v23 = vsel %vm416_vm0, %v412_v7, -inf  ;;  %v433_v26 = vmax.f32 %v431_v13, %v432_v18  ;;  %v558_v30 = vsub.f32 1.0, %v1424_v10 }
  0x21   : > { %v420_v24 = vrot.slane %v419_v16, 2  ;;  %v426_v25 = vmax.f32 %v424_v12, %v425_v17  ;;  %v440_v27 = vmax.f32 %v438_v14, %v439_v19  ;;  %v453_v29 = vrot.slane %v452_v23, 4 }
  0x22   : > { %v447_v28 = vmax.f32 %v445_v15, %v446_v22  ;;  %v434_v33 = vrot.slane %v433_v26, 2  ;;  %v559_v37 = vsub.f32 1.0, %v1432_v20  ;;  %v560_v38 = vsub.f32 1.0, %v1434_v21 }
  0x23   : > { %v421_v31 = vmax.f32 %v419_v16, %v420_v24  ;;  %v427_v32 = vrot.slane %v426_v25, 2  ;;  %v441_v34 = vrot.slane %v440_v27, 2  ;;  %v454_v36 = vmax.f32 %v452_v23, %v453_v29 }
  0x24   : > { %v448_v35 = vrot.slane %v447_v28, 2  ;;  %v435_v41 = vmax.f32 %v433_v26, %v434_v33  ;;  %v564_v45 = vrot.slane %v558_v30, 7  ;;  %v565_v46 = vrot.slane %v559_v37, 7 }
  0x25   : > { %v422_v39 = vrot.slane %v421_v31, 1  ;;  %v428_v40 = vmax.f32 %v426_v25, %v427_v32  ;;  %v442_v42 = vmax.f32 %v440_v27, %v441_v34  ;;  %v455_v44 = vrot.slane %v454_v36, 2 }
  0x26   : > { %v449_v43 = vmax.f32 %v447_v28, %v448_v35  ;;  %v436_v49 = vrot.slane %v435_v41, 1  ;;  %v566_v53 = vrot.slane %v560_v38, 7  ;;  %v570_v54 = vmul.f32 %v564_v45, %v1424_v10 }
  0x27   : > { %v1440_v47 = vmax.f32 %v421_v31, %v422_v39  ;;  %v429_v48 = vrot.slane %v428_v40, 1  ;;  %v443_v50 = vrot.slane %v442_v42, 1  ;;  %v456_v52 = vmax.f32 %v454_v36, %v455_v44 }
  0x28   : > { %v450_v51 = vrot.slane %v449_v43, 1  ;;  %v1445_v56 = vmax.f32 %v435_v41, %v436_v49  ;;  %v571_v58 = vmul.f32 %v565_v46, %v1432_v20  ;;  %v572_v61 = vmul.f32 %v566_v53, %v1434_v21 }
  0x29   : > { %v1443_v55 = vmax.f32 %v428_v40, %v429_v48  ;;  %v1447_v57 = vmax.f32 %v442_v42, %v443_v50  ;;  %v457_v60 = vrot.slane %v456_v52, 1  ;;  %v1125_v0 = vrot.slane %v570_v54, 9 }
  0x2a   : > { %v1450_v59 = vmax.f32 %v449_v43, %v450_v51  ;;  %v1126_v5 = vrot.slane %v571_v58, 9  ;;  %v1127_v8 = vrot.slane %v572_v61, 9  ;;  %v573_v16 = vmul.f32 %v570_v54, %v1410_v1 }
  0x2b   : > { %v465_v62 = vcombine.low %v1440_v47, %v1443_v55  ;;  %v466_v63 = vcombine.low %v1445_v56, %v1447_v57  ;;  %v1457_v4 = vmax.f32 %v456_v52, %v457_v60  ;;  %v603_v11 = vsub.f32 %v558_v30, %v1125_v0 }
  0x2c   : > { %v604_v14 = vsub.f32 %v559_v37, %v1126_v5  ;;  %v605_v17 = vsub.f32 %v560_v38, %v1127_v8  ;;  %v574_v19 = vmul.f32 %v571_v58, %v1412_v2  ;;  %v575_v22 = vmul.f32 %v572_v61, %v1414_v3 }
  0x2d   : > { %v471_v6 = vsub.f32 %v1410_v1, %v465_v62  ;;  %v472_v7 = vsub.f32 %v1412_v2, %v466_v63  ;;  %v467_v9 = vcombine.low %v1450_v59, %v1457_v4  ;;  %v609_v18 = vrot.slane %v603_v11, 6 }
  0x2e   : > { %v610_v23 = vrot.slane %v604_v14, 6  ;;  %v611_v25 = vrot.slane %v605_v17, 6  ;;  %v702_v28 = vlaneseq  ;;  %v552_v29 = vmul.f32 %v1424_v10, %v1410_v1 }
  0x2f   : > { %v474_v12 = vmul.f32 1.442695, %v471_v6  ;;  %v476_v13 = vmul.f32 1.442695, %v472_v7  ;;  %v473_v15 = vsub.f32 %v1414_v3, %v467_v9  ;;  %v615_v26 = vmul.f32 %v609_v18, %v1424_v10 }
  0x30   : > { %v616_v27 = vmul.f32 %v610_v23, %v1432_v20  ;;  %v617_v30 = vmul.f32 %v611_v25, %v1434_v21  ;;  %v553_v31 = vmul.f32 %v1432_v20, %v1412_v2  ;;  %v554_v32 = vmul.f32 %v1434_v21, %v1414_v3 }
  0x31   : > { %1208 = vpow2.f32 %v474_v12  ;;  %v478_v24 = vmul.f32 1.442695, %v473_v15  ;;  %v1122_v33 = vrot.slane %v573_v16, 9  ;;  %v1123_v34 = vrot.slane %v574_v19, 9 }
  0x32   : > { %1210 = vpow2.f32 %v476_v13  ;;  %v1124_v35 = vrot.slane %v575_v22, 9  ;;  %v1131_v36 = vrot.slane %v615_v26, 10  ;;  %v1132_v37 = vrot.slane %v616_v27, 10 }
  0x33   : > { %1212 = vpow2.f32 %v478_v24  ;;  %v1476_v38 = vshrl.u32 %v702_v28, 7  ;;  %v1479_v39 = vmul.f32 %v615_v26, %v1410_v1  ;;  %v1481_v40 = vand.u32 127, %v702_v28 }
  0x34   : > { %v1484_v41 = vmul.f32 %v616_v27, %v1412_v2  ;;  %v1133_v42 = vrot.slane %v617_v30, 10  ;;  %v1486_v43 = vadd.f32 %v1122_v33, %v552_v29  ;;  %v1488_v44 = vadd.f32 %v1123_v34, %v553_v31 }
  0x35   : > { %v1490_v45 = vadd.f32 %v1124_v35, %v554_v32  ;;  %v648_v46 = vsub.f32 %v603_v11, %v1131_v36  ;;  %v649_v48 = vsub.f32 %v604_v14, %v1132_v37  ;;  %v1493_v49 = vsub.s32 0, %v1476_v38 }
  0x36   : > { %v1498_v51 = vmul.f32 %v617_v30, %v1414_v3  ;;  %v1128_v52 = vrot.slane %v1479_v39, 10  ;;  %v1502_v53 = vadd.s32 256, %v1481_v40  ;;  %v1505_v54 = vadd.s32 384, %v1481_v40 }
  0x37   : > { %v1129_v62 = vrot.slane %v1484_v41, 10  ;;  %v650_v63 = vsub.f32 %v605_v17, %v1133_v42  ;;  %v1519_v7 = vadd.s32 512, %v1481_v40  ;;  %v654_v12 = vrot.slane %v648_v46, 5 }
  0x38   : > { %v655_v13 = vrot.slane %v649_v48, 5  ;;  %v747_v31 = vadd.s32 640, %v1481_v40  ;;  %v817_v41 = vrot.slane %v1432_v20, 4 }
  0x39   : > { %v656_v23 = vrot.slane %v650_v63, 5  ;;  %v660_v35 = vmul.f32 %v654_v12, %v1424_v10 }
  0x3a   : > { %v661_v46 = vmul.f32 %v655_v13, %v1432_v20 }
  0x3b   : > { %v1495_v50 = vpop.eup %1208  ;;  %v662_v63 = vmul.f32 %v656_v23, %v1434_v21  ;;  %v663_v12 = vmul.f32 %v660_v35, %v1410_v1 }
  0x3c   : > { %v1507_v58 = vpop.eup %1210  ;;  %v483_v60 = vcombine.high %v1495_v50, %v1495_v50  ;;  %v489_v61 = vsel %vm416_vm0, %v1495_v50, 0.0  ;;  %v664_v13 = vmul.f32 %v661_v46, %v1412_v2  ;;  %v634_v2 = vadd.f32 %v1129_v62, %v1488_v44 }
  0x3d   : > { %v484_v0 = vcombine.high %v1507_v58, %v1507_v58  ;;  %v490_v5 = vrot.slane %v489_v61, 4  ;;  %v503_v6 = vsel %vm416_vm0, %v1507_v58, 0.0  ;;  %v1521_v8 = vpop.eup %1212  ;;  %v665_v23 = vmul.f32 %v662_v63, %v1414_v3 }
  0x3e   : > { %v496_v9 = vsel %vm416_vm0, %v483_v60, 0.0  ;;  %v504_v11 = vrot.slane %v503_v6, 4  ;;  %v485_v14 = vcombine.high %v1521_v8, %v1521_v8  ;;  %v517_v22 = vsel %vm416_vm0, %v1521_v8, 0.0 }
  0x3f   : > { %v491_v15 = vadd.f32 %v490_v5, %v489_v61  ;;  %v497_v16 = vrot.slane %v496_v9, 4  ;;  %v510_v17 = vsel %vm416_vm0, %v484_v0, 0.0  ;;  %v518_v26 = vrot.slane %v517_v22, 4 }
  0x40   : > { %v505_v18 = vadd.f32 %v504_v11, %v503_v6  ;;  %v511_v19 = vrot.slane %v510_v17, 4  ;;  %v524_v27 = vsel %vm416_vm0, %v485_v14, 0.0  ;;  %v1134_v1 = vrot.slane %v663_v12, 11 }
  0x41   : > { %v492_v24 = vrot.slane %v491_v15, 2  ;;  %v498_v25 = vadd.f32 %v497_v16, %v496_v9  ;;  %v525_v30 = vrot.slane %v524_v27, 4  ;;  %v519_v34 = vadd.f32 %v518_v26, %v517_v22 }
  0x42   : > { %v506_v28 = vrot.slane %v505_v18, 2  ;;  %v512_v29 = vadd.f32 %v511_v19, %v510_v17  ;;  %v1130_v9 = vrot.slane %v1498_v51, 10  ;;  %v633_v51 = vadd.f32 %v1128_v52, %v1486_v43 }
  0x43   : > { %v493_v32 = vadd.f32 %v492_v24, %v491_v15  ;;  %v499_v33 = vrot.slane %v498_v25, 2  ;;  %v526_v42 = vadd.f32 %v525_v30, %v524_v27  ;;  %v520_v61 = vrot.slane %v519_v34, 2 }
  0x44   : > { %v507_v36 = vadd.f32 %v506_v28, %v505_v18  ;;  %v513_v37 = vrot.slane %v512_v29, 2  ;;  %v748_v27 = vstv %s740_s18  ;;  %v635_v3 = vadd.f32 %v1130_v9, %v1490_v45 }
  0x45   : > { %v494_v48 = vrot.slane %v493_v32, 1  ;;  %v500_v60 = vadd.f32 %v499_v33, %v498_v25  ;;  %v527_v6 = vrot.slane %v526_v42, 2  ;;  %v521_v15 = vadd.f32 %v520_v61, %v519_v34 }
  0x46   : > { %v508_v0 = vrot.slane %v507_v36, 1  ;;  %v514_v5 = vadd.f32 %v513_v37, %v512_v29  ;;  %v743_v29 = vadd.s32 128, %v1481_v40  ;;  %v1135_v30 = vrot.slane %v664_v13, 11 }
  0x47   : > { %v495_v11 = vadd.f32 %v494_v48, %v493_v32  ;;  %v501_v14 = vrot.slane %v500_v60, 1  ;;  %v528_v18 = vadd.f32 %v527_v6, %v526_v42  ;;  %v522_v22 = vrot.slane %v521_v15, 1 }
  0x48   : > { %v509_v16 = vadd.f32 %v508_v0, %v507_v36  ;;  %v515_v17 = vrot.slane %v514_v5, 1  ;;  %v1136_v32 = vrot.slane %v665_v23, 11  ;;  %v751_v39 = vadd.s32 %v748_v27, %v1502_v53 }
  0x49   : > { %v502_v19 = vadd.f32 %v501_v14, %v500_v60  ;;  %1214 = vrcp.f32 %v495_v11  ;;  %v529_v25 = vrot.slane %v528_v18, 1  ;;  %v523_v26 = vadd.f32 %v522_v22, %v521_v15 }
  0x4a   : > { %v516_v24 = vadd.f32 %v515_v17, %v514_v5  ;;  %1216 = vrcp.f32 %v509_v16  ;;  %v752_v43 = vadd.s32 %v748_v27, %v1505_v54  ;;  %v753_v52 = vadd.s32 %v748_v27, %v1519_v7 }
  0x4b   : > { %1218 = vrcp.f32 %v502_v19  ;;  %v530_v28 = vadd.f32 %v529_v25, %v528_v18  ;;  %v1550_v33 = vadd.f32 %v1134_v1, %v633_v51  ;;  %v754_v34 = vadd.s32 %v748_v27, %v747_v31  ;;  %v814_v1 = vld [vmem:[%s1398_s9] sm:$0xf] }
  0x4c   : > { %1220 = vrcp.f32 %v516_v24  ;;  %v1554_v44 = vsub.s32 4, %v1476_v38  ;;  %v749_v45 = vadd.s32 %v748_v27, %v1481_v40  ;;  %v750_v62 = vadd.s32 %v748_v27, %v743_v29 }
  0x4d   : > { %1222 = vrcp.f32 %v523_v26  ;;  %v1557_v35 = vadd.f32 %v1135_v30, %v634_v2  ;;  %v1559_v53 = vadd.f32 %v1136_v32, %v635_v3  ;;  %v818_v54 = vrot.slane %v1434_v21, 4 }
  0x4e   : > { %1224 = vrcp.f32 %v530_v28  ;;  %vm757_vm1 = vcmp.lt.s32.totalorder %v751_v39, 1600  ;;  %vm758_vm2 = vcmp.lt.s32.totalorder %v752_v43, 1600  ;;  %vm759_vm3 = vcmp.lt.s32.totalorder %v753_v52, 1600 }
  0x4f   : > { %1226 = vlog2.f32 %v495_v11  ;;  %v705_v38 = vrot.slane %v1550_v33, %v1493_v49  ;;  %vm760_vm4 = vcmp.lt.s32.totalorder %v754_v34, 1600  ;;  %v819_v40 = vsel %vm416_vm0, %v817_v41, %v818_v54 }
  0x50   : > { %1228 = vlog2.f32 %v502_v19  ;;  %vm755_vm5 = vcmp.lt.s32.totalorder %v749_v45, 1600  ;;  %vm756_vm6 = vcmp.lt.s32.totalorder %v750_v62, 1600  ;;  %v822_v36 = vadd.f32 %v819_v40, %v1424_v10 }
  0x51   : > { %1230 = vlog2.f32 %v509_v16  ;;  %v709_v42 = vrot.slane %v1550_v33, %v1554_v44  ;;  %v1295_v46 = vmov 0.0   ;;  %v823_v6 = vadd.f32 %v818_v54, %v1432_v20 }
  0x52   : > { %1232 = vlog2.f32 %v516_v24  ;;  %v1569_v48 = vsel %vm757_vm1, 1.0, %v1295_v46  ;;  %v1572_v60 = vsel %vm758_vm2, 1.0, %v1295_v46  ;;  %v1575_v61 = vsel %vm759_vm3, 1.0, %v1295_v46 }
  0x53   : > { %v1215_v7 = vpop.eup %1214  ;;  %1234 = vlog2.f32 %v523_v26  ;;  %v1577_v5 = vsel %vm760_vm4, 1.0, %v1295_v46  ;;  %v825_v9 = vrot.slane %v822_v36, 4  ;;  %v713_v15 = vrot.slane %v1557_v35, %v1493_v49 }
  0x54   : > { %v1217_v31 = vpop.eup %1216  ;;  %1236 = vlog2.f32 %v530_v28  ;;  %v1138_v12 = vsel %vm755_vm5, 1.0, %v1295_v46  ;;  %v1139_v16 = vsel %vm756_vm6, 1.0, %v1295_v46  ;;  %v717_v13 = vrot.slane %v1557_v35, %v1554_v44 }
  0x55   : > { %v1219_v37 = vpop.eup %1218  ;;  %v786_v19 = vcombine.low %v1569_v48, %v1572_v60  ;;  %v827_v22 = vadd.f32 %v825_v9, %v822_v36  ;;  %v721_v51 = vrot.slane %v1559_v53, %v1493_v49  ;;  %v787_v26 = vcombine.low %v1575_v61, %v1577_v5 }
  0x56   : > { %v1221_v63 = vpop.eup %1220  ;;  %v543_v0 = vcombine.low %v1215_v7, %v1219_v37  ;;  %v725_v28 = vrot.slane %v1559_v53, %v1554_v44  ;;  %v785_v2 = vcombine.low %v1138_v12, %v1139_v16 }
  0x57   : > { %v1223_v11 = vpop.eup %1222  ;;  %v544_v14 = vcombine.low %v1217_v31, %v1221_v63  ;;  %v828_v29 = vadd.f32 %v827_v22, %v823_v6 }
  0x58   : > { %v1225_v17 = vpop.eup %1224  ;;  %v549_v18 = vmul.f32 %v1495_v50, %v543_v0 }
  0x59   : > { %v1227_v23 = vpop.eup %1226  ;;  %v545_v24 = vcombine.low %v1223_v11, %v1225_v17  ;;  %v550_v25 = vmul.f32 %v1507_v58, %v544_v14  ;;  %v829_v34 = vadd.f32 %v828_v29, %v814_v1  ;;  %v831_v1 = vld [vmem:[%s1403_s19] sm:$0xf] }
  0x5a   : > { %v1229_v27 = vpop.eup %1228  ;;  %v682_v50 = vmul.f32 0.6931472, %v1227_v23  ;;  %v795_v58 = vmul.f32 %v549_v18, %v1424_v10 }
  0x5b   : > { %v1231_v3 = vpop.eup %1230  ;;  %v551_v30 = vmul.f32 %v1521_v8, %v545_v24  ;;  %v684_v32 = vmul.f32 0.6931472, %v1229_v27  ;;  %v796_v39 = vmul.f32 %v550_v25, %v1432_v20  ;;  %v792_v33 = vmul.f32 %v786_v19, %v550_v25  ;;  %830 = vst [vmem:[%s1398_s9] sm:$0xf] %v829_v34  ;;  %v848_v25 = vld [vmem:[%s1388_s25] sm:$0x1] }
  0x5c   : > { %v1233_v49 = vpop.eup %1232  ;;  %v686_v43 = vmul.f32 0.6931472, %v1231_v3  ;;  %v693_v52 = vadd.f32 %v682_v50, %v1440_v47 }
  0x5d   : > { %v1235_v41 = vpop.eup %1234  ;;  %v688_v45 = vmul.f32 0.6931472, %v1233_v49  ;;  %v694_v44 = vadd.f32 %v684_v32, %v1443_v55  ;;  %v793_v62 = vmul.f32 %v787_v26, %v551_v30  ;;  %v797_v35 = vmul.f32 %v551_v30, %v1434_v21 }
  0x5e   : > { %v1237_v8 = vpop.eup %1236  ;;  %v690_v53 = vmul.f32 0.6931472, %v1235_v41  ;;  %v695_v10 = vadd.f32 %v686_v43, %v1445_v56  ;;  %v732_v54 = vsub.f32 %v693_v52, %v705_v38  ;;  %v800_v20 = vrot.slane %v796_v39, 4 }
  0x5f   : > { %v692_v7 = vmul.f32 0.6931472, %v1237_v8  ;;  %v696_v40 = vadd.f32 %v688_v45, %v1447_v57  ;;  %v733_v47 = vsub.f32 %v694_v44, %v709_v42  ;;  %v801_v31 = vrot.slane %v797_v35, 4 }
  0x60   : > { %v697_v36 = vadd.f32 %v690_v53, %v1450_v59  ;;  %v734_v37 = vsub.f32 %v695_v10, %v713_v15  ;;  %v773_v46 = vmul.f32 %v1138_v12, %v732_v54  ;;  %v834_v0 = vrot.slane %v792_v33, 4 }
  0x61   : > { %v698_v55 = vadd.f32 %v692_v7, %v1457_v4  ;;  %v735_v63 = vsub.f32 %v696_v40, %v717_v13  ;;  %v802_v21 = vsel %vm416_vm0, %v800_v20, %v801_v31  ;;  %v774_v56 = vmul.f32 %v1139_v16, %v733_v47 }
  0x62   : > { %v736_v6 = vsub.f32 %v697_v36, %v721_v51  ;;  %v791_v38 = vmul.f32 %v785_v2, %v549_v18  ;;  %v805_v9 = vadd.f32 %v802_v21, %v795_v58  ;;  %v775_v57 = vmul.f32 %v1569_v48, %v734_v37  ;;  %v794_v48 = vld [vmem:[%s1393_s20] sm:$0xf] }
  0x63   : > { %v737_v11 = vsub.f32 %v698_v55, %v725_v28  ;;  %v776_v42 = vmul.f32 %v1572_v60, %v735_v63  ;;  %v835_v14 = vrot.slane %v793_v62, 4  ;;  %v806_v15 = vadd.f32 %v801_v31, %v796_v39 }
  0x64   : > { %v777_v59 = vmul.f32 %v1575_v61, %v736_v6  ;;  %v808_v4 = vrot.slane %v805_v9, 4 }
  0x65   : > { %v778_v12 = vmul.f32 %v1577_v5, %v737_v11  ;;  %v836_v17 = vsel %vm416_vm0, %v834_v0, %v835_v14  ;;  %v849_v16 = vadd.f32 %v776_v42, %v773_v46  ;;  %v840_v23 = vadd.f32 %v835_v14, %v792_v33 }
  0x66   : > { %v810_v18 = vadd.f32 %v808_v4, %v805_v9  ;;  %v839_v13 = vadd.f32 %v836_v17, %v791_v38  ;;  %v850_v19 = vadd.f32 %v777_v59, %v774_v56 }
  0x67   : > { %v851_v60 = vadd.f32 %v778_v12, %v775_v57 }
  0x68   : > { %v811_v22 = vadd.f32 %v810_v18, %v806_v15  ;;  %v842_v24 = vrot.slane %v839_v13, 4  ;;  %v852_v61 = vadd.f32 %v850_v19, %v849_v16 }
  0x6a   : > { %v812_v51 = vadd.f32 %v811_v22, %v794_v48  ;;  %v844_v26 = vadd.f32 %v842_v24, %v839_v13  ;;  %v853_v5 = vadd.f32 %v852_v61, %v851_v60 }
  0x6c   : > { %813 = vst [vmem:[%s1393_s20] sm:$0xf] %v812_v51  ;;  %v845_v27 = vadd.f32 %v844_v26, %v840_v23  ;;  %v854_v50 = vadd.f32 %v853_v5, %v848_v25 }
  0x6e   : > { %v846_v28 = vadd.f32 %v845_v27, %v831_v1  ;;  %855 = vst [vmem:[%s1388_s25] sm:$0x1] %v854_v50 }
  0x70   : > { %847 = vst [vmem:[%s1403_s19] sm:$0xf] %v846_v28 }
  0x71 PF: > { %s16_s24 = sadd.s32 1, %s1292_s24   ;;  %s1652_s20 = sld [smem:[#allocation2_spill]] }
  0x72   : > { %p13_p10 = scmp.ge.s32.totalorder %s16_s24, 10   ;;  %s1653_s23 = sld [smem:[#allocation3_spill]] }
  0x73   : > { %s1654_s26 = sld [smem:[#allocation4_spill]]  ;;  %s1655_s27 = sld [smem:[#allocation5_spill]] }
  0x74   : > { %s1656_s18 = smov %s1280_s21  ;;  %s1657_s19 = smov %s1284_s22 }
  0x75   :  { %15 = sbr.rel (!%p13_p10) target bundleno = 4 (0x4), region = 101 }
  0x78   : > { %s1658_s21 = smov %s1653_s23 }
  0x79   : > { %s1659_s22 = smov %s1654_s26  ;;  %s1660_s23 = smov %s1655_s27 }

// kernel: _lambda_.2
= control target key start
LH: loop header
LB: loop body
LE: loop exit
PB: predicated region body
PF: predicated region fallthrough
CT: control target
= control target key end

     0   :  { %s2076_s18 = smov 0   ;;  %s2078_s19 = smov 0   ;;  %s3186_s0 = inlined_call_operand.vmem [shape: f32[2,4,6400], index: 0, kind: input, shape index: {}]   ;;  %s3187_s1 = inlined_call_operand.vmem [shape: bf16[2,4,6400], index: 1, kind: input, shape index: {}]   ;;  %s3188_s2 = inlined_call_operand.vmem [shape: f32[2,2,4,128], index: 2, kind: output, shape index: {0}]   ;;  %s3189_s3 = inlined_call_operand.vmem [shape: f32[2,2,4,128], index: 3, kind: output, shape index: {1}]   ;;  %s3190_s4 = inlined_call_operand.vmem [shape: f32[2,2,4,128], index: 4, kind: output, shape index: {2}]   ;;  %s3191_s5 = inlined_call_operand.vmem [shape: f32[2,2,1,128], index: 5, kind: output, shape index: {3}]  }
   0x1   :  { %s2080_s20 = smov 0   ;;  %s2082_s21 = smov 0  }
   0x2   :  { %s2084_s22 = smov 0  }
   0x3 LB: > { %s31_s23 = sadd.s32 1, %s2035_s20  ;;  %s35_s24 = sadd.s32 1, %s2039_s21  ;;  %s2043_s22 = sphi %s2084_s22, %s16_s22   ;;  %s2039_s21 = sphi %s2082_s21, %s3550_s21   ;;  %s2035_s20 = sphi %s2080_s20, %s3549_s20   ;;  %s2031_s19 = sphi %s2078_s19, %s3548_s19   ;;  %s2027_s18 = sphi %s2076_s18, %s3547_s18  }
   0x4   : > { %p33_p0 = scmp.ge.s32.totalorder %s31_s23, 2  ;;  %p1813_p1 = scmp.ge.s32.totalorder %s2043_s22, 1 }
   0x5   : > { %p253_p2 = scmp.lt.s32.totalorder %s2043_s22, 5 }
   0x6   : > { %s3552_s23 = smov (%p33_p0, %s31_s23), 0  ;;  %s3554_s24 = smov (!%p33_p0, %s35_s24), %s2039_s21 }
   0x7   : > { %p254_p3 = pnand %p1813_p1, %p253_p2  ;;  %p37_p4 = scmp.ge.s32.totalorder %s3554_s24, 2 }
   0x9   : > { %s3556_s24 = smov (%p37_p4, %s3554_s24), 0  ;;  %257 = sbr.rel (%p254_p3) target bundleno = 277 (0x115), region = 28 }
  0x10   : > { %s323_s25 = smul.u32 25, %s2027_s18  ;;  %p324_p5 = scmp.lt.s32.totalorder %s2031_s19, 1  ;;  %vm454_vm0 = vcmask 1043456   ;;  %v2045_v10 = vmov 0.0  }
  0x11   : > { %p348_p6 = scmp.lt.s32.totalorder %s2027_s18, 1 }
  0x12   : > { %s3558_s19 = smov (!%p324_p5, %s2031_s19), 1  ;;  %p326_p7 = scmp.lt.s32.totalorder %s323_s25, 49 }
  0x13   : > { %s1825_s26 = smul.u32 50, %s3558_s19  ;;  %s3562_s18 = smov (!%p348_p6, %s2027_s18), 1 }
  0x14   : > { %s3560_s25 = smov (!%p326_p7, %s323_s25), 49  ;;  %s1816_s28 = sshll.u32 %s3558_s19, 1 }
  0x15   : > { %s329_s27 = sadd.s32 %s1825_s26, %s3560_s25  ;;  %s351_s12 = sadd.s32 %s1816_s28, %s3562_s18 }
  0x16   : > { %s1814_s29 = sshll.u32 %s329_s27, 2  ;;  %s1815_s30 = sshll.u32 %s329_s27, 1 }
  0x17   : > { %s2109_s8 = scalar_lea.vmem %s3186_s0, %s1814_s29  ;;  %s2114_s11 = scalar_lea.vmem %s3187_s1, %s1815_s30 }
  0x18   : > { %v2117_v0 = vld [vmem:[%s2109_s8] sm:$0xff]  ;;  %v2120_v1 = vld [vmem:[%s2109_s8 + $0x8] sm:$0xff]  ;;  %v2123_v2 = vld [vmem:[%s2109_s8 + $0x10] sm:$0xff]  ;;  %s1817_s13 = sshll.u32 %s351_s12, 2  ;;  %s2128_s16 = scalar_lea.vmem %s3191_s5, %s351_s12 }
  0x19   : > { %v2131_v3 = vld [vmem:[%s2109_s8 + $0x18] sm:$0xff]  ;;  %v2134_v4 = vld [vmem:[%s2109_s8 + $0x20] sm:$0xff]  ;;  %v2137_v5 = vld [vmem:[%s2109_s8 + $0x28] sm:$0xff]  ;;  %v430_v6 = vcombine.high %v2117_v0, %v2117_v0  ;;  %v431_v7 = vcombine.high %v2120_v1, %v2120_v1  ;;  %v432_v8 = vcombine.high %v2123_v2, %v2123_v2  ;;  %v455_v9 = vsel %vm454_vm0, %v2117_v0, -inf  ;;  %s2150_s19 = scalar_lea.vmem %s3188_s2, %s1817_s13  ;;  %s2155_s27 = scalar_lea.vmem %s3189_s3, %s1817_s13  ;;  %384 = vst [vmem:[%s2128_s16] sm:$0x1] %v2045_v10 }
  0x1a   : > { %v2159_v11 = vld [vmem:[%s2109_s8 + $0x30] sm:$0xff]  ;;  %v2162_v12 = vld [vmem:[%s2109_s8 + $0x38] sm:$0xff]  ;;  %v2165_v13 = vld [vmem:[%s2109_s8 + $0x40] sm:$0xff]  ;;  %v433_v14 = vcombine.high %v2131_v3, %v2131_v3  ;;  %v434_v15 = vcombine.high %v2134_v4, %v2134_v4  ;;  %v435_v16 = vcombine.high %v2137_v5, %v2137_v5  ;;  %v456_v17 = vrot.slane %v455_v9, 4  ;;  %s2176_s30 = scalar_lea.vmem %s3190_s4, %s1817_s13  ;;  %381 = vst [vmem:[%s2150_s19] sm:$0xf] %v2045_v10 }
  0x1b   : > { %382 = vst [vmem:[%s2155_s27] sm:$0xf] %v2045_v10  ;;  %v2181_v18 = vld [vmem:[%s2109_s8 + $0x48] sm:$0xff]  ;;  %v2184_v19 = vld [vmem:[%s2109_s8 + $0x50] sm:$0xff]  ;;  %v2187_v20 = vld [vmem:[%s2109_s8 + $0x58] sm:$0xff]  ;;  %v436_v21 = vcombine.high %v2159_v11, %v2159_v11  ;;  %v437_v22 = vcombine.high %v2162_v12, %v2162_v12  ;;  %v438_v23 = vcombine.high %v2165_v13, %v2165_v13  ;;  %v462_v24 = vsel %vm454_vm0, %v430_v6, -inf }
  0x1c   : > { %383 = vst [vmem:[%s2176_s30] sm:$0xf] %v2045_v10  ;;  %v398_v25 = vld [vmem:[%s2114_s11] sm:$0xff]  ;;  %v399_v26 = vld [vmem:[%s2114_s11 + $0x8] sm:$0xff]  ;;  %v439_v27 = vcombine.high %v2181_v18, %v2181_v18  ;;  %v457_v30 = vmax.f32 %v455_v9, %v456_v17  ;;  %v400_v31 = vld [vmem:[%s2114_s11 + $0x10] sm:$0xff]  ;;  %v463_v50 = vrot.slane %v462_v24, 4  ;;  %v469_v51 = vsel %vm454_vm0, %v2120_v1, -inf }
  0x1d   : > { %v401_v32 = vld [vmem:[%s2114_s11 + $0x18] sm:$0xff]  ;;  %v402_v33 = vld [vmem:[%s2114_s11 + $0x20] sm:$0xff]  ;;  %v2208_v34 = vunpack.c.l.bf16 %v398_v25  ;;  %v2210_v35 = vunpack.c.h.bf16 %v398_v25  ;;  %v2212_v36 = vunpack.c.l.bf16 %v399_v26  ;;  %v2214_v37 = vunpack.c.h.bf16 %v399_v26  ;;  %v403_v38 = vld [vmem:[%s2114_s11 + $0x28] sm:$0xff] }
  0x1e   : > { %v404_v39 = vld [vmem:[%s2114_s11 + $0x30] sm:$0x3]  ;;  %v2218_v40 = vunpack.c.l.bf16 %v400_v31  ;;  %v2220_v41 = vunpack.c.h.bf16 %v400_v31  ;;  %v2222_v42 = vunpack.c.l.bf16 %v401_v32  ;;  %v2224_v43 = vunpack.c.h.bf16 %v401_v32 }
  0x1f   : > { %3304 = vst [vmem:[#allocation2_spill] sm:$0xff] %v2208_v34  ;;  %3305 = vst [vmem:[#allocation3_spill] sm:$0xff] %v2210_v35  ;;  %v2226_v44 = vunpack.c.l.bf16 %v402_v33  ;;  %v2228_v45 = vunpack.c.h.bf16 %v402_v33  ;;  %v2230_v46 = vunpack.c.l.bf16 %v403_v38  ;;  %v2232_v47 = vunpack.c.h.bf16 %v403_v38 }
  0x20   : > { %3306 = vst [vmem:[#allocation4_spill] sm:$0xff] %v2212_v36  ;;  %3307 = vst [vmem:[#allocation5_spill] sm:$0xff] %v2214_v37  ;;  %v2234_v48 = vunpack.c.l.bf16 %v404_v39  ;;  %v458_v49 = vrot.slane %v457_v30, 2  ;;  %v470_v52 = vrot.slane %v469_v51, 4  ;;  %v476_v53 = vsel %vm454_vm0, %v431_v7, -inf }
  0x21   : > { %3308 = vst [vmem:[#allocation6_spill] sm:$0xff] %v2218_v40  ;;  %3309 = vst [vmem:[#allocation7_spill] sm:$0xff] %v2220_v41  ;;  %v483_v54 = vsel %vm454_vm0, %v2123_v2, -inf  ;;  %v490_v55 = vsel %vm454_vm0, %v432_v8, -inf  ;;  %v464_v57 = vmax.f32 %v462_v24, %v463_v50  ;;  %v477_v58 = vrot.slane %v476_v53, 4 }
  0x22   : > { %3310 = vst [vmem:[#allocation8_spill] sm:$0xff] %v2222_v42  ;;  %3311 = vst [vmem:[#allocation9_spill] sm:$0xff] %v2224_v43  ;;  %v459_v56 = vmax.f32 %v457_v30, %v458_v49  ;;  %v484_v59 = vrot.slane %v483_v54, 4  ;;  %v471_v60 = vmax.f32 %v469_v51, %v470_v52  ;;  %v491_v61 = vrot.slane %v490_v55, 4 }
  0x23   : > { %3312 = vst [vmem:[#allocation10_spill] sm:$0xff] %v2226_v44  ;;  %3313 = vst [vmem:[#allocation11_spill] sm:$0xff] %v2228_v45  ;;  %v497_v62 = vsel %vm454_vm0, %v2131_v3, -inf  ;;  %v504_v63 = vsel %vm454_vm0, %v433_v14, -inf  ;;  %v465_v9 = vrot.slane %v464_v57, 2  ;;  %v478_v10 = vmax.f32 %v476_v53, %v477_v58 }
  0x24   : > { %3314 = vst [vmem:[#allocation12_spill] sm:$0xff] %v2230_v46  ;;  %3315 = vst [vmem:[#allocation13_spill] sm:$0xff] %v2232_v47  ;;  %v460_v6 = vrot.slane %v459_v56, 1  ;;  %v485_v7 = vmax.f32 %v483_v54, %v484_v59  ;;  %v472_v17 = vrot.slane %v471_v60, 2  ;;  %v492_v25 = vmax.f32 %v490_v55, %v491_v61 }
  0x25   : > { %3316 = vst [vmem:[#allocation14_spill] sm:$0xff] %v2234_v48  ;;  %v498_v26 = vrot.slane %v497_v62, 4  ;;  %v505_v31 = vrot.slane %v504_v63, 4  ;;  %v466_v24 = vmax.f32 %v464_v57, %v465_v9  ;;  %v479_v30 = vrot.slane %v478_v10, 2 }
  0x26   : > { %v2245_v8 = vmax.f32 %v459_v56, %v460_v6  ;;  %v486_v32 = vrot.slane %v485_v7, 2  ;;  %v473_v33 = vmax.f32 %v471_v60, %v472_v17  ;;  %v493_v38 = vrot.slane %v492_v25, 2 }
  0x27   : > { %v499_v39 = vmax.f32 %v497_v62, %v498_v26  ;;  %v506_v49 = vmax.f32 %v504_v63, %v505_v31  ;;  %v467_v50 = vrot.slane %v466_v24, 1  ;;  %v480_v51 = vmax.f32 %v478_v10, %v479_v30 }
  0x28   : > { %3317 = vst [vmem:[#allocation15_spill] sm:$0xff] %v2245_v8  ;;  %v487_v14 = vmax.f32 %v485_v7, %v486_v32  ;;  %v511_v52 = vsel %vm454_vm0, %v2134_v4, -inf  ;;  %v474_v53 = vrot.slane %v473_v33, 1  ;;  %v494_v54 = vmax.f32 %v492_v25, %v493_v38 }
  0x29   : > { %v500_v55 = vrot.slane %v499_v39, 2  ;;  %v507_v58 = vrot.slane %v506_v49, 2  ;;  %v2249_v59 = vmax.f32 %v466_v24, %v467_v50  ;;  %v481_v56 = vrot.slane %v480_v51, 1 }
  0x2a   : > { %v488_v57 = vrot.slane %v487_v14, 1  ;;  %v512_v61 = vrot.slane %v511_v52, 4  ;;  %v2251_v6 = vmax.f32 %v473_v33, %v474_v53  ;;  %v495_v60 = vrot.slane %v494_v54, 1 }
  0x2b   : > { %3318 = vst [vmem:[#allocation16_spill] sm:$0xff] %v2249_v59  ;;  %v501_v62 = vmax.f32 %v499_v39, %v500_v55  ;;  %v508_v63 = vmax.f32 %v506_v49, %v507_v58  ;;  %v2253_v9 = vmax.f32 %v480_v51, %v481_v56  ;;  %v518_v17 = vsel %vm454_vm0, %v434_v15, -inf }
  0x2c   : > { %3319 = vst [vmem:[#allocation17_spill] sm:$0xff] %v2251_v6  ;;  %v2255_v10 = vmax.f32 %v487_v14, %v488_v57  ;;  %v513_v7 = vmax.f32 %v511_v52, %v512_v61  ;;  %v2261_v25 = vmax.f32 %v494_v54, %v495_v60  ;;  %v519_v24 = vrot.slane %v518_v17, 4 }
  0x2d   : > { %3320 = vst [vmem:[#allocation18_spill] sm:$0xff] %v2253_v9  ;;  %v502_v26 = vrot.slane %v501_v62, 1  ;;  %v509_v31 = vrot.slane %v508_v63, 1  ;;  %v525_v32 = vsel %vm454_vm0, %v2137_v5, -inf  ;;  %v532_v33 = vsel %vm454_vm0, %v435_v16, -inf }
  0x2e   : > { %3321 = vst [vmem:[#allocation19_spill] sm:$0xff] %v2255_v10  ;;  %3322 = vst [vmem:[#allocation20_spill] sm:$0xff] %v2261_v25  ;;  %v514_v30 = vrot.slane %v513_v7, 2  ;;  %v539_v38 = vsel %vm454_vm0, %v2159_v11, -inf  ;;  %v520_v49 = vmax.f32 %v518_v17, %v519_v24  ;;  %v526_v50 = vrot.slane %v525_v32, 4 }
  0x2f   : > { %v2271_v39 = vmax.f32 %v501_v62, %v502_v26  ;;  %v2273_v15 = vmax.f32 %v508_v63, %v509_v31  ;;  %v533_v14 = vrot.slane %v532_v33, 4  ;;  %v540_v52 = vrot.slane %v539_v38, 4 }
  0x30   : > { %v515_v51 = vmax.f32 %v513_v7, %v514_v30  ;;  %v546_v53 = vsel %vm454_vm0, %v436_v21, -inf  ;;  %v521_v54 = vrot.slane %v520_v49, 2  ;;  %v527_v55 = vmax.f32 %v525_v32, %v526_v50 }
  0x31   : > { %3323 = vst [vmem:[#allocation21_spill] sm:$0xff] %v2271_v39  ;;  %3324 = vst [vmem:[#allocation22_spill] sm:$0xff] %v2273_v15  ;;  %v547_v16 = vrot.slane %v546_v53, 4  ;;  %v553_v58 = vsel %vm454_vm0, %v2162_v12, -inf  ;;  %v534_v57 = vmax.f32 %v532_v33, %v533_v14  ;;  %v541_v61 = vmax.f32 %v539_v38, %v540_v52 }
  0x32   : > { %v516_v56 = vrot.slane %v515_v51, 1  ;;  %v554_v60 = vrot.slane %v553_v58, 4  ;;  %v522_v62 = vmax.f32 %v520_v49, %v521_v54  ;;  %v528_v63 = vrot.slane %v527_v55, 2 }
  0x33   : > { %v548_v7 = vmax.f32 %v546_v53, %v547_v16  ;;  %v560_v17 = vsel %vm454_vm0, %v437_v22, -inf  ;;  %v535_v21 = vrot.slane %v534_v57, 2  ;;  %v542_v31 = vrot.slane %v541_v61, 2 }
  0x34   : > { %v2285_v26 = vmax.f32 %v515_v51, %v516_v56  ;;  %v555_v24 = vmax.f32 %v553_v58, %v554_v60  ;;  %v523_v30 = vrot.slane %v522_v62, 1  ;;  %v529_v32 = vmax.f32 %v527_v55, %v528_v63 }
  0x35   : > { %v549_v50 = vrot.slane %v548_v7, 2  ;;  %v561_v29 = vrot.slane %v560_v17, 4  ;;  %v536_v33 = vmax.f32 %v534_v57, %v535_v21  ;;  %v543_v38 = vmax.f32 %v541_v61, %v542_v31 }
  0x36   : > { %3325 = vst [vmem:[#allocation23_spill] sm:$0xff] %v2285_v26  ;;  %v556_v14 = vrot.slane %v555_v24, 2  ;;  %v567_v49 = vsel %vm454_vm0, %v2165_v13, -inf  ;;  %v2289_v52 = vmax.f32 %v522_v62, %v523_v30  ;;  %v530_v53 = vrot.slane %v529_v32, 1 }
  0x37   : > { %v550_v54 = vmax.f32 %v548_v7, %v549_v50  ;;  %v562_v22 = vmax.f32 %v560_v17, %v561_v29  ;;  %v537_v51 = vrot.slane %v536_v33, 1  ;;  %v544_v16 = vrot.slane %v543_v38, 1 }
  0x38   : > { %3326 = vst [vmem:[#allocation24_spill] sm:$0xff] %v2289_v52  ;;  %v557_v56 = vmax.f32 %v555_v24, %v556_v14  ;;  %v568_v28 = vrot.slane %v567_v49, 4  ;;  %v2291_v58 = vmax.f32 %v529_v32, %v530_v53  ;;  %v574_v57 = vsel %vm454_vm0, %v438_v23, -inf }
  0x39   : > { %v551_v55 = vrot.slane %v550_v54, 1  ;;  %v563_v60 = vrot.slane %v562_v22, 2  ;;  %v2297_v61 = vmax.f32 %v536_v33, %v537_v51  ;;  %v2299_v62 = vmax.f32 %v543_v38, %v544_v16 }
  0x3a   : > { %3327 = vst [vmem:[#allocation25_spill] sm:$0xff] %v2291_v58  ;;  %v558_v63 = vrot.slane %v557_v56, 1  ;;  %v569_v7 = vmax.f32 %v567_v49, %v568_v28  ;;  %v575_v21 = vrot.slane %v574_v57, 4  ;;  %v581_v31 = vsel %vm454_vm0, %v2181_v18, -inf }
  0x3b   : > { %3328 = vst [vmem:[#allocation26_spill] sm:$0xff] %v2297_v61  ;;  %3329 = vst [vmem:[#allocation27_spill] sm:$0xff] %v2299_v62  ;;  %v2301_v29 = vmax.f32 %v550_v54, %v551_v55  ;;  %v564_v17 = vmax.f32 %v562_v22, %v563_v60  ;;  %v582_v32 = vrot.slane %v581_v31, 4  ;;  %v588_v23 = vsel %vm454_vm0, %v439_v27, -inf }
  0x3c   : > { %v2305_v24 = vmax.f32 %v557_v56, %v558_v63  ;;  %v570_v30 = vrot.slane %v569_v7, 2  ;;  %v576_v33 = vmax.f32 %v574_v57, %v575_v21  ;;  %v589_v28 = vrot.slane %v588_v23, 4  ;;  %v2322_v21 = vld [vmem:[%s2109_s8 + $0x60] sm:$0xf] }
  0x3d   : > { %3330 = vst [vmem:[#allocation28_spill] sm:$0xff] %v2301_v29  ;;  %v565_v50 = vrot.slane %v564_v17, 1  ;;  %v595_v38 = vsel %vm454_vm0, %v2184_v19, -inf  ;;  %v583_v49 = vmax.f32 %v581_v31, %v582_v32  ;;  %v3332_v54 = vcombine.high %v2184_v19, %v2184_v19 }
  0x3e   : > { %3331 = vst [vmem:[#allocation29_spill] sm:$0xff] %v2305_v24  ;;  %v571_v14 = vmax.f32 %v569_v7, %v570_v30  ;;  %v596_v53 = vrot.slane %v595_v38, 4  ;;  %v577_v16 = vrot.slane %v576_v33, 2  ;;  %v590_v56 = vmax.f32 %v588_v23, %v589_v28 }
  0x3f   : > { %v602_v22 = vsel %vm454_vm0, %v3332_v54, -inf  ;;  %v2317_v51 = vmax.f32 %v564_v17, %v565_v50  ;;  %v584_v60 = vrot.slane %v583_v49, 2  ;;  %v609_v63 = vsel %vm454_vm0, %v2187_v20, -inf }
  0x40   : > { %v603_v27 = vrot.slane %v602_v22, 4  ;;  %v572_v55 = vrot.slane %v571_v14, 1  ;;  %v597_v57 = vmax.f32 %v595_v38, %v596_v53  ;;  %v578_v7 = vmax.f32 %v576_v33, %v577_v16 }
  0x41   : > { %3333 = vst [vmem:[#allocation30_spill] sm:$0xff] %v2317_v51  ;;  %v591_v31 = vrot.slane %v590_v56, 2  ;;  %v610_v32 = vrot.slane %v609_v63, 4  ;;  %v585_v54 = vmax.f32 %v583_v49, %v584_v60  ;;  %v3335_v23 = vcombine.high %v2187_v20, %v2187_v20 }
  0x42   : > { %v604_v30 = vmax.f32 %v602_v22, %v603_v27  ;;  %v2324_v48 = vmax.f32 %v571_v14, %v572_v55  ;;  %v598_v17 = vrot.slane %v597_v57, 2  ;;  %v579_v28 = vrot.slane %v578_v7, 1 }
  0x43   : > { %v616_v50 = vsel %vm454_vm0, %v3335_v23, -inf  ;;  %v592_v38 = vmax.f32 %v590_v56, %v591_v31  ;;  %v611_v47 = vmax.f32 %v609_v63, %v610_v32  ;;  %v586_v46 = vrot.slane %v585_v54, 1 }
  0x44   : > { %3334 = vst [vmem:[#allocation31_spill] sm:$0xff] %v2324_v48  ;;  %v605_v53 = vrot.slane %v604_v30, 2  ;;  %v599_v45 = vmax.f32 %v597_v57, %v598_v17  ;;  %v617_v44 = vrot.slane %v616_v50, 4  ;;  %v623_v33 = vsel %vm454_vm0, %v2322_v21, -inf }
  0x45   : > { %v2332_v22 = vmax.f32 %v578_v7, %v579_v28  ;;  %v593_v14 = vrot.slane %v592_v38, 1  ;;  %v612_v16 = vrot.slane %v611_v47, 2  ;;  %v2334_v27 = vmax.f32 %v585_v54, %v586_v46 }
  0x46   : > { %v606_v49 = vmax.f32 %v604_v30, %v605_v53  ;;  %v600_v55 = vrot.slane %v599_v45, 1  ;;  %v618_v60 = vmax.f32 %v616_v50, %v617_v44  ;;  %v624_v23 = vrot.slane %v623_v33, 4 }
  0x47   : > { %3336 = vst [vmem:[#allocation32_spill] sm:$0xff] %v2332_v22  ;;  %3337 = vst [vmem:[#allocation33_spill] sm:$0xff] %v2334_v27  ;;  %v2336_v43 = vmax.f32 %v592_v38, %v593_v14  ;;  %v613_v63 = vmax.f32 %v611_v47, %v612_v16  ;;  %v654_v57 = vcombine.low %v2245_v8, %v2249_v59 }
  0x48   : > { %v607_v56 = vrot.slane %v606_v49, 1  ;;  %v2340_v31 = vmax.f32 %v599_v45, %v600_v55  ;;  %v619_v32 = vrot.slane %v618_v60, 2  ;;  %v625_v7 = vmax.f32 %v623_v33, %v624_v23 }
  0x49   : > { %3338 = vst [vmem:[#allocation34_spill] sm:$0xff] %v2336_v43  ;;  %v655_v30 = vcombine.low %v2251_v6, %v2253_v9  ;;  %v614_v46 = vrot.slane %v613_v63, 1  ;;  %v656_v44 = vcombine.low %v2255_v10, %v2261_v25  ;;  %v657_v54 = vcombine.low %v2271_v39, %v2273_v15 }
  0x4a   : > { %3339 = vst [vmem:[#allocation35_spill] sm:$0xff] %v2340_v31  ;;  %v2344_v17 = vmax.f32 %v606_v49, %v607_v56  ;;  %v620_v47 = vmax.f32 %v618_v60, %v619_v32  ;;  %v626_v50 = vrot.slane %v625_v7, 2  ;;  %v658_v45 = vcombine.low %v2285_v26, %v2289_v52 }
  0x4b   : > { %v659_v28 = vcombine.low %v2291_v58, %v2297_v61  ;;  %v2354_v38 = vmax.f32 %v613_v63, %v614_v46  ;;  %v660_v53 = vcombine.low %v2299_v62, %v2301_v29  ;;  %v661_v33 = vcombine.low %v2305_v24, %v2317_v51 }
  0x4c   : > { %3340 = vst [vmem:[#allocation36_spill] sm:$0xff] %v2344_v17  ;;  %v662_v14 = vcombine.low %v2324_v48, %v2332_v22  ;;  %v621_v49 = vrot.slane %v620_v47, 1  ;;  %v627_v16 = vmax.f32 %v625_v7, %v626_v50  ;;  %v663_v55 = vcombine.low %v2334_v27, %v2336_v43 }
  0x4d   : > { %3341 = vst [vmem:[#allocation37_spill] sm:$0xff] %v2354_v38  ;;  %v664_v60 = vcombine.low %v2340_v31, %v2344_v17  ;;  %v678_v23 = vsub.f32 %v2117_v0, %v654_v57  ;;  %v679_v56 = vsub.f32 %v2120_v1, %v655_v30  ;;  %v680_v63 = vsub.f32 %v2123_v2, %v656_v44 }
  0x4e   : > { %v681_v32 = vsub.f32 %v2131_v3, %v657_v54  ;;  %v2370_v46 = vmax.f32 %v620_v47, %v621_v49  ;;  %v628_v51 = vrot.slane %v627_v16, 1  ;;  %v682_v22 = vsub.f32 %v2134_v4, %v658_v45 }
  0x4f   : > { %v683_v7 = vsub.f32 %v2137_v5, %v659_v28  ;;  %v684_v50 = vsub.f32 %v2159_v11, %v660_v53  ;;  %v685_v43 = vsub.f32 %v2162_v12, %v661_v33  ;;  %v686_v17 = vsub.f32 %v2165_v13, %v662_v14 }
  0x50   : > { %3342 = vst [vmem:[#allocation38_spill] sm:$0xff] %v2370_v46  ;;  %v687_v57 = vsub.f32 %v2181_v18, %v663_v55  ;;  %v2378_v30 = vmax.f32 %v627_v16, %v628_v51  ;;  %v665_v44 = vcombine.low %v2354_v38, %v2370_v46  ;;  %v688_v54 = vsub.f32 %v2184_v19, %v664_v60 }
  0x51   : > { %v691_v47 = vmul.f32 1.442695, %v678_v23  ;;  %v693_v49 = vmul.f32 1.442695, %v679_v56  ;;  %v695_v45 = vmul.f32 1.442695, %v680_v63  ;;  %v2385_v28 = vmul.f32 %v2208_v34, %v2117_v0 }
  0x52   : > { %3343 = vst [vmem:[#allocation39_spill] sm:$0xff] %v2378_v30  ;;  %v697_v31 = vmul.f32 1.442695, %v681_v32  ;;  %v689_v53 = vsub.f32 %v2187_v20, %v665_v44  ;;  %v690_v33 = vsub.f32 %v2322_v21, %v2378_v30  ;;  %v699_v51 = vmul.f32 1.442695, %v682_v22 }
  0x53   : > { %1879 = vpow2.f32 %v691_v47  ;;  %v701_v14 = vmul.f32 1.442695, %v683_v7  ;;  %v703_v16 = vmul.f32 1.442695, %v684_v50  ;;  %v705_v55 = vmul.f32 1.442695, %v685_v43 }
  0x54   : > { %1881 = vpow2.f32 %v693_v49  ;;  %v707_v60 = vmul.f32 1.442695, %v686_v17  ;;  %v709_v23 = vmul.f32 1.442695, %v687_v57  ;;  %v711_v56 = vmul.f32 1.442695, %v688_v54 }
  0x55   : > { %1883 = vpow2.f32 %v695_v45  ;;  %v713_v63 = vmul.f32 1.442695, %v689_v53  ;;  %v715_v32 = vmul.f32 1.442695, %v690_v33  ;;  %v2392_v0 = vmul.f32 %v2210_v35, %v2120_v1 }
  0x56   : > { %1885 = vpow2.f32 %v697_v31  ;;  %v2396_v44 = vmul.f32 %v2212_v36, %v2123_v2  ;;  %v2400_v22 = vmul.f32 %v2214_v37, %v2131_v3  ;;  %v2404_v43 = vmul.f32 %v2218_v40, %v2134_v4  ;;  %v3344_v2 = vld [vmem:[#allocation9_spill] sm:$0xff]  ;;  %v3346_v3 = vld [vmem:[#allocation10_spill] sm:$0xff]  ;;  %v3348_v4 = vld [vmem:[#allocation11_spill] sm:$0xff] }
  0x57   : > { %1887 = vpow2.f32 %v699_v51  ;;  %v2408_v31 = vmul.f32 %v2220_v41, %v2137_v5  ;;  %v2412_v1 = vmul.f32 %v2222_v42, %v2159_v11  ;;  %v2416_v17 = vmul.f32 %v3344_v2, %v2162_v12  ;;  %v3350_v5 = vld [vmem:[#allocation12_spill] sm:$0xff]  ;;  %v3352_v11 = vld [vmem:[#allocation13_spill] sm:$0xff]  ;;  %v3353_v12 = vld [vmem:[#allocation14_spill] sm:$0xff] }
  0x58   : > { %1889 = vpow2.f32 %v701_v14  ;;  %v2420_v7 = vmul.f32 %v3346_v3, %v2165_v13  ;;  %v2424_v50 = vmul.f32 %v3348_v4, %v2181_v18  ;;  %v2428_v57 = vmul.f32 %v3350_v5, %v2184_v19 }
  0x59   : > { %3345 = vst [vmem:[#allocation40_spill] sm:$0xff] %v2416_v17  ;;  %1891 = vpow2.f32 %v703_v16  ;;  %v2432_v54 = vmul.f32 %v3352_v11, %v2187_v20  ;;  %v2436_v47 = vmul.f32 %v3353_v12, %v2322_v21 }
  0x5a   : > { %3347 = vst [vmem:[#allocation41_spill] sm:$0xff] %v2420_v7  ;;  %3349 = vst [vmem:[#allocation42_spill] sm:$0xff] %v2424_v50  ;;  %1893 = vpow2.f32 %v705_v55 }
  0x5b   : > { %3351 = vst [vmem:[#allocation43_spill] sm:$0xff] %v2428_v57  ;;  %3354 = vst [vmem:[#allocation44_spill] sm:$0xff] %v2436_v47  ;;  %1895 = vpow2.f32 %v707_v60 }
  0x5c   : > { %1897 = vpow2.f32 %v709_v23 }
  0x5d   : > { %v2452_v53 = vpop.eup %1879  ;;  %1899 = vpow2.f32 %v711_v56 }
  0x5e   : > { %v2460_v16 = vpop.eup %1881  ;;  %1901 = vpow2.f32 %v713_v63  ;;  %v729_v55 = vcombine.high %v2452_v53, %v2452_v53  ;;  %v753_v60 = vsel %vm454_vm0, %v2452_v53, 0.0 }
  0x5f   : > { %v2468_v56 = vpop.eup %1883  ;;  %1903 = vpow2.f32 %v715_v32  ;;  %v730_v51 = vcombine.high %v2460_v16, %v2460_v16  ;;  %v754_v33 = vrot.slane %v753_v60, 4  ;;  %v767_v14 = vsel %vm454_vm0, %v2460_v16, 0.0 }
  0x60   : > { %v2474_v63 = vpop.eup %1885  ;;  %v731_v45 = vcombine.high %v2468_v56, %v2468_v56  ;;  %v760_v21 = vsel %vm454_vm0, %v729_v55, 0.0  ;;  %v768_v20 = vrot.slane %v767_v14, 4  ;;  %v781_v23 = vsel %vm454_vm0, %v2468_v56, 0.0 }
  0x61   : > { %v2481_v49 = vpop.eup %1887  ;;  %v732_v32 = vcombine.high %v2474_v63, %v2474_v63  ;;  %v755_v19 = vadd.f32 %v754_v33, %v753_v60  ;;  %v761_v18 = vrot.slane %v760_v21, 4  ;;  %v774_v13 = vsel %vm454_vm0, %v730_v51, 0.0 }
  0x62   : > { %v2486_v30 = vpop.eup %1889  ;;  %v733_v46 = vcombine.high %v2481_v49, %v2481_v49  ;;  %v769_v38 = vadd.f32 %v768_v20, %v767_v14  ;;  %v775_v55 = vrot.slane %v774_v13, 4  ;;  %v782_v27 = vrot.slane %v781_v23, 4 }
  0x63   : > { %v2490_v48 = vpop.eup %1891  ;;  %v734_v24 = vcombine.high %v2486_v30, %v2486_v30  ;;  %v756_v29 = vrot.slane %v755_v19, 2  ;;  %v762_v62 = vadd.f32 %v761_v18, %v760_v21  ;;  %v788_v33 = vsel %vm454_vm0, %v731_v45, 0.0 }
  0x64   : > { %v2495_v60 = vpop.eup %1893  ;;  %v770_v61 = vrot.slane %v769_v38, 2  ;;  %v776_v58 = vadd.f32 %v775_v55, %v774_v13  ;;  %v783_v52 = vadd.f32 %v782_v27, %v781_v23  ;;  %v789_v39 = vrot.slane %v788_v33, 4 }
  0x65   : > { %v2499_v20 = vpop.eup %1895  ;;  %v757_v26 = vadd.f32 %v756_v29, %v755_v19  ;;  %v763_v15 = vrot.slane %v762_v62, 2  ;;  %v816_v11 = vsel %vm454_vm0, %v733_v46, 0.0 }
  0x66   : > { %v2503_v25 = vpop.eup %1897  ;;  %v771_v21 = vadd.f32 %v770_v61, %v769_v38  ;;  %v777_v45 = vrot.slane %v776_v58, 2  ;;  %v784_v10 = vrot.slane %v783_v52, 2  ;;  %v790_v55 = vadd.f32 %v789_v39, %v788_v33 }
  0x67   : > { %v2507_v51 = vpop.eup %1899  ;;  %v758_v13 = vrot.slane %v757_v26, 1  ;;  %v764_v23 = vadd.f32 %v763_v15, %v762_v62  ;;  %v795_v62 = vsel %vm454_vm0, %v2474_v63, 0.0 }
  0x68   : > { %v2511_v14 = vpop.eup %1901  ;;  %v772_v19 = vrot.slane %v771_v21, 1  ;;  %v778_v9 = vadd.f32 %v777_v45, %v776_v58  ;;  %v785_v6 = vadd.f32 %v784_v10, %v783_v52  ;;  %v791_v27 = vrot.slane %v790_v55, 2 }
  0x69   : > { %v2515_v18 = vpop.eup %1903  ;;  %v2519_v38 = vadd.f32 %v758_v13, %v757_v26  ;;  %v765_v59 = vrot.slane %v764_v23, 1  ;;  %v796_v10 = vrot.slane %v795_v62, 4  ;;  %v802_v52 = vsel %vm454_vm0, %v732_v32, 0.0 }
  0x6a   : > { %v2521_v12 = vadd.f32 %v772_v19, %v771_v21  ;;  %v779_v39 = vrot.slane %v778_v9, 1  ;;  %v786_v15 = vrot.slane %v785_v6, 1  ;;  %v792_v58 = vadd.f32 %v791_v27, %v790_v55 }
  0x6b   : > { %v2525_v33 = vadd.f32 %v765_v59, %v764_v23  ;;  %v803_v26 = vrot.slane %v802_v52, 4  ;;  %v809_v21 = vsel %vm454_vm0, %v2481_v49, 0.0  ;;  %v797_v19 = vadd.f32 %v796_v10, %v795_v62 }
  0x6c   : > { %v2528_v45 = vadd.f32 %v779_v39, %v778_v9  ;;  %v2530_v61 = vadd.f32 %v786_v15, %v785_v6  ;;  %v793_v13 = vrot.slane %v792_v58, 1  ;;  %v810_v29 = vrot.slane %v809_v21, 4 }
  0x6d   : > { %v804_v5 = vadd.f32 %v803_v26, %v802_v52  ;;  %v817_v59 = vrot.slane %v816_v11, 4  ;;  %v823_v27 = vsel %vm454_vm0, %v2486_v30, 0.0  ;;  %v830_v32 = vsel %vm454_vm0, %v734_v24, 0.0 }
  0x6e   : > { %v2538_v9 = vadd.f32 %v793_v13, %v792_v58  ;;  %v798_v6 = vrot.slane %v797_v19, 2  ;;  %v811_v23 = vadd.f32 %v810_v29, %v809_v21  ;;  %v824_v55 = vrot.slane %v823_v27, 4 }
  0x6f   : > { %v805_v39 = vrot.slane %v804_v5, 2  ;;  %v818_v15 = vadd.f32 %v817_v59, %v816_v11  ;;  %v831_v4 = vrot.slane %v830_v32, 4  ;;  %v837_v62 = vsel %vm454_vm0, %v2490_v48, 0.0 }
  0x70   : > { %v799_v10 = vadd.f32 %v798_v6, %v797_v19  ;;  %v812_v46 = vrot.slane %v811_v23, 2  ;;  %v825_v52 = vadd.f32 %v824_v55, %v823_v27  ;;  %v838_v26 = vrot.slane %v837_v62, 4 }
  0x71   : > { %v806_v8 = vadd.f32 %v805_v39, %v804_v5  ;;  %v819_v3 = vrot.slane %v818_v15, 2  ;;  %v832_v2 = vadd.f32 %v831_v4, %v830_v32  ;;  %v3355_v24 = vcombine.high %v2490_v48, %v2490_v48 }
  0x72   : > { %v800_v29 = vrot.slane %v799_v10, 1  ;;  %v813_v21 = vadd.f32 %v812_v46, %v811_v23  ;;  %v826_v13 = vrot.slane %v825_v52, 2  ;;  %v839_v11 = vadd.f32 %v838_v26, %v837_v62 }
  0x73   : > { %v844_v58 = vsel %vm454_vm0, %v3355_v24, 0.0  ;;  %v807_v59 = vrot.slane %v806_v8, 1  ;;  %v820_v42 = vadd.f32 %v819_v3, %v818_v15  ;;  %v833_v41 = vrot.slane %v832_v2, 2 }
  0x74   : > { %v845_v40 = vrot.slane %v844_v58, 4  ;;  %v2546_v19 = vadd.f32 %v800_v29, %v799_v10  ;;  %v814_v27 = vrot.slane %v813_v21, 1  ;;  %v827_v6 = vadd.f32 %v826_v13, %v825_v52 }
  0x75   : > { %v840_v5 = vrot.slane %v839_v11, 2  ;;  %v2548_v55 = vadd.f32 %v807_v59, %v806_v8  ;;  %v821_v4 = vrot.slane %v820_v42, 1  ;;  %v834_v32 = vadd.f32 %v833_v41, %v832_v2 }
  0x76   : > { %v846_v39 = vadd.f32 %v845_v40, %v844_v58  ;;  %v2550_v37 = vadd.f32 %v814_v27, %v813_v21  ;;  %v828_v24 = vrot.slane %v827_v6, 1  ;;  %v851_v62 = vsel %vm454_vm0, %v2495_v60, 0.0 }
  0x77   : > { %v841_v23 = vadd.f32 %v840_v5, %v839_v11  ;;  %v2554_v3 = vadd.f32 %v821_v4, %v820_v42  ;;  %v835_v15 = vrot.slane %v834_v32, 1  ;;  %v852_v46 = vrot.slane %v851_v62, 4 }
  0x78   : > { %v847_v10 = vrot.slane %v846_v39, 2  ;;  %v2556_v26 = vadd.f32 %v828_v24, %v827_v6  ;;  %v3357_v8 = vcombine.high %v2495_v60, %v2495_v60  ;;  %v865_v41 = vsel %vm454_vm0, %v2499_v20, 0.0 }
  0x79   : > { %v842_v52 = vrot.slane %v841_v23, 1  ;;  %v2564_v2 = vadd.f32 %v835_v15, %v834_v32  ;;  %v853_v29 = vadd.f32 %v852_v46, %v851_v62  ;;  %v866_v13 = vrot.slane %v865_v41, 4 }
  0x7a   : > { %3356 = vst [vmem:[#allocation45_spill] sm:$0xff] %v2556_v26  ;;  %v858_v40 = vsel %vm454_vm0, %v3357_v8, 0.0  ;;  %v848_v58 = vadd.f32 %v847_v10, %v846_v39  ;;  %v3359_v11 = vcombine.high %v2499_v20, %v2499_v20  ;;  %v879_v27 = vsel %vm454_vm0, %v2503_v25, 0.0 }
  0x7b   : > { %3358 = vst [vmem:[#allocation46_spill] sm:$0xff] %v2564_v2  ;;  %v859_v42 = vrot.slane %v858_v40, 4  ;;  %v2566_v21 = vadd.f32 %v842_v52, %v841_v23  ;;  %v854_v5 = vrot.slane %v853_v29, 2  ;;  %v867_v32 = vadd.f32 %v866_v13, %v865_v41 }
  0x7c   : > { %v872_v59 = vsel %vm454_vm0, %v3359_v11, 0.0  ;;  %v849_v6 = vrot.slane %v848_v58, 1  ;;  %v880_v15 = vrot.slane %v879_v27, 4  ;;  %v3360_v39 = vcombine.high %v2503_v25, %v2503_v25 }
  0x7d   : > { %v860_v4 = vadd.f32 %v859_v42, %v858_v40  ;;  %v873_v24 = vrot.slane %v872_v59, 4  ;;  %v893_v62 = vsel %vm454_vm0, %v2507_v51, 0.0  ;;  %v855_v46 = vadd.f32 %v854_v5, %v853_v29 }
  0x7e   : > { %v886_v23 = vsel %vm454_vm0, %v3360_v39, 0.0  ;;  %v2580_v10 = vadd.f32 %v849_v6, %v848_v58  ;;  %v868_v11 = vrot.slane %v867_v32, 2  ;;  %v881_v36 = vadd.f32 %v880_v15, %v879_v27 }
  0x7f   : > { %v861_v52 = vrot.slane %v860_v4, 2  ;;  %v874_v8 = vadd.f32 %v873_v24, %v872_v59  ;;  %v887_v35 = vrot.slane %v886_v23, 4  ;;  %v894_v40 = vrot.slane %v893_v62, 4 }
  0x80   : > { %v856_v42 = vrot.slane %v855_v46, 1  ;;  %v3361_v34 = vcombine.high %v2507_v51, %v2507_v51  ;;  %v869_v47 = vadd.f32 %v868_v11, %v867_v32  ;;  %v882_v57 = vrot.slane %v881_v36, 2 }
  0x81   : > { %v862_v41 = vadd.f32 %v861_v52, %v860_v4  ;;  %v875_v13 = vrot.slane %v874_v8, 2  ;;  %v888_v50 = vadd.f32 %v887_v35, %v886_v23  ;;  %v895_v58 = vadd.f32 %v894_v40, %v893_v62 }
  0x82   : > { %v900_v39 = vsel %vm454_vm0, %v3361_v34, 0.0  ;;  %v2586_v6 = vadd.f32 %v856_v42, %v855_v46  ;;  %v870_v27 = vrot.slane %v869_v47, 1  ;;  %v883_v24 = vadd.f32 %v882_v57, %v881_v36 }
  0x83   : > { %v863_v29 = vrot.slane %v862_v41, 1  ;;  %v876_v59 = vadd.f32 %v875_v13, %v874_v8  ;;  %v901_v5 = vrot.slane %v900_v39, 4  ;;  %v889_v15 = vrot.slane %v888_v50, 2 }
  0x84   : > { %3362 = vst [vmem:[#allocation47_spill] sm:$0xff] %v2586_v6  ;;  %v896_v7 = vrot.slane %v895_v58, 2  ;;  %v907_v34 = vsel %vm454_vm0, %v2511_v14, 0.0  ;;  %v2592_v32 = vadd.f32 %v870_v27, %v869_v47  ;;  %v884_v35 = vrot.slane %v883_v24, 1 }
  0x85   : > { %v2588_v4 = vadd.f32 %v863_v29, %v862_v41  ;;  %v877_v52 = vrot.slane %v876_v59, 1  ;;  %v902_v17 = vadd.f32 %v901_v5, %v900_v39  ;;  %v890_v23 = vadd.f32 %v889_v15, %v888_v50 }
  0x86   : > { %v897_v62 = vadd.f32 %v896_v7, %v895_v58  ;;  %v908_v11 = vrot.slane %v907_v34, 4  ;;  %v3363_v36 = vcombine.high %v2511_v14, %v2511_v14  ;;  %v2600_v40 = vadd.f32 %v884_v35, %v883_v24 }
  0x87   : > { %v2594_v46 = vadd.f32 %v877_v52, %v876_v59  ;;  %v903_v8 = vrot.slane %v902_v17, 2  ;;  %v891_v42 = vrot.slane %v890_v23, 1  ;;  %v921_v50 = vsel %vm454_vm0, %v2515_v18, 0.0 }
  0x88   : > { %v914_v57 = vsel %vm454_vm0, %v3363_v36, 0.0  ;;  %3364 = vst [vmem:[#allocation48_spill] sm:$0xff] %v2600_v40  ;;  %v898_v41 = vrot.slane %v897_v62, 1  ;;  %v909_v47 = vadd.f32 %v908_v11, %v907_v34  ;;  %1905 = vrcp.f32 %v2519_v38 }
  0x89   : > { %v915_v13 = vrot.slane %v914_v57, 4  ;;  %v904_v39 = vadd.f32 %v903_v8, %v902_v17  ;;  %v2605_v7 = vadd.f32 %v891_v42, %v890_v23  ;;  %v922_v59 = vrot.slane %v921_v50, 4 }
  0x8a   : > { %v2607_v58 = vadd.f32 %v898_v41, %v897_v62  ;;  %v910_v27 = vrot.slane %v909_v47, 2  ;;  %1907 = vrcp.f32 %v2525_v33  ;;  %v1063_v52 = vsel %vm454_vm0, %v2385_v28, 0.0 }
  0x8b   : > { %3365 = vst [vmem:[#allocation49_spill] sm:$0xff] %v2605_v7  ;;  %v916_v29 = vadd.f32 %v915_v13, %v914_v57  ;;  %v905_v5 = vrot.slane %v904_v39, 1  ;;  %v923_v15 = vadd.f32 %v922_v59, %v921_v50  ;;  %1909 = vrcp.f32 %v2521_v12 }
  0x8c   : > { %3366 = vst [vmem:[#allocation50_spill] sm:$0xff] %v2607_v58  ;;  %v911_v35 = vadd.f32 %v910_v27, %v909_v47  ;;  %1911 = vrcp.f32 %v2528_v45  ;;  %v1064_v23 = vrot.slane %v1063_v52, 4  ;;  %v3368_v11 = vcombine.high %v2385_v28, %v2385_v28 }
  0x8d   : > { %v917_v17 = vrot.slane %v916_v29, 2  ;;  %v2615_v34 = vadd.f32 %v905_v5, %v904_v39  ;;  %v924_v8 = vrot.slane %v923_v15, 2  ;;  %1913 = vrcp.f32 %v2530_v61 }
  0x8e   : > { %v1070_v36 = vsel %vm454_vm0, %v3368_v11, 0.0  ;;  %v912_v57 = vrot.slane %v911_v35, 1  ;;  %1915 = vrcp.f32 %v2538_v9  ;;  %v1065_v42 = vadd.f32 %v1064_v23, %v1063_v52 }
  0x8f   : > { %3367 = vst [vmem:[#allocation51_spill] sm:$0xff] %v2615_v34  ;;  %v918_v62 = vadd.f32 %v917_v17, %v916_v29  ;;  %v1071_v41 = vrot.slane %v1070_v36, 4  ;;  %v925_v39 = vadd.f32 %v924_v8, %v923_v15  ;;  %1917 = vrcp.f32 %v2546_v19 }
  0x90   : > { %v1077_v47 = vsel %vm454_vm0, %v2392_v0, 0.0  ;;  %v2627_v50 = vadd.f32 %v912_v57, %v911_v35  ;;  %1919 = vrcp.f32 %v2548_v55  ;;  %v1066_v29 = vrot.slane %v1065_v42, 2 }
  0x91   : > { %v919_v13 = vrot.slane %v918_v62, 1  ;;  %v1072_v28 = vadd.f32 %v1071_v41, %v1070_v36  ;;  %v926_v5 = vrot.slane %v925_v39, 1  ;;  %1921 = vrcp.f32 %v2550_v37 }
  0x92   : > { %3369 = vst [vmem:[#allocation52_spill] sm:$0xff] %v2627_v50  ;;  %v1078_v27 = vrot.slane %v1077_v47, 4  ;;  %v1906_v17 = vpop.eup %1905  ;;  %1923 = vrcp.f32 %v2554_v3  ;;  %v1067_v15 = vadd.f32 %v1066_v29, %v1065_v42  ;;  %v3371_v23 = vcombine.high %v2392_v0, %v2392_v0 }
  0x93   : > { %v2630_v59 = vadd.f32 %v919_v13, %v918_v62  ;;  %v1073_v52 = vrot.slane %v1072_v28, 2  ;;  %v2638_v8 = vadd.f32 %v926_v5, %v925_v39  ;;  %1925 = vrcp.f32 %v2556_v26 }
  0x94   : > { %v1084_v35 = vsel %vm454_vm0, %v3371_v23, 0.0  ;;  %v1079_v62 = vadd.f32 %v1078_v27, %v1077_v47  ;;  %v1908_v36 = vpop.eup %1907  ;;  %1927 = vrcp.f32 %v2564_v2  ;;  %v1068_v57 = vrot.slane %v1067_v15, 1 }
  0x95   : > { %3370 = vst [vmem:[#allocation53_spill] sm:$0xff] %v2630_v59  ;;  %3372 = vst [vmem:[#allocation54_spill] sm:$0xff] %v2638_v8  ;;  %v1085_v11 = vrot.slane %v1084_v35, 4  ;;  %v1074_v41 = vadd.f32 %v1073_v52, %v1072_v28  ;;  %v1091_v42 = vsel %vm454_vm0, %v2396_v44, 0.0  ;;  %v1910_v13 = vpop.eup %1909  ;;  %1929 = vrcp.f32 %v2566_v21 }
  0x96   : > { %v977_v0 = vcombine.low %v1906_v17, %v1908_v36  ;;  %v1080_v29 = vrot.slane %v1079_v62, 2  ;;  %v1912_v39 = vpop.eup %1911  ;;  %1931 = vrcp.f32 %v2580_v10  ;;  %v2646_v5 = vadd.f32 %v1068_v57, %v1067_v15 }
  0x97   : > { %v1086_v23 = vadd.f32 %v1085_v11, %v1084_v35  ;;  %v1075_v47 = vrot.slane %v1074_v41, 1  ;;  %v1092_v27 = vrot.slane %v1091_v42, 4  ;;  %v1914_v24 = vpop.eup %1913  ;;  %1933 = vrcp.f32 %v2586_v6 }
  0x98   : > { %3373 = vst [vmem:[#allocation55_spill] sm:$0xff] %v2646_v5  ;;  %v978_v28 = vcombine.low %v1910_v13, %v1912_v39  ;;  %v2650_v52 = vmul.f32 %v2452_v53, %v977_v0  ;;  %v1081_v2 = vadd.f32 %v1080_v29, %v1079_v62  ;;  %v1916_v26 = vpop.eup %1915  ;;  %1935 = vrcp.f32 %v2588_v4 }
  0x99   : > { %v2653_v17 = vadd.f32 %v1075_v47, %v1074_v41  ;;  %v1087_v35 = vrot.slane %v1086_v23, 2  ;;  %v1093_v11 = vadd.f32 %v1092_v27, %v1091_v42  ;;  %v1918_v36 = vpop.eup %1917  ;;  %1937 = vrcp.f32 %v2592_v32 }
  0x9a   : > { %v979_v15 = vcombine.low %v1914_v24, %v1916_v26  ;;  %v2657_v57 = vmul.f32 %v2460_v16, %v978_v28  ;;  %v1082_v6 = vrot.slane %v1081_v2, 1  ;;  %v1920_v13 = vpop.eup %1919  ;;  %1939 = vrcp.f32 %v2594_v46 }
  0x9b   : > { %v1088_v53 = vadd.f32 %v1087_v35, %v1086_v23  ;;  %v1094_v62 = vrot.slane %v1093_v11, 2  ;;  %v3374_v0 = vcombine.high %v2396_v44, %v2396_v44  ;;  %v1922_v29 = vpop.eup %1921  ;;  %1941 = vrcp.f32 %v2600_v40 }
  0x9c   : > { %v980_v42 = vcombine.low %v1918_v36, %v1920_v13  ;;  %v2666_v26 = vmul.f32 %v2468_v56, %v979_v15  ;;  %v2668_v16 = vadd.f32 %v1082_v6, %v1081_v2  ;;  %v1924_v24 = vpop.eup %1923  ;;  %1943 = vrcp.f32 %v2605_v7 }
  0x9d   : > { %v1098_v41 = vsel %vm454_vm0, %v3374_v0, 0.0  ;;  %v1089_v39 = vrot.slane %v1088_v53, 1  ;;  %v1095_v23 = vadd.f32 %v1094_v62, %v1093_v11  ;;  %v1926_v27 = vpop.eup %1925  ;;  %1945 = vrcp.f32 %v2607_v58 }
  0x9e   : > { %3375 = vst [vmem:[#allocation56_spill] sm:$0xff] %v2666_v26  ;;  %3376 = vst [vmem:[#allocation57_spill] sm:$0xff] %v2668_v16  ;;  %v1099_v47 = vrot.slane %v1098_v41, 4  ;;  %v981_v44 = vcombine.low %v1922_v29, %v1924_v24  ;;  %v2673_v28 = vmul.f32 %v2474_v63, %v980_v42  ;;  %v1105_v35 = vsel %vm454_vm0, %v2400_v22, 0.0  ;;  %v1928_v56 = vpop.eup %1927  ;;  %v3444_v16 = vld [vmem:[#allocation49_spill] sm:$0xff] }
  0x9f   : > { %1947 = vrcp.f32 %v2615_v34  ;;  %v2678_v2 = vadd.f32 %v1089_v39, %v1088_v53  ;;  %v1096_v6 = vrot.slane %v1095_v23, 1  ;;  %v1930_v15 = vpop.eup %1929  ;;  %v982_v11 = vcombine.low %v1926_v27, %v1928_v56 }
  0xa0   : > { %3377 = vst [vmem:[#allocation58_spill] sm:$0xff] %v2673_v28  ;;  %v1100_v36 = vadd.f32 %v1099_v47, %v1098_v41  ;;  %1949 = vrcp.f32 %v2627_v50  ;;  %v2682_v13 = vmul.f32 %v2481_v49, %v981_v44  ;;  %v1106_v62 = vrot.slane %v1105_v35, 4  ;;  %v1932_v63 = vpop.eup %1931 }
  0xa1   : > { %3378 = vst [vmem:[#allocation59_spill] sm:$0xff] %v2678_v2  ;;  %1951 = vrcp.f32 %v2630_v59  ;;  %v2685_v0 = vadd.f32 %v1096_v6, %v1095_v23  ;;  %v3381_v53 = vcombine.high %v2400_v22, %v2400_v22  ;;  %v1934_v41 = vpop.eup %1933  ;;  %v983_v24 = vcombine.low %v1930_v15, %v1932_v63 }
  0xa2   : > { %3379 = vst [vmem:[#allocation60_spill] sm:$0xff] %v2682_v13  ;;  %v1101_v29 = vrot.slane %v1100_v36, 2  ;;  %1953 = vrcp.f32 %v2638_v8  ;;  %v2693_v39 = vmul.f32 %v2486_v30, %v982_v11  ;;  %v1107_v49 = vadd.f32 %v1106_v62, %v1105_v35  ;;  %v1936_v47 = vpop.eup %1935 }
  0xa3   : > { %3380 = vst [vmem:[#allocation61_spill] sm:$0xff] %v2685_v0  ;;  %v1112_v42 = vsel %vm454_vm0, %v3381_v53, 0.0  ;;  %v1119_v23 = vsel %vm454_vm0, %v2404_v43, 0.0  ;;  %v3383_v56 = vcombine.high %v2404_v43, %v2404_v43  ;;  %v1938_v6 = vpop.eup %1937  ;;  %v984_v53 = vcombine.low %v1934_v41, %v1936_v47 }
  0xa4   : > { %3382 = vst [vmem:[#allocation62_spill] sm:$0xff] %v2693_v39  ;;  %v1102_v27 = vadd.f32 %v1101_v29, %v1100_v36  ;;  %v1113_v44 = vrot.slane %v1112_v42, 4  ;;  %v2702_v8 = vmul.f32 %v2490_v48, %v983_v24  ;;  %v1108_v15 = vrot.slane %v1107_v49, 2  ;;  %v1940_v11 = vpop.eup %1939 }
  0xa5   : > { %v1126_v22 = vsel %vm454_vm0, %v3383_v56, 0.0  ;;  %v1120_v30 = vrot.slane %v1119_v23, 4  ;;  %v1133_v63 = vsel %vm454_vm0, %v2408_v31, 0.0  ;;  %v1942_v29 = vpop.eup %1941  ;;  %v985_v59 = vcombine.low %v1938_v6, %v1940_v11 }
  0xa6   : > { %3384 = vst [vmem:[#allocation63_spill] sm:$0xff] %v2702_v8  ;;  %v1103_v35 = vrot.slane %v1102_v27, 1  ;;  %v1114_v62 = vadd.f32 %v1113_v44, %v1112_v42  ;;  %v1127_v36 = vrot.slane %v1126_v22, 4  ;;  %v2707_v43 = vmul.f32 %v2495_v60, %v984_v53  ;;  %v1944_v41 = vpop.eup %1943 }
  0xa7   : > { %v1109_v56 = vadd.f32 %v1108_v15, %v1107_v49  ;;  %v1121_v50 = vadd.f32 %v1120_v30, %v1119_v23  ;;  %v1134_v34 = vrot.slane %v1133_v63, 4  ;;  %v1946_v58 = vpop.eup %1945  ;;  %v986_v0 = vcombine.low %v1942_v29, %v1944_v41 }
  0xa8   : > { %3385 = vst [vmem:[#allocation64_spill] sm:$0xff] %v2707_v43  ;;  %v2709_v47 = vadd.f32 %v1103_v35, %v1102_v27  ;;  %v1115_v48 = vrot.slane %v1114_v62, 2  ;;  %v1128_v24 = vadd.f32 %v1127_v36, %v1126_v22  ;;  %v2712_v42 = vmul.f32 %v2499_v20, %v985_v59 }
  0xa9   : > { %v1110_v44 = vrot.slane %v1109_v56, 1  ;;  %v1122_v7 = vrot.slane %v1121_v50, 2  ;;  %v1948_v2 = vpop.eup %1947  ;;  %v1135_v60 = vadd.f32 %v1134_v34, %v1133_v63  ;;  %v3388_v49 = vcombine.high %v2408_v31, %v2408_v31 }
  0xaa   : > { %3386 = vst [vmem:[#allocation65_spill] sm:$0xff] %v2709_v47  ;;  %3387 = vst [vmem:[#allocation66_spill] sm:$0xff] %v2712_v42  ;;  %v1116_v6 = vadd.f32 %v1115_v48, %v1114_v62  ;;  %v1129_v11 = vrot.slane %v1128_v24, 2  ;;  %v1950_v23 = vpop.eup %1949  ;;  %v987_v53 = vcombine.low %v1946_v58, %v1948_v2  ;;  %v2719_v22 = vmul.f32 %v2503_v25, %v986_v0 }
  0xab   : > { %v1140_v27 = vsel %vm454_vm0, %v3388_v49, 0.0  ;;  %v2721_v15 = vadd.f32 %v1110_v44, %v1109_v56  ;;  %v1123_v20 = vadd.f32 %v1122_v7, %v1121_v50  ;;  %v1952_v59 = vpop.eup %1951  ;;  %v1136_v36 = vrot.slane %v1135_v60, 2 }
  0xac   : > { %3389 = vst [vmem:[#allocation67_spill] sm:$0xff] %v2719_v22  ;;  %v1117_v30 = vrot.slane %v1116_v6, 1  ;;  %v1130_v35 = vadd.f32 %v1129_v11, %v1128_v24  ;;  %v1141_v62 = vrot.slane %v1140_v27, 4  ;;  %v1954_v29 = vpop.eup %1953  ;;  %v988_v34 = vcombine.low %v1950_v23, %v1952_v59  ;;  %v3398_v11 = vld [vmem:[#allocation40_spill] sm:$0xff]  ;;  %v3401_v59 = vld [vmem:[#allocation41_spill] sm:$0xff] }
  0xad   : > { %3390 = vst [vmem:[#allocation68_spill] sm:$0xff] %v2721_v15  ;;  %v2724_v63 = vmul.f32 %v2507_v51, %v987_v53  ;;  %v1124_v31 = vrot.slane %v1123_v20, 1  ;;  %v1147_v58 = vsel %vm454_vm0, %v2412_v1, 0.0  ;;  %v2729_v25 = vmul.f32 %v1954_v29, %v2515_v18 }
  0xae   : > { %v2731_v2 = vadd.f32 %v1117_v30, %v1116_v6  ;;  %v1131_v7 = vrot.slane %v1130_v35, 1  ;;  %v1137_v50 = vadd.f32 %v1136_v36, %v1135_v60  ;;  %v2734_v0 = vmul.f32 %v2511_v14, %v988_v34 }
  0xaf   : > { %3391 = vst [vmem:[#allocation69_spill] sm:$0xff] %v2724_v63  ;;  %3392 = vst [vmem:[#allocation70_spill] sm:$0xff] %v2729_v25  ;;  %v2736_v56 = vadd.f32 %v1124_v31, %v1123_v20  ;;  %v1142_v41 = vadd.f32 %v1141_v62, %v1140_v27  ;;  %v1148_v48 = vrot.slane %v1147_v58, 4  ;;  %v3397_v44 = vcombine.high %v2412_v1, %v2412_v1 }
  0xb0   : > { %3393 = vst [vmem:[#allocation71_spill] sm:$0xff] %v2731_v2  ;;  %3394 = vst [vmem:[#allocation72_spill] sm:$0xff] %v2734_v0  ;;  %v2738_v51 = vadd.f32 %v1131_v7, %v1130_v35  ;;  %v1138_v24 = vrot.slane %v1137_v50, 1  ;;  %v1161_v6 = vsel %vm454_vm0, %v3398_v11, 0.0  ;;  %v3400_v27 = vcombine.high %v3398_v11, %v3398_v11 }
  0xb1   : > { %3395 = vst [vmem:[#allocation73_spill] sm:$0xff] %v2736_v56  ;;  %v1154_v18 = vsel %vm454_vm0, %v3397_v44, 0.0  ;;  %v1143_v49 = vrot.slane %v1142_v41, 2  ;;  %v1149_v60 = vadd.f32 %v1148_v48, %v1147_v58  ;;  %v1162_v14 = vrot.slane %v1161_v6, 4 }
  0xb2   : > { %3396 = vst [vmem:[#allocation74_spill] sm:$0xff] %v2738_v51  ;;  %v1155_v23 = vrot.slane %v1154_v18, 4  ;;  %v2746_v53 = vadd.f32 %v1138_v24, %v1137_v50  ;;  %v1168_v20 = vsel %vm454_vm0, %v3400_v27, 0.0  ;;  %v1175_v30 = vsel %vm454_vm0, %v3401_v59, 0.0  ;;  %v3403_v50 = vld [vmem:[#allocation42_spill] sm:$0xff] }
  0xb3   : > { %v3402_v1 = vcombine.high %v3401_v59, %v3401_v59  ;;  %v1144_v36 = vadd.f32 %v1143_v49, %v1142_v41  ;;  %v1150_v62 = vrot.slane %v1149_v60, 2  ;;  %v1163_v34 = vadd.f32 %v1162_v14, %v1161_v6 }
  0xb4   : > { %3399 = vst [vmem:[#allocation40_spill] sm:$0xff] %v2746_v53  ;;  %v1156_v29 = vadd.f32 %v1155_v23, %v1154_v18  ;;  %v1169_v31 = vrot.slane %v1168_v20, 4  ;;  %v1176_v58 = vrot.slane %v1175_v30, 4  ;;  %v1189_v48 = vsel %vm454_vm0, %v3403_v50, 0.0 }
  0xb5   : > { %v1182_v35 = vsel %vm454_vm0, %v3402_v1, 0.0  ;;  %v1145_v24 = vrot.slane %v1144_v36, 1  ;;  %v1151_v44 = vadd.f32 %v1150_v62, %v1149_v60  ;;  %v1164_v27 = vrot.slane %v1163_v34, 2 }
  0xb6   : > { %v1183_v7 = vrot.slane %v1182_v35, 4  ;;  %v1157_v11 = vrot.slane %v1156_v29, 2  ;;  %v1170_v53 = vadd.f32 %v1169_v31, %v1168_v20  ;;  %v1177_v51 = vadd.f32 %v1176_v58, %v1175_v30  ;;  %v3407_v58 = vld [vmem:[#allocation43_spill] sm:$0xff] }
  0xb7   : > { %v1190_v59 = vrot.slane %v1189_v48, 4  ;;  %v2760_v2 = vadd.f32 %v1145_v24, %v1144_v36  ;;  %v1152_v41 = vrot.slane %v1151_v44, 1  ;;  %v1165_v18 = vadd.f32 %v1164_v27, %v1163_v34 }
  0xb8   : > { %v1184_v56 = vadd.f32 %v1183_v7, %v1182_v35  ;;  %v1158_v49 = vadd.f32 %v1157_v11, %v1156_v29  ;;  %v1171_v6 = vrot.slane %v1170_v53, 2  ;;  %v1178_v23 = vrot.slane %v1177_v51, 2 }
  0xb9   : > { %3404 = vst [vmem:[#allocation41_spill] sm:$0xff] %v2760_v2  ;;  %v1191_v1 = vadd.f32 %v1190_v59, %v1189_v48  ;;  %v2762_v15 = vadd.f32 %v1152_v41, %v1151_v44  ;;  %v1166_v40 = vrot.slane %v1165_v18, 1  ;;  %v3405_v60 = vcombine.high %v3403_v50, %v3403_v50 }
  0xba   : > { %v1185_v14 = vrot.slane %v1184_v56, 2  ;;  %v1159_v47 = vrot.slane %v1158_v49, 1  ;;  %v1172_v30 = vadd.f32 %v1171_v6, %v1170_v53  ;;  %v1179_v35 = vadd.f32 %v1178_v23, %v1177_v51 }
  0xbb   : > { %v1196_v20 = vsel %vm454_vm0, %v3405_v60, 0.0  ;;  %v1192_v62 = vrot.slane %v1191_v1, 2  ;;  %v2770_v29 = vadd.f32 %v1166_v40, %v1165_v18  ;;  %v1203_v7 = vsel %vm454_vm0, %v3407_v58, 0.0 }
  0xbc   : > { %v1186_v36 = vadd.f32 %v1185_v14, %v1184_v56  ;;  %v2768_v31 = vadd.f32 %v1159_v47, %v1158_v49  ;;  %v1197_v34 = vrot.slane %v1196_v20, 4  ;;  %v1173_v48 = vrot.slane %v1172_v30, 1 }
  0xbd   : > { %3406 = vst [vmem:[#allocation42_spill] sm:$0xff] %v2770_v29  ;;  %v1180_v24 = vrot.slane %v1179_v35, 1  ;;  %v1193_v11 = vadd.f32 %v1192_v62, %v1191_v1  ;;  %v1204_v50 = vrot.slane %v1203_v7, 4  ;;  %v3408_v53 = vcombine.high %v3407_v58, %v3407_v58 }
  0xbe   : > { %v1187_v44 = vrot.slane %v1186_v36, 1  ;;  %v1198_v27 = vadd.f32 %v1197_v34, %v1196_v20  ;;  %v1217_v47 = vsel %vm454_vm0, %v2432_v54, 0.0  ;;  %v2780_v40 = vadd.f32 %v1173_v48, %v1172_v30  ;;  %v3412_v20 = vld [vmem:[#allocation44_spill] sm:$0xff]  ;;  %v3413_v48 = vld [vmem:[#allocation2_spill] sm:$0xff] }
  0xbf   : > { %v1210_v56 = vsel %vm454_vm0, %v3408_v53, 0.0  ;;  %v2782_v51 = vadd.f32 %v1180_v24, %v1179_v35  ;;  %v1194_v41 = vrot.slane %v1193_v11, 1  ;;  %v1205_v18 = vadd.f32 %v1204_v50, %v1203_v7 }
  0xc0   : > { %3409 = vst [vmem:[#allocation43_spill] sm:$0xff] %v2780_v40  ;;  %v2784_v59 = vadd.f32 %v1187_v44, %v1186_v36  ;;  %v1199_v49 = vrot.slane %v1198_v27, 2  ;;  %v1211_v6 = vrot.slane %v1210_v56, 4  ;;  %v1218_v23 = vrot.slane %v1217_v47, 4 }
  0xc1   : > { %v2786_v14 = vadd.f32 %v1194_v41, %v1193_v11  ;;  %v3411_v1 = vcombine.high %v2432_v54, %v2432_v54  ;;  %v1231_v30 = vsel %vm454_vm0, %v3412_v20, 0.0  ;;  %1955 = vlog2.f32 %v2519_v38  ;;  %v3414_v38 = vld [vmem:[#allocation3_spill] sm:$0xff] }
  0xc2   : > { %v1200_v35 = vadd.f32 %v1199_v49, %v1198_v27  ;;  %v1206_v36 = vrot.slane %v1205_v18, 2  ;;  %v1212_v62 = vadd.f32 %v1211_v6, %v1210_v56  ;;  %v1219_v34 = vadd.f32 %v1218_v23, %v1217_v47 }
  0xc3   : > { %3410 = vst [vmem:[#allocation75_spill] sm:$0xff] %v2786_v14  ;;  %v1224_v60 = vsel %vm454_vm0, %v3411_v1, 0.0  ;;  %v1232_v7 = vrot.slane %v1231_v30, 4  ;;  %1957 = vlog2.f32 %v2525_v33  ;;  %v2798_v24 = vmul.f32 %v2650_v52, %v3413_v48  ;;  %v3415_v1 = vld [vmem:[#allocation4_spill] sm:$0xff] }
  0xc4   : > { %v1225_v58 = vrot.slane %v1224_v60, 4  ;;  %v1201_v54 = vrot.slane %v1200_v35, 1  ;;  %v1207_v44 = vadd.f32 %v1206_v36, %v1205_v18  ;;  %v1213_v11 = vrot.slane %v1212_v62, 2  ;;  %v3416_v36 = vld [vmem:[#allocation5_spill] sm:$0xff] }
  0xc5   : > { %v1220_v50 = vrot.slane %v1219_v34, 2  ;;  %v1233_v41 = vadd.f32 %v1232_v7, %v1231_v30  ;;  %1959 = vlog2.f32 %v2521_v12  ;;  %v1340_v27 = vmul.f32 %v2657_v57, %v3414_v38 }
  0xc6   : > { %v1226_v53 = vadd.f32 %v1225_v58, %v1224_v60  ;;  %v2803_v56 = vadd.f32 %v1201_v54, %v1200_v35  ;;  %v1208_v47 = vrot.slane %v1207_v44, 1  ;;  %v1214_v49 = vadd.f32 %v1213_v11, %v1212_v62  ;;  %v3418_v58 = vld [vmem:[#allocation6_spill] sm:$0xff] }
  0xc7   : > { %v1221_v33 = vadd.f32 %v1220_v50, %v1219_v34  ;;  %v1234_v23 = vrot.slane %v1233_v41, 2  ;;  %1961 = vlog2.f32 %v2528_v45  ;;  %v2808_v18 = vmul.f32 %v2666_v26, %v3415_v1 }
  0xc8   : > { %v1227_v6 = vrot.slane %v1226_v53, 2  ;;  %v2810_v60 = vadd.f32 %v1208_v47, %v1207_v44  ;;  %v1215_v20 = vrot.slane %v1214_v49, 1  ;;  %1963 = vlog2.f32 %v2530_v61 }
  0xc9   : > { %v1222_v12 = vrot.slane %v1221_v33, 1  ;;  %v1235_v35 = vadd.f32 %v1234_v23, %v1233_v41  ;;  %1965 = vlog2.f32 %v2538_v9  ;;  %v2816_v62 = vmul.f32 %v2673_v28, %v3416_v36  ;;  %v3419_v9 = vld [vmem:[#allocation7_spill] sm:$0xff] }
  0xca   : > { %v1228_v30 = vadd.f32 %v1227_v6, %v1226_v53  ;;  %v2818_v34 = vadd.f32 %v1215_v20, %v1214_v49  ;;  %1967 = vlog2.f32 %v2546_v19  ;;  %v2825_v7 = vmul.f32 %v2682_v13, %v3418_v58  ;;  %v3420_v53 = vld [vmem:[#allocation8_spill] sm:$0xff]  ;;  %v3421_v19 = vld [vmem:[#allocation9_spill] sm:$0xff] }
  0xcb   : > { %v2820_v45 = vadd.f32 %v1222_v12, %v1221_v33  ;;  %v1956_v54 = vpop.eup %1955  ;;  %v1236_v44 = vrot.slane %v1235_v35, 1  ;;  %1969 = vlog2.f32 %v2548_v55  ;;  %v2830_v11 = vmul.f32 %v2693_v39, %v3419_v9  ;;  %v3423_v55 = vld [vmem:[#allocation10_spill] sm:$0xff]  ;;  %v3424_v20 = vld [vmem:[#allocation45_spill] sm:$0xff]  ;;  %v3425_v12 = vld [vmem:[#allocation15_spill] sm:$0xff] }
  0xcc   : > { %v1229_v61 = vrot.slane %v1228_v30, 1  ;;  %v1239_v50 = vmul.f32 0.6931472, %v1956_v54  ;;  %1971 = vlog2.f32 %v2550_v37  ;;  %v2835_v41 = vmul.f32 %v2702_v8, %v3420_v53  ;;  %v3427_v8 = vld [vmem:[#allocation11_spill] sm:$0xff] }
  0xcd   : > { %3417 = vst [vmem:[#allocation44_spill] sm:$0xff] %v2820_v45  ;;  %v2839_v47 = vmul.f32 %v2707_v43, %v3421_v19  ;;  %v1958_v49 = vpop.eup %1957  ;;  %v2843_v6 = vadd.f32 %v1236_v44, %v1235_v35  ;;  %1973 = vlog2.f32 %v2554_v3  ;;  %v2848_v23 = vmul.f32 %v2712_v42, %v3423_v55  ;;  %v3429_v35 = vld [vmem:[#allocation12_spill] sm:$0xff]  ;;  %v3430_v44 = vld [vmem:[#allocation13_spill] sm:$0xff] }
  0xce   : > { %v2841_v33 = vadd.f32 %v1229_v61, %v1228_v30  ;;  %v1241_v37 = vmul.f32 0.6931472, %v1958_v49  ;;  %1975 = vlog2.f32 %v3424_v20  ;;  %v2852_v54 = vadd.f32 %v1239_v50, %v3425_v12  ;;  %v3428_v61 = vld [vmem:[#allocation46_spill] sm:$0xff]  ;;  %v3432_v12 = vld [vmem:[#allocation16_spill] sm:$0xff] }
  0xcf   : > { %v2856_v43 = vmul.f32 %v2719_v22, %v3427_v8  ;;  %v1960_v30 = vpop.eup %1959  ;;  %1977 = vlog2.f32 %v3428_v61  ;;  %v2861_v3 = vmul.f32 %v2724_v63, %v3429_v35  ;;  %v2865_v42 = vmul.f32 %v2734_v0, %v3430_v44  ;;  %v3431_v49 = vld [vmem:[#allocation14_spill] sm:$0xff] }
  0xd0   : > { %3422 = vst [vmem:[#allocation2_spill] sm:$0xff] %v2841_v33  ;;  %3426 = vst [vmem:[#allocation3_spill] sm:$0xff] %v2852_v54  ;;  %v2869_v20 = vmul.f32 %v2729_v25, %v3431_v49  ;;  %v1243_v50 = vmul.f32 0.6931472, %v1960_v30  ;;  %1979 = vlog2.f32 %v2566_v21  ;;  %v2873_v22 = vadd.f32 %v1241_v37, %v3432_v12  ;;  %v3433_v49 = vld [vmem:[#allocation47_spill] sm:$0xff]  ;;  %v3434_v30 = vld [vmem:[#allocation17_spill] sm:$0xff] }
  0xd1   : > { %v1962_v39 = vpop.eup %1961  ;;  %1981 = vlog2.f32 %v2580_v10  ;;  %v1353_v63 = vrot.slane %v2798_v24, 4  ;;  %v1357_v0 = vrot.slane %v1340_v27, 4  ;;  %v1361_v13 = vrot.slane %v2808_v18, 4 }
  0xd2   : > { %v1964_v28 = vpop.eup %1963  ;;  %v1245_v25 = vmul.f32 0.6931472, %v1962_v39  ;;  %1983 = vlog2.f32 %v3433_v49  ;;  %v2882_v21 = vadd.f32 %v1243_v50, %v3434_v30  ;;  %v3436_v39 = vld [vmem:[#allocation18_spill] sm:$0xff] }
  0xd3   : > { %v1966_v12 = vpop.eup %1965  ;;  %v1247_v61 = vmul.f32 0.6931472, %v1964_v28  ;;  %1985 = vlog2.f32 %v2588_v4  ;;  %v2888_v10 = vadd.f32 %v1353_v63, %v2798_v24  ;;  %v2890_v5 = vadd.f32 %v1357_v0, %v1340_v27  ;;  %v3438_v4 = vld [vmem:[#allocation19_spill] sm:$0xff]  ;;  %v3440_v27 = vld [vmem:[#allocation48_spill] sm:$0xff] }
  0xd4   : > { %3435 = vst [vmem:[#allocation4_spill] sm:$0xff] %v2882_v21  ;;  %v1968_v54 = vpop.eup %1967  ;;  %v1249_v26 = vmul.f32 0.6931472, %v1966_v12  ;;  %1987 = vlog2.f32 %v2592_v32  ;;  %v2894_v49 = vadd.f32 %v1245_v25, %v3436_v39  ;;  %v2903_v63 = vadd.f32 %v1361_v13, %v2808_v18  ;;  %v3441_v32 = vld [vmem:[#allocation20_spill] sm:$0xff]  ;;  %v3448_v21 = vld [vmem:[#allocation50_spill] sm:$0xff] }
  0xd5   : > { %v1970_v30 = vpop.eup %1969  ;;  %v1251_v37 = vmul.f32 0.6931472, %v1968_v54  ;;  %1989 = vlog2.f32 %v2594_v46  ;;  %v2900_v28 = vadd.f32 %v1247_v61, %v3438_v4  ;;  %v3445_v46 = vld [vmem:[#allocation21_spill] sm:$0xff]  ;;  %v1365_v13 = vrot.slane %v2816_v62, 4 }
  0xd6   : > { %3437 = vst [vmem:[#allocation5_spill] sm:$0xff] %v2894_v49  ;;  %v1972_v0 = vpop.eup %1971  ;;  %v1253_v24 = vmul.f32 0.6931472, %v1970_v30  ;;  %1991 = vlog2.f32 %v3440_v27  ;;  %v2907_v25 = vadd.f32 %v1249_v26, %v3441_v32  ;;  %v3449_v27 = vld [vmem:[#allocation22_spill] sm:$0xff]  ;;  %v3452_v49 = vld [vmem:[#allocation51_spill] sm:$0xff] }
  0xd7   : > { %3439 = vst [vmem:[#allocation6_spill] sm:$0xff] %v2900_v28  ;;  %v1974_v50 = vpop.eup %1973  ;;  %v1255_v54 = vmul.f32 0.6931472, %v1972_v0  ;;  %1993 = vlog2.f32 %v3444_v16  ;;  %v2913_v61 = vadd.f32 %v1251_v37, %v3445_v46  ;;  %v3453_v16 = vld [vmem:[#allocation23_spill] sm:$0xff]  ;;  %v3456_v28 = vld [vmem:[#allocation52_spill] sm:$0xff] }
  0xd8   : > { %3442 = vst [vmem:[#allocation7_spill] sm:$0xff] %v2907_v25  ;;  %v1976_v18 = vpop.eup %1975  ;;  %v1257_v30 = vmul.f32 0.6931472, %v1974_v50  ;;  %1995 = vlog2.f32 %v3448_v21  ;;  %v2919_v26 = vadd.f32 %v1253_v24, %v3449_v27  ;;  %v3457_v21 = vld [vmem:[#allocation24_spill] sm:$0xff]  ;;  %v3459_v25 = vld [vmem:[#allocation53_spill] sm:$0xff] }
  0xd9   : > { %3446 = vst [vmem:[#allocation8_spill] sm:$0xff] %v2913_v61  ;;  %v1978_v12 = vpop.eup %1977  ;;  %v1259_v0 = vmul.f32 0.6931472, %v1976_v18  ;;  %1997 = vlog2.f32 %v3452_v49  ;;  %v2925_v37 = vadd.f32 %v1255_v54, %v3453_v16  ;;  %v3460_v49 = vld [vmem:[#allocation25_spill] sm:$0xff]  ;;  %v3463_v61 = vld [vmem:[#allocation54_spill] sm:$0xff] }
  0xda   : > { %3450 = vst [vmem:[#allocation9_spill] sm:$0xff] %v2919_v26  ;;  %v1980_v4 = vpop.eup %1979  ;;  %v1261_v50 = vmul.f32 0.6931472, %v1978_v12  ;;  %1999 = vlog2.f32 %v3456_v28  ;;  %v2931_v24 = vadd.f32 %v1257_v30, %v3457_v21  ;;  %v3464_v28 = vld [vmem:[#allocation26_spill] sm:$0xff]  ;;  %v3467_v26 = vld [vmem:[#allocation27_spill] sm:$0xff]  ;;  %v3470_v21 = vld [vmem:[#allocation29_spill] sm:$0xff] }
  0xdb   : > { %3454 = vst [vmem:[#allocation10_spill] sm:$0xff] %v2925_v37  ;;  %v1982_v32 = vpop.eup %1981  ;;  %v1263_v18 = vmul.f32 0.6931472, %v1980_v4  ;;  %2001 = vlog2.f32 %v3459_v25  ;;  %v2937_v54 = vadd.f32 %v1259_v0, %v3460_v49  ;;  %v3469_v37 = vld [vmem:[#allocation28_spill] sm:$0xff]  ;;  %v1367_v49 = vadd.f32 %v1365_v13, %v2816_v62 }
  0xdc   : > { %v1984_v46 = vpop.eup %1983  ;;  %v1265_v12 = vmul.f32 0.6931472, %v1982_v32  ;;  %2003 = vlog2.f32 %v3463_v61  ;;  %v2943_v30 = vadd.f32 %v1261_v50, %v3464_v28  ;;  %v1369_v28 = vrot.slane %v2825_v7, 4 }
  0xdd   : > { %3461 = vst [vmem:[#allocation45_spill] sm:$0xff] %v2937_v54  ;;  %v1986_v27 = vpop.eup %1985  ;;  %v1267_v4 = vmul.f32 0.6931472, %v1984_v46  ;;  %v2948_v25 = vadd.f32 %v1263_v18, %v3467_v26  ;;  %v3472_v54 = vld [vmem:[#allocation30_spill] sm:$0xff]  ;;  %v1373_v62 = vrot.slane %v2830_v11, 4  ;;  %v3475_v18 = vld [vmem:[#allocation32_spill] sm:$0xff] }
  0xde   : > { %3465 = vst [vmem:[#allocation15_spill] sm:$0xff] %v2943_v30  ;;  %v1988_v16 = vpop.eup %1987  ;;  %v1269_v32 = vmul.f32 0.6931472, %v1986_v27  ;;  %v2954_v61 = vadd.f32 %v1265_v12, %v3469_v37  ;;  %v1371_v50 = vadd.f32 %v1369_v28, %v2825_v7  ;;  %v3474_v30 = vld [vmem:[#allocation31_spill] sm:$0xff]  ;;  %v1377_v7 = vrot.slane %v2835_v41, 4  ;;  %v3476_v12 = vld [vmem:[#allocation33_spill] sm:$0xff] }
  0xdf   : > { %v1990_v39 = vpop.eup %1989  ;;  %v1271_v46 = vmul.f32 0.6931472, %v1988_v16  ;;  %v2960_v26 = vadd.f32 %v1267_v4, %v3470_v21  ;;  %v1375_v4 = vadd.f32 %v1373_v62, %v2830_v11  ;;  %v1381_v11 = vrot.slane %v2839_v47, 4 }
  0xe0   : > { %v1992_v0 = vpop.eup %1991  ;;  %v1273_v27 = vmul.f32 0.6931472, %v1990_v39  ;;  %v2966_v37 = vadd.f32 %v1269_v32, %v3472_v54  ;;  %v1379_v32 = vadd.f32 %v1377_v7, %v2835_v41  ;;  %v1385_v41 = vrot.slane %v2848_v23, 4 }
  0xe1   : > { %3471 = vst [vmem:[#allocation11_spill] sm:$0xff] %v2960_v26  ;;  %v1994_v2 = vpop.eup %1993  ;;  %v1275_v16 = vmul.f32 0.6931472, %v1992_v0  ;;  %v2972_v21 = vadd.f32 %v1271_v46, %v3474_v30  ;;  %v3477_v26 = vld [vmem:[#allocation34_spill] sm:$0xff]  ;;  %v3479_v46 = vld [vmem:[#allocation36_spill] sm:$0xff] }
  0xe2   : > { %3473 = vst [vmem:[#allocation46_spill] sm:$0xff] %v2966_v37  ;;  %v1996_v13 = vpop.eup %1995  ;;  %v1277_v39 = vmul.f32 0.6931472, %v1994_v2  ;;  %v2978_v54 = vadd.f32 %v1273_v27, %v3475_v18  ;;  %v3478_v37 = vld [vmem:[#allocation35_spill] sm:$0xff] }
  0xe3   : > { %v1998_v28 = vpop.eup %1997  ;;  %v1279_v0 = vmul.f32 0.6931472, %v1996_v13  ;;  %v2984_v30 = vadd.f32 %v1275_v16, %v3476_v12  ;;  %v3481_v16 = vld [vmem:[#allocation38_spill] sm:$0xff] }
  0xe4   : > { %v2000_v29 = vpop.eup %1999  ;;  %v1281_v2 = vmul.f32 0.6931472, %v1998_v28  ;;  %v2990_v18 = vadd.f32 %v1277_v39, %v3477_v26  ;;  %v3482_v39 = vld [vmem:[#allocation39_spill] sm:$0xff] }
  0xe5   : > { %v2002_v40 = vpop.eup %2001  ;;  %v1283_v13 = vmul.f32 0.6931472, %v2000_v29  ;;  %v2996_v12 = vadd.f32 %v1279_v0, %v3478_v37  ;;  %v3480_v29 = vld [vmem:[#allocation37_spill] sm:$0xff]  ;;  %v1383_v0 = vadd.f32 %v1381_v11, %v2839_v47  ;;  %v1397_v47 = vrot.slane %v2865_v42, 4 }
  0xe6   : > { %v2004_v62 = vpop.eup %2003  ;;  %v1285_v28 = vmul.f32 0.6931472, %v2002_v40  ;;  %v3002_v26 = vadd.f32 %v1281_v2, %v3479_v46  ;;  %v1387_v46 = vadd.f32 %v1385_v41, %v2848_v23  ;;  %v1389_v2 = vrot.slane %v2856_v43, 4 }
  0xe7   : > { %v1287_v7 = vmul.f32 0.6931472, %v2004_v62  ;;  %v3008_v27 = vadd.f32 %v1283_v13, %v3480_v29  ;;  %v1393_v29 = vrot.slane %v2861_v3, 4  ;;  %v1400_v23 = vadd.f32 %v2890_v5, %v2888_v10 }
  0xe8   : > { %v3014_v14 = vadd.f32 %v1285_v28, %v3481_v16  ;;  %v1391_v11 = vadd.f32 %v1389_v2, %v2856_v43  ;;  %v1401_v28 = vadd.f32 %v1367_v49, %v2903_v63  ;;  %v1402_v13 = vadd.f32 %v1375_v4, %v1371_v50 }
  0xe9   : > { %v3021_v62 = vadd.f32 %v1287_v7, %v3482_v39  ;;  %v1395_v41 = vadd.f32 %v1393_v29, %v2861_v3  ;;  %v1399_v7 = vadd.f32 %v1397_v47, %v2865_v42  ;;  %v1403_v40 = vadd.f32 %v1383_v0, %v1379_v32 }
  0xea   : > { %v1404_v37 = vadd.f32 %v1391_v11, %v1387_v46  ;;  %v1406_v45 = vadd.f32 %v1401_v28, %v1400_v23  ;;  %v1416_v16 = vrot.slane %v3413_v48, 4  ;;  %v1420_v43 = vrot.slane %v3414_v38, 4 }
  0xeb   : > { %v1337_v39 = vsub.f32 %v3021_v62, %v2843_v6  ;;  %v1405_v33 = vadd.f32 %v1399_v7, %v1395_v41  ;;  %v1424_v5 = vrot.slane %v3415_v1, 4  ;;  %v1428_v10 = vrot.slane %v3416_v36, 4 }
  0xec   : > { %v1407_v63 = vadd.f32 %v1403_v40, %v1402_v13  ;;  %v1418_v49 = vadd.f32 %v1416_v16, %v3413_v48  ;;  %v1432_v3 = vrot.slane %v3418_v58, 4  ;;  %v1436_v42 = vrot.slane %v3419_v9, 4 }
  0xed   : > { %v1408_v50 = vadd.f32 %v1405_v33, %v1404_v37  ;;  %v1422_v4 = vadd.f32 %v1420_v43, %v3414_v38  ;;  %v1426_v32 = vadd.f32 %v1424_v5, %v3415_v1  ;;  %v1430_v0 = vadd.f32 %v1428_v10, %v3416_v36  ;;  %v1338_v38 = vld [vmem:[%s2150_s19] sm:$0xf] }
  0xee   : > { %v1409_v46 = vadd.f32 %v1407_v63, %v1406_v45  ;;  %v1434_v2 = vadd.f32 %v1432_v3, %v3418_v58  ;;  %v1438_v29 = vadd.f32 %v1436_v42, %v3419_v9  ;;  %v1440_v40 = vrot.slane %v3420_v53, 4  ;;  %v3485_v42 = vld [vmem:[#allocation60_spill] sm:$0xff] }
  0xef   : > { %v1410_v48 = vadd.f32 %v1408_v50, %v2869_v20  ;;  %v1444_v13 = vrot.slane %v3421_v19, 4  ;;  %v1448_v47 = vrot.slane %v3423_v55, 4  ;;  %v1452_v33 = vrot.slane %v3427_v8, 4 }
  0xf0   : > { %v1442_v1 = vadd.f32 %v1440_v40, %v3420_v53  ;;  %v1456_v36 = vrot.slane %v3429_v35, 4  ;;  %v1460_v45 = vrot.slane %v3430_v44, 4  ;;  %v1463_v58 = vadd.f32 %v1422_v4, %v1418_v49 }
  0xf1   : > { %v1411_v37 = vadd.f32 %v1410_v48, %v1409_v46  ;;  %v1446_v9 = vadd.f32 %v1444_v13, %v3421_v19  ;;  %v1450_v20 = vadd.f32 %v1448_v47, %v3423_v55  ;;  %v1454_v16 = vadd.f32 %v1452_v33, %v3427_v8  ;;  %v3483_v19 = vld [vmem:[#allocation56_spill] sm:$0xff]  ;;  %v3486_v46 = vld [vmem:[#allocation62_spill] sm:$0xff]  ;;  %v3487_v13 = vld [vmem:[#allocation63_spill] sm:$0xff] }
  0xf2   : > { %v1458_v11 = vadd.f32 %v1456_v36, %v3429_v35  ;;  %v1462_v23 = vadd.f32 %v1460_v45, %v3430_v44  ;;  %v1464_v28 = vadd.f32 %v1430_v0, %v1426_v32  ;;  %v1465_v41 = vadd.f32 %v1438_v29, %v1434_v2  ;;  %v3484_v35 = vld [vmem:[#allocation58_spill] sm:$0xff] }
  0xf3   : > { %v1412_v53 = vadd.f32 %v1411_v37, %v1338_v38  ;;  %v1466_v7 = vadd.f32 %v1446_v9, %v1442_v1  ;;  %v1467_v43 = vadd.f32 %v1454_v16, %v1450_v20  ;;  %v1479_v5 = vrot.slane %v2650_v52, 4  ;;  %v3488_v33 = vld [vmem:[#allocation14_spill] sm:$0xff]  ;;  %v3489_v1 = vld [vmem:[#allocation64_spill] sm:$0xff]  ;;  %v3491_v9 = vld [vmem:[#allocation67_spill] sm:$0xff] }
  0xf4   : > { %v1468_v10 = vadd.f32 %v1462_v23, %v1458_v11  ;;  %v1469_v63 = vadd.f32 %v1464_v28, %v1463_v58  ;;  %v1483_v49 = vrot.slane %v2657_v57, 4  ;;  %v1487_v3 = vrot.slane %v3483_v19, 4  ;;  %v3490_v45 = vld [vmem:[#allocation66_spill] sm:$0xff]  ;;  %v3492_v16 = vld [vmem:[#allocation69_spill] sm:$0xff]  ;;  %v3493_v23 = vld [vmem:[#allocation72_spill] sm:$0xff] }
  0xf5   : > { %1413 = vst [vmem:[%s2150_s19] sm:$0xf] %v1412_v53  ;;  %v1470_v55 = vadd.f32 %v1466_v7, %v1465_v41  ;;  %v1481_v8 = vadd.f32 %v1479_v5, %v2650_v52  ;;  %v1491_v44 = vrot.slane %v3484_v35, 4  ;;  %v1495_v50 = vrot.slane %v3485_v42, 4 }
  0xf6   : > { %v1471_v4 = vadd.f32 %v1468_v10, %v1467_v43  ;;  %v1485_v32 = vadd.f32 %v1483_v49, %v2657_v57  ;;  %v1489_v0 = vadd.f32 %v1487_v3, %v3483_v19  ;;  %v1499_v2 = vrot.slane %v3486_v46, 4  ;;  %v1414_v57 = vld [vmem:[%s2155_s27] sm:$0xf] }
  0xf7   : > { %v1472_v29 = vadd.f32 %v1470_v55, %v1469_v63  ;;  %v1493_v40 = vadd.f32 %v1491_v44, %v3484_v35  ;;  %v1497_v48 = vadd.f32 %v1495_v50, %v3485_v42  ;;  %v1503_v47 = vrot.slane %v3487_v13, 4  ;;  %v3494_v35 = vld [vmem:[#allocation3_spill] sm:$0xff] }
  0xf8   : > { %v1473_v52 = vadd.f32 %v1471_v4, %v3488_v33  ;;  %v1501_v38 = vadd.f32 %v1499_v2, %v3486_v46  ;;  %v1507_v36 = vrot.slane %v3489_v1, 4  ;;  %v1511_v58 = vrot.slane %v3490_v45, 4  ;;  %v3495_v44 = vld [vmem:[#allocation55_spill] sm:$0xff] }
  0xf9   : > { %v1505_v37 = vadd.f32 %v1503_v47, %v3487_v13  ;;  %v1515_v20 = vrot.slane %v3491_v9, 4  ;;  %v1519_v11 = vrot.slane %v3492_v16, 4  ;;  %v1523_v28 = vrot.slane %v3493_v23, 4  ;;  %v3501_v47 = vld [vmem:[#allocation5_spill] sm:$0xff]  ;;  %v3502_v33 = vld [vmem:[#allocation59_spill] sm:$0xff] }
  0xfa   : > { %v1474_v41 = vadd.f32 %v1473_v52, %v1472_v29  ;;  %v1509_v53 = vadd.f32 %v1507_v36, %v3489_v1  ;;  %v1513_v7 = vadd.f32 %v1511_v58, %v3490_v45  ;;  %v1526_v43 = vadd.f32 %v1485_v32, %v1481_v8  ;;  %v3498_v32 = vld [vmem:[#allocation4_spill] sm:$0xff]  ;;  %v3499_v29 = vld [vmem:[#allocation57_spill] sm:$0xff]  ;;  %v3507_v36 = vld [vmem:[#allocation7_spill] sm:$0xff] }
  0xfb   : > { %v1517_v5 = vadd.f32 %v1515_v20, %v3491_v9  ;;  %v1521_v10 = vadd.f32 %v1519_v11, %v3492_v16  ;;  %v1525_v63 = vadd.f32 %v1523_v28, %v3493_v23  ;;  %v1527_v49 = vadd.f32 %v1493_v40, %v1489_v0  ;;  %v3508_v45 = vld [vmem:[#allocation65_spill] sm:$0xff]  ;;  %v3514_v20 = vld [vmem:[#allocation71_spill] sm:$0xff]  ;;  %v3516_v23 = vld [vmem:[#allocation10_spill] sm:$0xff] }
  0xfc   : > { %v1475_v19 = vadd.f32 %v1474_v41, %v1414_v57  ;;  %v1528_v3 = vadd.f32 %v1501_v38, %v1497_v48  ;;  %v1529_v55 = vadd.f32 %v1509_v53, %v1505_v37  ;;  %v3496_v42 = vsub.f32 %v3494_v35, %v3495_v44  ;;  %v3504_v48 = vld [vmem:[#allocation6_spill] sm:$0xff]  ;;  %v3505_v38 = vld [vmem:[#allocation61_spill] sm:$0xff]  ;;  %v3511_v57 = vld [vmem:[#allocation68_spill] sm:$0xff] }
  0xfd   : > { %v3497_v50 = vsub.f32 %v2873_v22, %v2653_v17  ;;  %v1530_v46 = vadd.f32 %v1517_v5, %v1513_v7  ;;  %v1531_v2 = vadd.f32 %v1525_v63, %v1521_v10  ;;  %v1532_v8 = vadd.f32 %v1527_v49, %v1526_v43  ;;  %v3510_v22 = vld [vmem:[#allocation8_spill] sm:$0xff]  ;;  %v3513_v9 = vld [vmem:[#allocation9_spill] sm:$0xff]  ;;  %v3519_v53 = vld [vmem:[#allocation74_spill] sm:$0xff] }
  0xfe   : > { %v3500_v13 = vsub.f32 %v3498_v32, %v3499_v29  ;;  %v3503_v52 = vsub.f32 %v3501_v47, %v3502_v33  ;;  %1476 = vst [vmem:[%s2155_s27] sm:$0xf] %v1475_v19  ;;  %v1533_v40 = vadd.f32 %v1529_v55, %v1528_v3  ;;  %v3506_v1 = vsub.f32 %v3504_v48, %v3505_v38  ;;  %v3517_v28 = vld [vmem:[#allocation73_spill] sm:$0xff]  ;;  %v3522_v63 = vld [vmem:[#allocation40_spill] sm:$0xff]  ;;  %v3524_v19 = vld [vmem:[#allocation15_spill] sm:$0xff] }
  0xff   : > { %v1541_v4 = vadd.f32 %v3497_v50, %v3496_v42  ;;  %v3509_v58 = vsub.f32 %v3507_v36, %v3508_v45  ;;  %v3512_v37 = vsub.f32 %v3510_v22, %v3511_v57  ;;  %v3515_v16 = vsub.f32 %v3513_v9, %v3514_v20  ;;  %v3521_v10 = vld [vmem:[#allocation45_spill] sm:$0xff]  ;;  %v3529_v32 = vld [vmem:[#allocation11_spill] sm:$0xff]  ;;  %v3530_v29 = vld [vmem:[#allocation42_spill] sm:$0xff] }
 0x100   : > { %v1542_v0 = vadd.f32 %v3503_v52, %v3500_v13  ;;  %v3518_v41 = vsub.f32 %v3516_v23, %v3517_v28  ;;  %v3520_v7 = vsub.f32 %v2931_v24, %v3519_v53  ;;  %v1534_v5 = vadd.f32 %v1531_v2, %v1530_v46  ;;  %v3525_v3 = vld [vmem:[#allocation41_spill] sm:$0xff]  ;;  %v3532_v24 = vld [vmem:[#allocation46_spill] sm:$0xff]  ;;  %v3533_v47 = vld [vmem:[#allocation43_spill] sm:$0xff] }
 0x101   : > { %v1543_v17 = vadd.f32 %v3509_v58, %v3506_v1  ;;  %v1544_v11 = vadd.f32 %v3515_v16, %v3512_v37  ;;  %v3523_v49 = vsub.f32 %v3521_v10, %v3522_v63  ;;  %v3526_v55 = vsub.f32 %v3524_v19, %v3525_v3  ;;  %v3542_v36 = vld [vmem:[#allocation70_spill] sm:$0xff] }
 0x102   : > { %v1545_v43 = vadd.f32 %v3520_v7, %v3518_v41  ;;  %v3527_v44 = vsub.f32 %v2948_v25, %v2762_v15  ;;  %v3528_v42 = vsub.f32 %v2954_v61, %v2768_v31  ;;  %v3531_v13 = vsub.f32 %v3529_v32, %v3530_v29  ;;  %v3537_v15 = vld [vmem:[#allocation75_spill] sm:$0xff]  ;;  %v1477_v58 = vld [vmem:[%s2176_s30] sm:$0xf] }
 0x103   : > { %v1546_v35 = vadd.f32 %v3526_v55, %v3523_v49  ;;  %v3534_v46 = vsub.f32 %v3532_v24, %v3533_v47  ;;  %v1535_v33 = vadd.f32 %v1533_v40, %v1532_v8  ;;  %v3535_v52 = vsub.f32 %v2972_v21, %v2782_v51 }
 0x104   : > { %v1547_v50 = vadd.f32 %v3528_v42, %v3527_v44  ;;  %v3536_v48 = vsub.f32 %v2978_v54, %v2784_v59  ;;  %v3538_v25 = vsub.f32 %v2984_v30, %v3537_v15  ;;  %v3539_v31 = vsub.f32 %v2990_v18, %v2803_v56  ;;  %v3543_v59 = vld [vmem:[#allocation44_spill] sm:$0xff]  ;;  %v3545_v54 = vld [vmem:[#allocation2_spill] sm:$0xff] }
 0x105   : > { %v1548_v2 = vadd.f32 %v3534_v46, %v3531_v13  ;;  %v3540_v1 = vsub.f32 %v2996_v12, %v2810_v60  ;;  %v3541_v8 = vsub.f32 %v3002_v26, %v2818_v34  ;;  %v1536_v51 = vadd.f32 %v1534_v5, %v3542_v36 }
 0x106   : > { %v1549_v38 = vadd.f32 %v3536_v48, %v3535_v52  ;;  %v1550_v61 = vadd.f32 %v3539_v31, %v3538_v25  ;;  %v3544_v21 = vsub.f32 %v3008_v27, %v3543_v59  ;;  %v3546_v30 = vsub.f32 %v3014_v14, %v3545_v54  ;;  %v1540_v27 = vld [vmem:[%s2128_s16] sm:$0x1] }
 0x107   : > { %v1551_v40 = vadd.f32 %v3541_v8, %v3540_v1  ;;  %v1553_v56 = vadd.f32 %v1542_v0, %v1541_v4  ;;  %v1554_v18 = vadd.f32 %v1544_v11, %v1543_v17  ;;  %v1555_v60 = vadd.f32 %v1546_v35, %v1545_v43 }
 0x108   : > { %v1552_v45 = vadd.f32 %v3546_v30, %v3544_v21  ;;  %v1556_v12 = vadd.f32 %v1548_v2, %v1547_v50  ;;  %v1557_v22 = vadd.f32 %v1550_v61, %v1549_v38  ;;  %v1537_v34 = vadd.f32 %v1536_v51, %v1535_v33 }
 0x109   : > { %v1559_v57 = vadd.f32 %v1554_v18, %v1553_v56 }
 0x10a   : > { %v1558_v26 = vadd.f32 %v1552_v45, %v1551_v40  ;;  %v1560_v37 = vadd.f32 %v1556_v12, %v1555_v60  ;;  %v1538_v9 = vadd.f32 %v1537_v34, %v1477_v58 }
 0x10c   : > { %v1561_v20 = vadd.f32 %v1558_v26, %v1557_v22  ;;  %v1562_v16 = vadd.f32 %v1560_v37, %v1559_v57  ;;  %1539 = vst [vmem:[%s2176_s30] sm:$0xf] %v1538_v9 }
 0x10e   : > { %v1563_v14 = vadd.f32 %v1561_v20, %v1337_v39 }
 0x110   : > { %v1564_v4 = vadd.f32 %v1563_v14, %v1562_v16 }
 0x112   : > { %v1565_v0 = vadd.f32 %v1564_v4, %v1540_v27 }
 0x114   : > { %1566 = vst [vmem:[%s2128_s16] sm:$0x1] %v1565_v0 }
 0x115 PF: > { %s16_s22 = sadd.s32 1, %s2043_s22   ;;  %s3547_s18 = smov %s2035_s20 }
 0x116   : > { %p13_p8 = scmp.ge.s32.totalorder %s16_s22, 6   ;;  %s3548_s19 = smov %s2039_s21 }
 0x117   : > { %s3549_s20 = smov %s3552_s23  ;;  %s3550_s21 = smov %s3556_s24 }
 0x118   :  { %15 = sbr.rel (!%p13_p8) target bundleno = 3 (0x3), region = 101 }

</bundles_post_ra>
